<compile_context>
chip_gen: v7x
topology: tpu7x:2x2x1
jax: 0.10.0
libtpu: 0.0.40
codegen_flags: <defaults>
</compile_context>

<pallas_src>
import functools

import jax
import jax.numpy as jnp
from jax.experimental import pallas as pl
from jax.experimental.pallas import tpu as pltpu


NUM_CLASSES = 10
PAD_CLASSES = 128          # lane-dense output width (sliced to 10 on host)


# -----------------------------------------------------------------------------
# Fused kernel: shared per-point MLP + max-pool + graph surrogate + head.
# Grid iterates over batch tiles of Bt samples.
# -----------------------------------------------------------------------------
def fused_kernel(x_ref,
                 w1_ref, b1_ref, w2_ref, b2_ref, w3_ref, b3_ref,   # shared MLP
                 wg_ref, bg_ref,                                   # graph branch
                 wpn_ref, bpn_ref,                                 # fc_point_net
                 w1g_ref, w1p_ref, b1h_ref,                        # fc1 (split)
                 w2h_ref, b2h_ref,                                 # fc2
                 w3h_ref, b3h_ref,                                 # fc3 (padded)
                 out_ref):
    bt, n, c = x_ref.shape
    x = x_ref[...]                                                  # (Bt, N, C) f32
    xf = x.reshape(bt * n, c).astype(jnp.bfloat16)                  # (Bt*N, C)

    # PointNet-style shared per-point MLP (1x1 convs == matmuls), bf16 -> f32 acc.
    h = jnp.dot(xf, w1_ref[...], preferred_element_type=jnp.float32) + b1_ref[...]
    h = jnp.maximum(h, 0.0).astype(jnp.bfloat16)                    # (Bt*N, 64)
    h = jnp.dot(h, w2_ref[...], preferred_element_type=jnp.float32) + b2_ref[...]
    h = jnp.maximum(h, 0.0).astype(jnp.bfloat16)                    # (Bt*N, 128)
    h = jnp.dot(h, w3_ref[...], preferred_element_type=jnp.float32) + b3_ref[...]
    h = jnp.maximum(h, 0.0)                                         # (Bt*N, 1024) f32

    # Global max pool over points == MaxPool1d(size(-1)) + Flatten.
    pn_global = jnp.max(h.reshape(bt, n, 1024), axis=1)             # (Bt, 1024) f32

    # Surrogate graph branch: mean over nodes -> Linear(10, 64) -> ReLU.
    xm = jnp.mean(x, axis=1).astype(jnp.bfloat16)                   # (Bt, 10)
    g = jnp.dot(xm, wg_ref[...], preferred_element_type=jnp.float32) + bg_ref[...]
    g = jnp.maximum(g, 0.0)                                         # (Bt, 64)

    # out_pointnet = relu(bn_point_net(fc_point_net(pn_global)))  (BN folded)
    pn = jnp.dot(pn_global.astype(jnp.bfloat16), wpn_ref[...],
                 preferred_element_type=jnp.float32) + bpn_ref[...]
    pn = jnp.maximum(pn, 0.0)                                       # (Bt, 64)

    # fc1 on cat([g, pn]) as two partial matmuls summed (no concat op).
    h1 = (jnp.dot(g.astype(jnp.bfloat16), w1g_ref[...],
                  preferred_element_type=jnp.float32)
          + jnp.dot(pn.astype(jnp.bfloat16), w1p_ref[...],
                    preferred_element_type=jnp.float32)
          + b1h_ref[...])
    h1 = jnp.maximum(h1, 0.0)                                       # (Bt, 64)

    # relu(bn2(dropout(fc2(.)))) -- dropout is eval-mode identity.
    h2 = jnp.dot(h1.astype(jnp.bfloat16), w2h_ref[...],
                 preferred_element_type=jnp.float32) + b2h_ref[...]
    h2 = jnp.maximum(h2, 0.0)                                       # (Bt, 32)

    # fc3, padded to 128 lanes (pad columns carry -1e30 bias -> no effect).
    logits = jnp.dot(h2.astype(jnp.bfloat16), w3h_ref[...],
                     preferred_element_type=jnp.float32) + b3h_ref[...]  # (Bt, 128)

    # LogSoftmax(dim=1), numerically stable.
    m = jnp.max(logits, axis=1, keepdims=True)
    lse = m + jnp.log(jnp.sum(jnp.exp(logits - m), axis=1, keepdims=True))
    out_ref[...] = logits - lse                                     # (Bt, 128)


def run_fused(x, params, bt):
    """x: (B_padded, N, C) f32 with B_padded % bt == 0."""
    B, N, C = x.shape
    w1, b1 = params["pn1"]
    w2, b2 = params["pn2"]
    w3, b3 = params["pn3"]
    wg, bg = params["graph"]
    wpn, bpn = params["fcpn"]
    w1g, w1p, b1h = params["fc1"]
    w2h, b2h = params["fc2"]
    w3h, b3h = params["fc3"]

    args = (x, w1, b1, w2, b2, w3, b3, wg, bg, wpn, bpn,
            w1g, w1p, b1h, w2h, b2h, w3h, b3h)

    # Weights / biases are grid-resident: constant block index -> no re-DMA.
    def const(shape):
        return pl.BlockSpec(shape, lambda b, _n=len(shape): (0,) * _n)

    in_specs = [pl.BlockSpec((bt, N, C), lambda b: (b, 0, 0))] + \
               [const(a.shape) for a in args[1:]]

    flops = (2 * B * N * (C * 64 + 64 * 128 + 128 * 1024)
             + 2 * B * (C * 64 + 1024 * 64 + 64 * 64 + 64 * 64
                        + 64 * 32 + 32 * PAD_CLASSES))
    bytes_accessed = int(sum(int(a.size) * a.dtype.itemsize for a in args)
                         + B * PAD_CLASSES * 4)
    cost = pl.CostEstimate(flops=int(flops),
                           transcendentals=int(B * (PAD_CLASSES + 1)),
                           bytes_accessed=bytes_accessed)

    return pl.pallas_call(
        fused_kernel,
        out_shape=jax.ShapeDtypeStruct((B, PAD_CLASSES), jnp.float32),
        grid_spec=pltpu.PrefetchScalarGridSpec(
            num_scalar_prefetch=0,
            grid=(B // bt,),
            in_specs=in_specs,
            out_specs=pl.BlockSpec((bt, PAD_CLASSES), lambda b: (b, 0)),
        ),
        compiler_params=pltpu.CompilerParams(
            dimension_semantics=("parallel",)),
        cost_estimate=cost,
    )(*args)


# -----------------------------------------------------------------------------
# Parameter construction + BN folding (host-side glue).
# -----------------------------------------------------------------------------
def _bn_fold(w, b, gamma, beta, mean, var, eps=1e-5):
    """Fold BatchNorm1d (eval mode) into preceding Linear: bn(x @ w + b)."""
    scale = gamma / jnp.sqrt(var + eps)
    return w * scale[None, :], b * scale + (beta - mean * scale)


def make_params(key):
    ks = iter(jax.random.split(key, 32))
    bf16 = jnp.bfloat16

    def lin(k_in, k_out):
        kw, kb = jax.random.split(next(ks))
        bound = 1.0 / jnp.sqrt(k_in)
        w = jax.random.uniform(kw, (k_in, k_out), jnp.float32, -bound, bound)
        b = jax.random.uniform(kb, (1, k_out), jnp.float32, -bound, bound)
        return w, b

    def bn(n):
        kg, kb, km, kv = jax.random.split(next(ks), 4)
        gamma = 1.0 + 0.1 * jax.random.normal(kg, (n,), jnp.float32)
        beta = 0.1 * jax.random.normal(kb, (n,), jnp.float32)
        mean = 0.1 * jax.random.normal(km, (n,), jnp.float32)
        var = 1.0 + 0.1 * jax.random.uniform(kv, (n,), jnp.float32)
        return gamma, beta, mean, var

    p = {}
    # PointNet shared MLP 10 -> 64 -> 128 -> 1024 (BN folded per layer).
    for name, (ci, co) in zip(("pn1", "pn2", "pn3"),
                              ((10, 64), (64, 128), (128, 1024))):
        w, b = lin(ci, co)
        w, bf = _bn_fold(w, b[0], *bn(co))
        p[name] = (w.astype(bf16), bf.reshape(1, co))
    # Surrogate graph branch linear 10 -> 64.
    wg, bg = lin(10, 64)
    p["graph"] = (wg.astype(bf16), bg)
    # Head: fc_point_net(1024,64)+bn.
    w, b = lin(1024, 64)
    w, bf = _bn_fold(w, b[0], *bn(64))
    p["fcpn"] = (w.astype(bf16), bf.reshape(1, 64))
    # fc1(128,64)+bn1, split into [graph rows | pointnet rows].
    w, b = lin(128, 64)
    w, bf = _bn_fold(w, b[0], *bn(64))
    p["fc1"] = (w[:64].astype(bf16), w[64:].astype(bf16), bf.reshape(1, 64))
    # fc2(64,32)+bn2.
    w, b = lin(64, 32)
    w, bf = _bn_fold(w, b[0], *bn(32))
    p["fc2"] = (w.astype(bf16), bf.reshape(1, 32))
    # fc3(32,10), padded to 128 lanes; pad bias = -1e30 so log-softmax ignores it.
    w, b = lin(32, NUM_CLASSES)
    w_pad = jnp.zeros((32, PAD_CLASSES), jnp.float32).at[:, :NUM_CLASSES].set(w)
    b_pad = jnp.full((1, PAD_CLASSES), -1e30, jnp.float32).at[:, :NUM_CLASSES].set(b)
    p["fc3"] = (w_pad.astype(bf16), b_pad)
    return p


def feature_concat_forward(graph_features, params, bt=16):
    """graph_features: (B, N, 10) float32  (PyTorch data['graph_features'])."""
    B, N, C = graph_features.shape
    bt = min(bt, B)
    # Pad batch to a multiple of the batch tile (padded rows sliced off below).
    Bp = ((B + bt - 1) // bt) * bt
    x = graph_features
    if Bp != B:
        x = jnp.concatenate(
            [x, jnp.zeros((Bp - B, N, C), graph_features.dtype)], axis=0)

    log_probs_pad = run_fused(x, params, bt)
    log_probs = log_probs_pad[:B, :NUM_CLASSES]

    # T-Net transforms (shapes only; see TODO(synk) above).
    m3 = jnp.tile(jnp.eye(3, dtype=jnp.float32)[None], (B, 1, 1))
    m64 = jnp.tile(jnp.eye(64, dtype=jnp.float32)[None], (B, 1, 1))
    return log_probs, m3, m64


# -----------------------------------------------------------------------------
# Pure-JAX reference of the identical math (bf16 weights, f32 accumulation)
# for correctness checking of the fused kernel.
# -----------------------------------------------------------------------------
def reference_forward(graph_features, params):
    bf16, f32 = jnp.bfloat16, jnp.float32

    def mm(a, w):
        return jnp.dot(a.astype(bf16), w, preferred_element_type=f32)

    x = graph_features
    B, N, C = x.shape
    w1, b1 = params["pn1"]; w2, b2 = params["pn2"]; w3, b3 = params["pn3"]
    wg, bg = params["graph"]; wpn, bpn = params["fcpn"]
    w1g, w1p, b1h = params["fc1"]; w2h, b2h = params["fc2"]; w3h, b3h = params["fc3"]

    xf = x.reshape(B * N, C)
    h = jnp.maximum(mm(xf, w1) + b1, 0.0)
    h = jnp.maximum(mm(h, w2) + b2, 0.0)
    h = jnp.maximum(mm(h, w3) + b3, 0.0)
    pn_global = jnp.max(h.reshape(B, N, -1), axis=1)

    xm = jnp.mean(x, axis=1)
    g = jnp.maximum(mm(xm, wg) + bg, 0.0)
    pn = jnp.maximum(mm(pn_global, wpn) + bpn, 0.0)
    h1 = jnp.maximum(mm(g, w1g) + mm(pn, w1p) + b1h, 0.0)
    h2 = jnp.maximum(mm(h1, w2h) + b2h, 0.0)
    logits = (mm(h2, w3h) + b3h)[:, :NUM_CLASSES]
    return jax.nn.log_softmax(logits, axis=1)


if __name__ == "__main__":
    key = jax.random.PRNGKey(0)
    k_data, k_param = jax.random.split(key)

    B, N, C = 32, 8, 10                     # batch, points/nodes, features
    graph_features = jax.random.normal(k_data, (B, N, C), jnp.float32)

    params = make_params(k_param)
    log_probs, m3, m64 = feature_concat_forward(graph_features, params, bt=16)
    jax.block_until_ready((log_probs, m3, m64))

    assert log_probs.shape == (B, NUM_CLASSES)
    assert m3.shape == (B, 3, 3) and m64.shape == (B, 64, 64)
    # log-softmax rows must sum to 1 in probability space
    assert jnp.allclose(jnp.sum(jnp.exp(log_probs), axis=1), 1.0, atol=1e-4)
    assert jnp.all(jnp.isfinite(log_probs))

    # Cross-check against pure-JAX reference of the same (bf16, f32-acc) math.
    ref = reference_forward(graph_features, params)
    assert jnp.allclose(log_probs, ref, atol=1e-2, rtol=1e-2), (
        float(jnp.max(jnp.abs(log_probs - ref))))

    print("KERNEL_OK")
</pallas_src>

<mosaic_0001>
module attributes {stable_mosaic.version = 11 : i64} {
  func.func @fused_kernel(%arg0: i32, %arg1: memref<16x8x10xf32, #tpu.memory_space<vmem>>, %arg2: memref<10x64xbf16, #tpu.memory_space<vmem>>, %arg3: memref<1x64xf32, #tpu.memory_space<vmem>>, %arg4: memref<64x128xbf16, #tpu.memory_space<vmem>>, %arg5: memref<1x128xf32, #tpu.memory_space<vmem>>, %arg6: memref<128x1024xbf16, #tpu.memory_space<vmem>>, %arg7: memref<1x1024xf32, #tpu.memory_space<vmem>>, %arg8: memref<10x64xbf16, #tpu.memory_space<vmem>>, %arg9: memref<1x64xf32, #tpu.memory_space<vmem>>, %arg10: memref<1024x64xbf16, #tpu.memory_space<vmem>>, %arg11: memref<1x64xf32, #tpu.memory_space<vmem>>, %arg12: memref<64x64xbf16, #tpu.memory_space<vmem>>, %arg13: memref<64x64xbf16, #tpu.memory_space<vmem>>, %arg14: memref<1x64xf32, #tpu.memory_space<vmem>>, %arg15: memref<64x32xbf16, #tpu.memory_space<vmem>>, %arg16: memref<1x32xf32, #tpu.memory_space<vmem>>, %arg17: memref<32x128xbf16, #tpu.memory_space<vmem>>, %arg18: memref<1x128xf32, #tpu.memory_space<vmem>>, %arg19: memref<16x128xf32, #tpu.memory_space<vmem>>) attributes {dimension_semantics = [#tpu.dimension_semantics<parallel>], iteration_bounds = array<i64: 2>, scalar_prefetch = 0 : i64, scratch_operands = 0 : i64, tpu.core_type = #tpu.core_type<tc>, window_params = [{transform_indices = @transform_0, window_bounds = array<i64: 16, 8, 10>}, {pipeline_mode = #tpu.pipeline_mode<synchronous>, transform_indices = @transform_1, window_bounds = array<i64: 10, 64>}, {pipeline_mode = #tpu.pipeline_mode<synchronous>, transform_indices = @transform_2, window_bounds = array<i64: 1, 64>}, {pipeline_mode = #tpu.pipeline_mode<synchronous>, transform_indices = @transform_3, window_bounds = array<i64: 64, 128>}, {pipeline_mode = #tpu.pipeline_mode<synchronous>, transform_indices = @transform_4, window_bounds = array<i64: 1, 128>}, {pipeline_mode = #tpu.pipeline_mode<synchronous>, transform_indices = @transform_5, window_bounds = array<i64: 128, 1024>}, {pipeline_mode = #tpu.pipeline_mode<synchronous>, transform_indices = @transform_6, window_bounds = array<i64: 1, 1024>}, {pipeline_mode = #tpu.pipeline_mode<synchronous>, transform_indices = @transform_7, window_bounds = array<i64: 10, 64>}, {pipeline_mode = #tpu.pipeline_mode<synchronous>, transform_indices = @transform_8, window_bounds = array<i64: 1, 64>}, {pipeline_mode = #tpu.pipeline_mode<synchronous>, transform_indices = @transform_9, window_bounds = array<i64: 1024, 64>}, {pipeline_mode = #tpu.pipeline_mode<synchronous>, transform_indices = @transform_10, window_bounds = array<i64: 1, 64>}, {pipeline_mode = #tpu.pipeline_mode<synchronous>, transform_indices = @transform_11, window_bounds = array<i64: 64, 64>}, {pipeline_mode = #tpu.pipeline_mode<synchronous>, transform_indices = @transform_12, window_bounds = array<i64: 64, 64>}, {pipeline_mode = #tpu.pipeline_mode<synchronous>, transform_indices = @transform_13, window_bounds = array<i64: 1, 64>}, {pipeline_mode = #tpu.pipeline_mode<synchronous>, transform_indices = @transform_14, window_bounds = array<i64: 64, 32>}, {pipeline_mode = #tpu.pipeline_mode<synchronous>, transform_indices = @transform_15, window_bounds = array<i64: 1, 32>}, {pipeline_mode = #tpu.pipeline_mode<synchronous>, transform_indices = @transform_16, window_bounds = array<i64: 32, 128>}, {pipeline_mode = #tpu.pipeline_mode<synchronous>, transform_indices = @transform_17, window_bounds = array<i64: 1, 128>}, {transform_indices = @transform_18, window_bounds = array<i64: 16, 128>}]} {
    %c0 = arith.constant 0 : index
    %c0_0 = arith.constant 0 : index
    %c0_1 = arith.constant 0 : index
    %0 = vector.load %arg1[%c0, %c0_0, %c0_1] : memref<16x8x10xf32, #tpu.memory_space<vmem>>, vector<16x8x10xf32>
    %1 = vector.shape_cast %0 : vector<16x8x10xf32> to vector<128x10xf32>
    %2 = arith.truncf %1 : vector<128x10xf32> to vector<128x10xbf16>
    %c0_2 = arith.constant 0 : index
    %c0_3 = arith.constant 0 : index
    %3 = vector.load %arg2[%c0_2, %c0_3] : memref<10x64xbf16, #tpu.memory_space<vmem>>, vector<10x64xbf16>
    %cst = arith.constant dense<0.000000e+00> : vector<128x64xf32>
    %4 = tpu.matmul %2, %3, %cst {dimension_numbers = #tpu.dot_dimension_numbers<[1], [0], [0], [1], [0, 0, 1, 1], [], []>} : vector<128x10xbf16>, vector<10x64xbf16>, vector<128x64xf32> -> vector<128x64xf32>
    %c0_4 = arith.constant 0 : index
    %c0_5 = arith.constant 0 : index
    %5 = vector.load %arg3[%c0_4, %c0_5] : memref<1x64xf32, #tpu.memory_space<vmem>>, vector<1x64xf32>
    %6 = vector.broadcast %5 : vector<1x64xf32> to vector<128x64xf32>
    %7 = arith.addf %4, %6 : vector<128x64xf32>
    %cst_6 = arith.constant 0.000000e+00 : f32
    %8 = vector.broadcast %cst_6 : f32 to vector<128x64xf32>
    %9 = arith.maximumf %7, %8 : vector<128x64xf32>
    %10 = arith.truncf %9 : vector<128x64xf32> to vector<128x64xbf16>
    %c0_7 = arith.constant 0 : index
    %c0_8 = arith.constant 0 : index
    %11 = vector.load %arg4[%c0_7, %c0_8] : memref<64x128xbf16, #tpu.memory_space<vmem>>, vector<64x128xbf16>
    %cst_9 = arith.constant dense<0.000000e+00> : vector<128x128xf32>
    %12 = tpu.matmul %10, %11, %cst_9 {dimension_numbers = #tpu.dot_dimension_numbers<[1], [0], [0], [1], [0, 0, 1, 1], [], []>} : vector<128x64xbf16>, vector<64x128xbf16>, vector<128x128xf32> -> vector<128x128xf32>
    %c0_10 = arith.constant 0 : index
    %c0_11 = arith.constant 0 : index
    %13 = vector.load %arg5[%c0_10, %c0_11] : memref<1x128xf32, #tpu.memory_space<vmem>>, vector<1x128xf32>
    %14 = vector.broadcast %13 : vector<1x128xf32> to vector<128x128xf32>
    %15 = arith.addf %12, %14 : vector<128x128xf32>
    %cst_12 = arith.constant 0.000000e+00 : f32
    %16 = vector.broadcast %cst_12 : f32 to vector<128x128xf32>
    %17 = arith.maximumf %15, %16 : vector<128x128xf32>
    %18 = arith.truncf %17 : vector<128x128xf32> to vector<128x128xbf16>
    %c0_13 = arith.constant 0 : index
    %c0_14 = arith.constant 0 : index
    %19 = vector.load %arg6[%c0_13, %c0_14] : memref<128x1024xbf16, #tpu.memory_space<vmem>>, vector<128x1024xbf16>
    %cst_15 = arith.constant dense<0.000000e+00> : vector<128x1024xf32>
    %20 = tpu.matmul %18, %19, %cst_15 {dimension_numbers = #tpu.dot_dimension_numbers<[1], [0], [0], [1], [0, 0, 1, 1], [], []>} : vector<128x128xbf16>, vector<128x1024xbf16>, vector<128x1024xf32> -> vector<128x1024xf32>
    %c0_16 = arith.constant 0 : index
    %c0_17 = arith.constant 0 : index
    %21 = vector.load %arg7[%c0_16, %c0_17] : memref<1x1024xf32, #tpu.memory_space<vmem>>, vector<1x1024xf32>
    %22 = vector.broadcast %21 : vector<1x1024xf32> to vector<128x1024xf32>
    %23 = arith.addf %20, %22 : vector<128x1024xf32>
    %cst_18 = arith.constant 0.000000e+00 : f32
    %24 = vector.broadcast %cst_18 : f32 to vector<128x1024xf32>
    %25 = arith.maximumf %23, %24 : vector<128x1024xf32>
    %26 = vector.shape_cast %25 : vector<128x1024xf32> to vector<16x8x1024xf32>
    %cst_19 = arith.constant dense<0xFF800000> : vector<16x1024xf32>
    %27 = vector.multi_reduction <maximumf>, %26, %cst_19 [1] : vector<16x8x1024xf32> to vector<16x1024xf32>
    %cst_20 = arith.constant dense<0.000000e+00> : vector<16x10xf32>
    %28 = vector.multi_reduction <add>, %0, %cst_20 [1] : vector<16x8x10xf32> to vector<16x10xf32>
    %cst_21 = arith.constant 8.000000e+00 : f32
    %29 = vector.broadcast %cst_21 : f32 to vector<16x10xf32>
    %30 = arith.divf %28, %29 : vector<16x10xf32>
    %31 = arith.truncf %30 : vector<16x10xf32> to vector<16x10xbf16>
    %c0_22 = arith.constant 0 : index
    %c0_23 = arith.constant 0 : index
    %32 = vector.load %arg8[%c0_22, %c0_23] : memref<10x64xbf16, #tpu.memory_space<vmem>>, vector<10x64xbf16>
    %cst_24 = arith.constant dense<0.000000e+00> : vector<16x64xf32>
    %33 = tpu.matmul %31, %32, %cst_24 {dimension_numbers = #tpu.dot_dimension_numbers<[1], [0], [0], [1], [0, 0, 1, 1], [], []>} : vector<16x10xbf16>, vector<10x64xbf16>, vector<16x64xf32> -> vector<16x64xf32>
    %c0_25 = arith.constant 0 : index
    %c0_26 = arith.constant 0 : index
    %34 = vector.load %arg9[%c0_25, %c0_26] : memref<1x64xf32, #tpu.memory_space<vmem>>, vector<1x64xf32>
    %35 = vector.broadcast %34 : vector<1x64xf32> to vector<16x64xf32>
    %36 = arith.addf %33, %35 : vector<16x64xf32>
    %cst_27 = arith.constant 0.000000e+00 : f32
    %37 = vector.broadcast %cst_27 : f32 to vector<16x64xf32>
    %38 = arith.maximumf %36, %37 : vector<16x64xf32>
    %39 = arith.truncf %27 : vector<16x1024xf32> to vector<16x1024xbf16>
    %c0_28 = arith.constant 0 : index
    %c0_29 = arith.constant 0 : index
    %40 = vector.load %arg10[%c0_28, %c0_29] : memref<1024x64xbf16, #tpu.memory_space<vmem>>, vector<1024x64xbf16>
    %cst_30 = arith.constant dense<0.000000e+00> : vector<16x64xf32>
    %41 = tpu.matmul %39, %40, %cst_30 {dimension_numbers = #tpu.dot_dimension_numbers<[1], [0], [0], [1], [0, 0, 1, 1], [], []>} : vector<16x1024xbf16>, vector<1024x64xbf16>, vector<16x64xf32> -> vector<16x64xf32>
    %c0_31 = arith.constant 0 : index
    %c0_32 = arith.constant 0 : index
    %42 = vector.load %arg11[%c0_31, %c0_32] : memref<1x64xf32, #tpu.memory_space<vmem>>, vector<1x64xf32>
    %43 = vector.broadcast %42 : vector<1x64xf32> to vector<16x64xf32>
    %44 = arith.addf %41, %43 : vector<16x64xf32>
    %cst_33 = arith.constant 0.000000e+00 : f32
    %45 = vector.broadcast %cst_33 : f32 to vector<16x64xf32>
    %46 = arith.maximumf %44, %45 : vector<16x64xf32>
    %47 = arith.truncf %38 : vector<16x64xf32> to vector<16x64xbf16>
    %c0_34 = arith.constant 0 : index
    %c0_35 = arith.constant 0 : index
    %48 = vector.load %arg12[%c0_34, %c0_35] : memref<64x64xbf16, #tpu.memory_space<vmem>>, vector<64x64xbf16>
    %cst_36 = arith.constant dense<0.000000e+00> : vector<16x64xf32>
    %49 = tpu.matmul %47, %48, %cst_36 {dimension_numbers = #tpu.dot_dimension_numbers<[1], [0], [0], [1], [0, 0, 1, 1], [], []>} : vector<16x64xbf16>, vector<64x64xbf16>, vector<16x64xf32> -> vector<16x64xf32>
    %50 = arith.truncf %46 : vector<16x64xf32> to vector<16x64xbf16>
    %c0_37 = arith.constant 0 : index
    %c0_38 = arith.constant 0 : index
    %51 = vector.load %arg13[%c0_37, %c0_38] : memref<64x64xbf16, #tpu.memory_space<vmem>>, vector<64x64xbf16>
    %cst_39 = arith.constant dense<0.000000e+00> : vector<16x64xf32>
    %52 = tpu.matmul %50, %51, %cst_39 {dimension_numbers = #tpu.dot_dimension_numbers<[1], [0], [0], [1], [0, 0, 1, 1], [], []>} : vector<16x64xbf16>, vector<64x64xbf16>, vector<16x64xf32> -> vector<16x64xf32>
    %53 = arith.addf %49, %52 : vector<16x64xf32>
    %c0_40 = arith.constant 0 : index
    %c0_41 = arith.constant 0 : index
    %54 = vector.load %arg14[%c0_40, %c0_41] : memref<1x64xf32, #tpu.memory_space<vmem>>, vector<1x64xf32>
    %55 = vector.broadcast %54 : vector<1x64xf32> to vector<16x64xf32>
    %56 = arith.addf %53, %55 : vector<16x64xf32>
    %cst_42 = arith.constant 0.000000e+00 : f32
    %57 = vector.broadcast %cst_42 : f32 to vector<16x64xf32>
    %58 = arith.maximumf %56, %57 : vector<16x64xf32>
    %59 = arith.truncf %58 : vector<16x64xf32> to vector<16x64xbf16>
    %c0_43 = arith.constant 0 : index
    %c0_44 = arith.constant 0 : index
    %60 = vector.load %arg15[%c0_43, %c0_44] : memref<64x32xbf16, #tpu.memory_space<vmem>>, vector<64x32xbf16>
    %cst_45 = arith.constant dense<0.000000e+00> : vector<16x32xf32>
    %61 = tpu.matmul %59, %60, %cst_45 {dimension_numbers = #tpu.dot_dimension_numbers<[1], [0], [0], [1], [0, 0, 1, 1], [], []>} : vector<16x64xbf16>, vector<64x32xbf16>, vector<16x32xf32> -> vector<16x32xf32>
    %c0_46 = arith.constant 0 : index
    %c0_47 = arith.constant 0 : index
    %62 = vector.load %arg16[%c0_46, %c0_47] : memref<1x32xf32, #tpu.memory_space<vmem>>, vector<1x32xf32>
    %63 = vector.broadcast %62 : vector<1x32xf32> to vector<16x32xf32>
    %64 = arith.addf %61, %63 : vector<16x32xf32>
    %cst_48 = arith.constant 0.000000e+00 : f32
    %65 = vector.broadcast %cst_48 : f32 to vector<16x32xf32>
    %66 = arith.maximumf %64, %65 : vector<16x32xf32>
    %67 = arith.truncf %66 : vector<16x32xf32> to vector<16x32xbf16>
    %c0_49 = arith.constant 0 : index
    %c0_50 = arith.constant 0 : index
    %68 = vector.load %arg17[%c0_49, %c0_50] : memref<32x128xbf16, #tpu.memory_space<vmem>>, vector<32x128xbf16>
    %cst_51 = arith.constant dense<0.000000e+00> : vector<16x128xf32>
    %69 = tpu.matmul %67, %68, %cst_51 {dimension_numbers = #tpu.dot_dimension_numbers<[1], [0], [0], [1], [0, 0, 1, 1], [], []>} : vector<16x32xbf16>, vector<32x128xbf16>, vector<16x128xf32> -> vector<16x128xf32>
    %c0_52 = arith.constant 0 : index
    %c0_53 = arith.constant 0 : index
    %70 = vector.load %arg18[%c0_52, %c0_53] : memref<1x128xf32, #tpu.memory_space<vmem>>, vector<1x128xf32>
    %71 = vector.broadcast %70 : vector<1x128xf32> to vector<16x128xf32>
    %72 = arith.addf %69, %71 : vector<16x128xf32>
    %cst_54 = arith.constant dense<0xFF800000> : vector<16xf32>
    %73 = vector.multi_reduction <maximumf>, %72, %cst_54 [1] : vector<16x128xf32> to vector<16xf32>
    %74 = vector.shape_cast %73 : vector<16xf32> to vector<16x1xf32>
    %75 = vector.broadcast %74 : vector<16x1xf32> to vector<16x128xf32>
    %76 = arith.subf %72, %75 : vector<16x128xf32>
    %77 = math.exp %76 : vector<16x128xf32>
    %cst_55 = arith.constant dense<0.000000e+00> : vector<16xf32>
    %78 = vector.multi_reduction <add>, %77, %cst_55 [1] : vector<16x128xf32> to vector<16xf32>
    %79 = vector.shape_cast %78 : vector<16xf32> to vector<16x1xf32>
    %80 = math.log %79 : vector<16x1xf32>
    %81 = arith.addf %74, %80 : vector<16x1xf32>
    %82 = vector.broadcast %81 : vector<16x1xf32> to vector<16x128xf32>
    %83 = arith.subf %72, %82 : vector<16x128xf32>
    %c0_56 = arith.constant 0 : index
    %c0_57 = arith.constant 0 : index
    %84 = vector.load %arg19[%c0_56, %c0_57] : memref<16x128xf32, #tpu.memory_space<vmem>>, vector<16x128xf32>
    tpu.vector_store %arg19[%c0_56, %c0_57], %83 {strides = array<i32>} : memref<16x128xf32, #tpu.memory_space<vmem>>, vector<16x128xf32>,
    return
  }
  func.func @transform_0(%arg0: i32) -> (i32, i32, i32) {
    %c0_i32 = arith.constant 0 : i32
    %c0_i32_0 = arith.constant 0 : i32
    %c0_i32_1 = arith.constant 0 : i32
    return %arg0, %c0_i32, %c0_i32_0 : i32, i32, i32
  }
  func.func @transform_1(%arg0: i32) -> (i32, i32) {
    %c0_i32 = arith.constant 0 : i32
    %c0_i32_0 = arith.constant 0 : i32
    %c0_i32_1 = arith.constant 0 : i32
    return %c0_i32, %c0_i32_0 : i32, i32
  }
  func.func @transform_2(%arg0: i32) -> (i32, i32) {
    %c0_i32 = arith.constant 0 : i32
    %c0_i32_0 = arith.constant 0 : i32
    %c0_i32_1 = arith.constant 0 : i32
    return %c0_i32, %c0_i32_0 : i32, i32
  }
  func.func @transform_3(%arg0: i32) -> (i32, i32) {
    %c0_i32 = arith.constant 0 : i32
    %c0_i32_0 = arith.constant 0 : i32
    %c0_i32_1 = arith.constant 0 : i32
    return %c0_i32, %c0_i32_0 : i32, i32
  }
  func.func @transform_4(%arg0: i32) -> (i32, i32) {
    %c0_i32 = arith.constant 0 : i32
    %c0_i32_0 = arith.constant 0 : i32
    %c0_i32_1 = arith.constant 0 : i32
    return %c0_i32, %c0_i32_0 : i32, i32
  }
  func.func @transform_5(%arg0: i32) -> (i32, i32) {
    %c0_i32 = arith.constant 0 : i32
    %c0_i32_0 = arith.constant 0 : i32
    %c0_i32_1 = arith.constant 0 : i32
    return %c0_i32, %c0_i32_0 : i32, i32
  }
  func.func @transform_6(%arg0: i32) -> (i32, i32) {
    %c0_i32 = arith.constant 0 : i32
    %c0_i32_0 = arith.constant 0 : i32
    %c0_i32_1 = arith.constant 0 : i32
    return %c0_i32, %c0_i32_0 : i32, i32
  }
  func.func @transform_7(%arg0: i32) -> (i32, i32) {
    %c0_i32 = arith.constant 0 : i32
    %c0_i32_0 = arith.constant 0 : i32
    %c0_i32_1 = arith.constant 0 : i32
    return %c0_i32, %c0_i32_0 : i32, i32
  }
  func.func @transform_8(%arg0: i32) -> (i32, i32) {
    %c0_i32 = arith.constant 0 : i32
    %c0_i32_0 = arith.constant 0 : i32
    %c0_i32_1 = arith.constant 0 : i32
    return %c0_i32, %c0_i32_0 : i32, i32
  }
  func.func @transform_9(%arg0: i32) -> (i32, i32) {
    %c0_i32 = arith.constant 0 : i32
    %c0_i32_0 = arith.constant 0 : i32
    %c0_i32_1 = arith.constant 0 : i32
    return %c0_i32, %c0_i32_0 : i32, i32
  }
  func.func @transform_10(%arg0: i32) -> (i32, i32) {
    %c0_i32 = arith.constant 0 : i32
    %c0_i32_0 = arith.constant 0 : i32
    %c0_i32_1 = arith.constant 0 : i32
    return %c0_i32, %c0_i32_0 : i32, i32
  }
  func.func @transform_11(%arg0: i32) -> (i32, i32) {
    %c0_i32 = arith.constant 0 : i32
    %c0_i32_0 = arith.constant 0 : i32
    %c0_i32_1 = arith.constant 0 : i32
    return %c0_i32, %c0_i32_0 : i32, i32
  }
  func.func @transform_12(%arg0: i32) -> (i32, i32) {
    %c0_i32 = arith.constant 0 : i32
    %c0_i32_0 = arith.constant 0 : i32
    %c0_i32_1 = arith.constant 0 : i32
    return %c0_i32, %c0_i32_0 : i32, i32
  }
  func.func @transform_13(%arg0: i32) -> (i32, i32) {
    %c0_i32 = arith.constant 0 : i32
    %c0_i32_0 = arith.constant 0 : i32
    %c0_i32_1 = arith.constant 0 : i32
    return %c0_i32, %c0_i32_0 : i32, i32
  }
  func.func @transform_14(%arg0: i32) -> (i32, i32) {
    %c0_i32 = arith.constant 0 : i32
    %c0_i32_0 = arith.constant 0 : i32
    %c0_i32_1 = arith.constant 0 : i32
    return %c0_i32, %c0_i32_0 : i32, i32
  }
  func.func @transform_15(%arg0: i32) -> (i32, i32) {
    %c0_i32 = arith.constant 0 : i32
    %c0_i32_0 = arith.constant 0 : i32
    %c0_i32_1 = arith.constant 0 : i32
    return %c0_i32, %c0_i32_0 : i32, i32
  }
  func.func @transform_16(%arg0: i32) -> (i32, i32) {
    %c0_i32 = arith.constant 0 : i32
    %c0_i32_0 = arith.constant 0 : i32
    %c0_i32_1 = arith.constant 0 : i32
    return %c0_i32, %c0_i32_0 : i32, i32
  }
  func.func @transform_17(%arg0: i32) -> (i32, i32) {
    %c0_i32 = arith.constant 0 : i32
    %c0_i32_0 = arith.constant 0 : i32
    %c0_i32_1 = arith.constant 0 : i32
    return %c0_i32, %c0_i32_0 : i32, i32
  }
  func.func @transform_18(%arg0: i32) -> (i32, i32) {
    %c0_i32 = arith.constant 0 : i32
    %c0_i32_0 = arith.constant 0 : i32
    return %arg0, %c0_i32 : i32, i32
  }
}

</mosaic_0001>

<bundles_post_ra>
// kernel: tpu_custom_call.1
= control target key start
LH: loop header
LB: loop body
LE: loop exit
PB: predicated region body
PF: predicated region fallthrough
CT: control target
= control target key end

     0   :  { %s6977_s0 = inlined_call_operand.vmem [shape: f32[32,8,10], index: 0, kind: input, shape index: {}]   ;;  %s6978_s1 = inlined_call_operand.vmem [shape: bf16[10,64], index: 1, kind: input, shape index: {}]   ;;  %s6979_s2 = inlined_call_operand.vmem [shape: f32[1,64], index: 2, kind: input, shape index: {}]   ;;  %s6980_s3 = inlined_call_operand.vmem [shape: bf16[64,128], index: 3, kind: input, shape index: {}]   ;;  %s6981_s4 = inlined_call_operand.vmem [shape: f32[1,128], index: 4, kind: input, shape index: {}]   ;;  %s6982_s5 = inlined_call_operand.vmem [shape: bf16[128,1024], index: 5, kind: input, shape index: {}]   ;;  %s6983_s6 = inlined_call_operand.vmem [shape: f32[1,1024], index: 6, kind: input, shape index: {}]   ;;  %s6984_s7 = inlined_call_operand.vmem [shape: bf16[10,64], index: 7, kind: input, shape index: {}]   ;;  %s6985_s8 = inlined_call_operand.vmem [shape: f32[1,64], index: 8, kind: input, shape index: {}]   ;;  %s6986_s9 = inlined_call_operand.vmem [shape: bf16[1024,64], index: 9, kind: input, shape index: {}]   ;;  %s6987_s10 = inlined_call_operand.vmem [shape: f32[1,64], index: 10, kind: input, shape index: {}]   ;;  %s6988_s11 = inlined_call_operand.vmem [shape: bf16[64,64], index: 11, kind: input, shape index: {}]   ;;  %s6989_s12 = inlined_call_operand.vmem [shape: bf16[64,64], index: 12, kind: input, shape index: {}]   ;;  %s6990_s13 = inlined_call_operand.vmem [shape: f32[1,64], index: 13, kind: input, shape index: {}]   ;;  %s6991_s14 = inlined_call_operand.vmem [shape: bf16[64,32], index: 14, kind: input, shape index: {}]   ;;  %s6992_s15 = inlined_call_operand.vmem [shape: f32[1,32], index: 15, kind: input, shape index: {}]   ;;  %s6993_s16 = inlined_call_operand.vmem [shape: bf16[32,128], index: 16, kind: input, shape index: {}]   ;;  %s6994_s17 = inlined_call_operand.vmem [shape: f32[1,128], index: 17, kind: input, shape index: {}]   ;;  %s6995_s18 = inlined_call_operand.hbm [shape: f32[32,128], index: 18, kind: output, shape index: {}]  }
   0x1   :  { %7005 = sst [smem:[#allocation65_spill]] %s6977_s0 }
   0x2   :  { %7006 = sst [smem:[#allocation66_spill]] %s6978_s1 }
   0x3   :  { %7007 = sst [smem:[#allocation67_spill]] %s6979_s2 }
   0x4   :  { %23 = vsyncpa [#allocation3], 0 }
   0x5   :  { %25 = vsyncpa [#allocation3 + $0x1], 0  ;;  %s5319_s27 = smov 0   ;;  %s5321_s28 = smov 0  }
   0x6   :  { %s5323_s29 = smov 0   ;;  %s5325_s30 = smov 0  }
   0x7 LB: > { %7008 = sst [smem:[#allocation5_spill]] %s5204_s27  ;;  %s5340_s0 = sadd.s32 4294967295, %s5216_s30   ;;  %s5216_s30 = sphi %s5325_s30, %s7188_s30   ;;  %s5212_s29 = sphi %s5323_s29, %s7190_s29   ;;  %s5208_s28 = sphi %s5321_s28, %s7192_s28   ;;  %s5204_s27 = sphi %s5319_s27, %s7191_s27  }
   0x8   : > { %7009 = sst [smem:[#allocation6_spill]] %s5212_s29  ;;  %s4604_s19 = sadd.s32 4294967294, %s5216_s30  }
   0x9   : > { %s5344_s1 = sadd.s32 1, %s5216_s30   ;;  %s421_s20 = sadd.s32 1, %s5212_s29 }
   0xa   : > { %7010 = sst [smem:[#allocation7_spill]] %s5344_s1  ;;  %s418_s21 = ssub.s32 %s5216_s30, %s5344_s1 }
   0xb   : > { %p431_p0 = scmp.ne.s32.totalorder %s5212_s29, %s5208_s28  ;;  %p419_p1 = scmp.eq.s32.totalorder %s418_s21, 0 }
   0xc   : > { %p432_p2 = scmp.eq.s32.totalorder %s5340_s0, 1  ;;  %p437_p3 = scmp.ne.s32.totalorder %s5208_s28, %s5204_s27 }
   0xd   : > { %p438_p4 = scmp.eq.s32.totalorder %s4604_s19, 1  ;;  %p4607_p7 = scmp.ge.s32.totalorder %s5216_s30, 1 }
   0xe   : > { %s5355_s22 = scalar_select %p419_p1, %s5212_s29, %s421_s20  }
   0xf   : > { %p5357_p5 = por %p432_p2, %p431_p0  ;;  %p5361_p6 = por %p438_p4, %p437_p3 }
  0x10   : > { %7011 = sst [smem:[#allocation8_spill]] %s5355_s22  ;;  %p516_p8 = scmp.lt.s32.totalorder %s5216_s30, 3 }
  0x11   : > { %s7013_s23 = scalar_select %p5361_p6, 1, 0 }
  0x12   : > { %p517_p9 = pnand %p4607_p7, %p516_p8 }
  0x13   : > { %7014 = sst [smem:[#allocation9_spill]] %s7013_s23 }
  0x14   : > { %520 = sbr.rel (%p517_p9) target bundleno = 2282 (0x8ea), region = 92 }
  0x1b   : > { %s7015_s26 = sld [smem:[#allocation66_spill]]  ;;  %vm641_vm0 = vcmask 1044480   ;;  %s4609_s19 = sshll.u32 %s5340_s0, 4  ;;  %v5060_v1 = vld [vmem:[%s6980_s3] sm:$0xff]   ;;  %v5061_v3 = vld [vmem:[%s6980_s3 + $0x8] sm:$0xff]   ;;  %vm616_vm1 = vcmask 80896  }
  0x1c   : > { %p571_p10 = scmp.lt.s32.totalorder %s4609_s19, 31  ;;  %4940 = vmatprep.subr.bf16.mxu1 %v5060_v1  ;;  %s7016_s1 = sld [smem:[#allocation65_spill]]  ;;  %vm2911_vm2 = vcmask 1041409   ;;  %vm2913_vm3 = vcmask 1042434   ;;  %vm2915_vm4 = vcmask 1043459   ;;  %vm2917_vm5 = vcmask 1044484  }
  0x1d   : > { %4941 = vmatpush3.bf16.msra.mxu1 %v5060_v1  ;;  %vm2919_vm6 = vcmask 1045509   ;;  %vm2921_vm7 = vcmask 1046534   ;;  %s7019_s21 = sld [smem:[#allocation67_spill]]  ;;  %vm805_vm8 = vcmask 523264   ;;  %vm2923_vm9 = vcmask 1047559  }
  0x1e   : > { %s7194_s19 = smov (!%p571_p10, %s4609_s19), 31  ;;  %4942 = vmatprep.subr.bf16.mxu1 %v5061_v3  ;;  %vm5220_vm10 = vmmov 0   ;;  %vm4459_vm11 = vcmask 261120  }
  0x1f   : > { %s4610_s24 = sshll.u32 %s7194_s19, 3  ;;  %s567_s19 = sand.u32 1, %s5208_s28  }
  0x20   : > { %s6936_s29 = scalar_lea.sflag [#allocation3], %s567_s19 }
  0x21   : > { %v5059_v0 = vld [vmem:[%s7015_s26] sm:$0x1f]   ;;  %4943 = vmatpush3.bf16.msra.mxu1 %v5061_v3 }
  0x22   : > { %5014 = vmatprep.subr.msk.bf16.mxu0 %vm641_vm0, %v5059_v0  ;;  %v643_v2 = vsel %vm641_vm0, %v5059_v0, 0  ;;  %s5382_s20 = scalar_lea.vmem %s7016_s1, %s4610_s24  ;;  %s4792_s24 = sshll.u32 %s5340_s0, 8 }
  0x23   : > { %4923 = vmatpush3.bf16.msra.mxu0 %v643_v2  ;;  %v578_v4 = vld [vmem:[%s5382_s20] sm:$0xff]  ;;  %v579_v5 = vld [vmem:[%s5382_s20 + $0x8] sm:$0xff]  ;;  %v580_v6 = vld [vmem:[%s5382_s20 + $0x10] sm:$0xff]  ;;  %s6932_s26 = scalar_lea.hbm %s6995_s18, %s4792_s24  ;;  %s5221_s0 = smov [#allocation2]  }
  0x24   : > { %v594_v7 = vpack.c.bf16 %v579_v5, %v578_v4  ;;  %v2725_v8 = vsel %vm616_vm1, %v578_v4, 0.0  ;;  %v2732_v9 = vsel %vm616_vm1, %v579_v5, 0.0  ;;  %v581_v10 = vld [vmem:[%s5382_s20 + $0x18] sm:$0xff]  ;;  %v2739_v11 = vsel %vm616_vm1, %v580_v6, 0.0  ;;  %v582_v12 = vld [vmem:[%s5382_s20 + $0x20] sm:$0xff]  ;;  %v583_v13 = vld [vmem:[%s5382_s20 + $0x28] sm:$0xff] }
  0x25   : > { %v2726_v14 = vrot.slane %v2725_v8, 4  ;;  %v2733_v15 = vrot.slane %v2732_v9, 4  ;;  %v595_v16 = vpack.c.bf16 %v581_v10, %v580_v6  ;;  %v2740_v17 = vrot.slane %v2739_v11, 4  ;;  %v584_v26 = vld [vmem:[%s5382_s20 + $0x30] sm:$0xff]  ;;  %v585_v27 = vld [vmem:[%s5382_s20 + $0x38] sm:$0xff]  ;;  %s5158_s22 = sshll.u32 %s5221_s0, 4  ;;  %s5159_s22 = int_to_ptr.vmem [resolvable:$false] %s5158_s22 }
  0x26   : > { %4924 = vmatprep.mubr.msk.bf16.mxu0 %vm616_vm1, %v594_v7  ;;  %v2746_v18 = vsel %vm616_vm1, %v581_v10, 0.0  ;;  %v596_v19 = vpack.c.bf16 %v583_v13, %v582_v12  ;;  %v2753_v20 = vsel %vm616_vm1, %v582_v12, 0.0  ;;  %v2760_v21 = vsel %vm616_vm1, %v583_v13, 0.0  ;;  %v586_v10 = vld [vmem:[%s5382_s20 + $0x40] sm:$0xff] }
  0x27   : > { %v2727_v22 = vadd.f32 %v2726_v14, %v2725_v8  ;;  %v2734_v23 = vadd.f32 %v2733_v15, %v2732_v9  ;;  %4925 = vmatmul.mubr.msk.bf16.vlgmr.msra.gmra.mrb[0].mxu0 %vm616_vm1, %v595_v16  ;;  %v2741_v24 = vadd.f32 %v2740_v17, %v2739_v11  ;;  %v2747_v25 = vrot.slane %v2746_v18, 4  ;;  %v587_v11 = vld [vmem:[%s5382_s20 + $0x48] sm:$0xff] }
  0x28   : > { %4928 = vmatprep.mubr.msk.bf16.mxu0 %vm616_vm1, %v596_v19  ;;  %v2754_v28 = vrot.slane %v2753_v20, 4  ;;  %v2761_v29 = vrot.slane %v2760_v21, 4  ;;  %v2767_v30 = vsel %vm616_vm1, %v584_v26, 0.0  ;;  %v597_v37 = vpack.c.bf16 %v585_v27, %v584_v26  ;;  %v588_v19 = vld [vmem:[%s5382_s20 + $0x50] sm:$0xff] }
  0x29   : > { %v2728_v31 = vrot.slane %v2727_v22, 2  ;;  %v2735_v32 = vrot.slane %v2734_v23, 2  ;;  %v2742_v33 = vrot.slane %v2741_v24, 2  ;;  %v2748_v34 = vadd.f32 %v2747_v25, %v2746_v18 }
  0x2a   : > { %v2755_v35 = vadd.f32 %v2754_v28, %v2753_v20  ;;  %v2762_v36 = vadd.f32 %v2761_v29, %v2760_v21  ;;  %v2768_v38 = vrot.slane %v2767_v30, 4  ;;  %v590_v28 = vld [vmem:[%s5382_s20 + $0x60] sm:$0xff] }
  0x2b   : > { %v2729_v39 = vadd.f32 %v2728_v31, %v2727_v22  ;;  %v2736_v40 = vadd.f32 %v2735_v32, %v2734_v23  ;;  %v2743_v41 = vadd.f32 %v2742_v33, %v2741_v24  ;;  %v2749_v42 = vrot.slane %v2748_v34, 2  ;;  %v589_v24 = vld [vmem:[%s5382_s20 + $0x58] sm:$0xff] }
  0x2c   : > { %v2756_v43 = vrot.slane %v2755_v35, 2  ;;  %v2763_v44 = vrot.slane %v2762_v36, 2  ;;  %v2769_v45 = vadd.f32 %v2768_v38, %v2767_v30  ;;  %v598_v22 = vpack.c.bf16 %v587_v11, %v586_v10 }
  0x2d   : > { %v2730_v46 = vrot.slane %v2729_v39, 1  ;;  %v2737_v47 = vrot.slane %v2736_v40, 1  ;;  %v2744_v48 = vrot.slane %v2743_v41, 1  ;;  %v2750_v49 = vadd.f32 %v2749_v42, %v2748_v34  ;;  %v593_v42 = vld [vmem:[%s5382_s20 + $0x78] sm:$0xff] }
  0x2e   : > { %v2757_v50 = vadd.f32 %v2756_v43, %v2755_v35  ;;  %v2764_v51 = vadd.f32 %v2763_v44, %v2762_v36  ;;  %v2770_v52 = vrot.slane %v2769_v45, 2  ;;  %v2781_v23 = vsel %vm616_vm1, %v586_v10, 0.0  ;;  %v591_v36 = vld [vmem:[%s5382_s20 + $0x68] sm:$0xff] }
  0x2f   : > { %v2731_v53 = vadd.f32 %v2730_v46, %v2729_v39  ;;  %v2738_v54 = vadd.f32 %v2737_v47, %v2736_v40  ;;  %v2745_v55 = vadd.f32 %v2744_v48, %v2743_v41  ;;  %v2751_v56 = vrot.slane %v2750_v49, 1  ;;  %4929 = vmatmul.mubr.msk.bf16.gmra.mrb[4].mxu0 %vm616_vm1, %v597_v37  ;;  %v592_v41 = vld [vmem:[%s5382_s20 + $0x70] sm:$0xff] }
  0x30   : > { %v2758_v57 = vrot.slane %v2757_v50, 1  ;;  %v2765_v58 = vrot.slane %v2764_v51, 1  ;;  %v2771_v59 = vadd.f32 %v2770_v52, %v2769_v45  ;;  %4932 = vmatprep.mubr.msk.bf16.mxu0 %vm616_vm1, %v598_v22  ;;  %v2782_v31 = vrot.slane %v2781_v23, 4 }
  0x31   : > { %v2838_v60 = vmul.f32 0.125, %v2731_v53  ;;  %v2839_v61 = vmul.f32 0.125, %v2738_v54  ;;  %v2752_v62 = vadd.f32 %v2751_v56, %v2750_v49  ;;  %v2840_v63 = vmul.f32 0.125, %v2745_v55 }
  0x32   : > { %v2759_v0 = vadd.f32 %v2758_v57, %v2757_v50  ;;  %v2766_v1 = vadd.f32 %v2765_v58, %v2764_v51  ;;  %v2772_v2 = vrot.slane %v2771_v59, 1  ;;  %v2788_v32 = vsel %vm616_vm1, %v587_v11, 0.0 }
  0x33   : > { %v2854_v3 = vpack.c.bf16 %v2838_v60, %v2838_v60  ;;  %v2855_v4 = vpack.c.bf16 %v2839_v61, %v2839_v61  ;;  %v2841_v5 = vmul.f32 0.125, %v2752_v62  ;;  %v2856_v6 = vpack.c.bf16 %v2840_v63, %v2840_v63 }
  0x34   : > { %v2842_v7 = vmul.f32 0.125, %v2759_v0  ;;  %v2843_v8 = vmul.f32 0.125, %v2766_v1  ;;  %v2773_v9 = vadd.f32 %v2772_v2, %v2771_v59  ;;  %v2789_v34 = vrot.slane %v2788_v32, 4 }
  0x35   : > { %v2895_v12 = vunpack.c.l.b16 %v2854_v3  ;;  %v2896_v13 = vunpack.c.l.b16 %v2855_v4  ;;  %v2857_v14 = vpack.c.bf16 %v2841_v5, %v2841_v5  ;;  %v2897_v15 = vunpack.c.l.b16 %v2856_v6 }
  0x36   : > { %v2858_v16 = vpack.c.bf16 %v2842_v7, %v2842_v7  ;;  %v2859_v17 = vpack.c.bf16 %v2843_v8, %v2843_v8  ;;  %v2844_v18 = vmul.f32 0.125, %v2773_v9  ;;  %v599_v35 = vpack.c.bf16 %v589_v24, %v588_v19 }
  0x37   : > { %v2912_v20 = vsel %vm2911_vm2, %v2896_v13, %v2895_v12  ;;  %v2898_v21 = vunpack.c.l.b16 %v2857_v14  ;;  %v2783_v39 = vadd.f32 %v2782_v31, %v2781_v23  ;;  %v2795_v40 = vsel %vm616_vm1, %v588_v19, 0.0 }
  0x38   : > { %v2914_v25 = vsel %vm2913_vm3, %v2897_v15, %v2912_v20  ;;  %v2899_v26 = vunpack.c.l.b16 %v2858_v16  ;;  %v2900_v27 = vunpack.c.l.b16 %v2859_v17  ;;  %v2860_v30 = vpack.c.bf16 %v2844_v18, %v2844_v18  ;;  %4933 = vmatmul.mubr.msk.bf16.gmra.mrb[8].mxu0 %vm616_vm1, %v599_v35 }
  0x39   : > { %v2916_v29 = vsel %vm2915_vm4, %v2898_v21, %v2914_v25  ;;  %v2790_v43 = vadd.f32 %v2789_v34, %v2788_v32  ;;  %v2796_v44 = vrot.slane %v2795_v40, 4  ;;  %v2802_v45 = vsel %vm616_vm1, %v589_v24, 0.0 }
  0x3a   : > { %v2918_v33 = vsel %vm2917_vm5, %v2899_v26, %v2916_v29  ;;  %v2901_v38 = vunpack.c.l.b16 %v2860_v30  ;;  %v2784_v47 = vrot.slane %v2783_v39, 2  ;;  %v2803_v48 = vrot.slane %v2802_v45, 4 }
  0x3b   : > { %v2920_v37 = vsel %vm2919_vm6, %v2900_v27, %v2918_v33  ;;  %v600_v49 = vpack.c.bf16 %v591_v36, %v590_v28  ;;  %v2791_v50 = vrot.slane %v2790_v43, 2  ;;  %v2797_v51 = vadd.f32 %v2796_v44, %v2795_v40 }
  0x3c   : > { %v5423_v46 = vsel %vm2921_vm7, %v2901_v38, %v2920_v37  ;;  %v2809_v52 = vsel %vm616_vm1, %v590_v28, 0.0  ;;  %v2816_v53 = vsel %vm616_vm1, %v591_v36, 0.0  ;;  %v2785_v54 = vadd.f32 %v2784_v47, %v2783_v39 }
  0x3d   : > { %7017 = vst [vmem:[#allocation10_spill] sm:$0xff] %v5423_v46  ;;  %v2804_v55 = vadd.f32 %v2803_v48, %v2802_v45  ;;  %4936 = vmatprep.mubr.msk.bf16.mxu0 %vm616_vm1, %v600_v49  ;;  %v2810_v56 = vrot.slane %v2809_v52, 4  ;;  %v2817_v57 = vrot.slane %v2816_v53, 4  ;;  %v2792_v58 = vadd.f32 %v2791_v50, %v2790_v43 }
  0x3e   : > { %v2798_v59 = vrot.slane %v2797_v51, 2  ;;  %v601_v60 = vpack.c.bf16 %v593_v42, %v592_v41  ;;  %v2823_v61 = vsel %vm616_vm1, %v592_v41, 0.0  ;;  %v2786_v62 = vrot.slane %v2785_v54, 1 }
  0x3f   : > { %v2805_v63 = vrot.slane %v2804_v55, 2  ;;  %v2811_v0 = vadd.f32 %v2810_v56, %v2809_v52  ;;  %v2818_v1 = vadd.f32 %v2817_v57, %v2816_v53  ;;  %v2793_v2 = vrot.slane %v2792_v58, 1  ;;  %v5062_v53 = vld [vmem:[%s6980_s3 + $0x10] sm:$0xff]   ;;  %v955_v56 = vld [vmem:[%s6982_s5 + $0x20] sm:$0xff]  ;;  %v5453_v57 = vld [vmem:[%s6982_s5 + $0x8] sm:$0xff] }
  0x40   : > { %v2799_v3 = vadd.f32 %v2798_v59, %v2797_v51  ;;  %v2824_v4 = vrot.slane %v2823_v61, 4  ;;  %v2787_v5 = vadd.f32 %v2786_v62, %v2785_v54  ;;  %4937 = vmatmul.mubr.msk.bf16.gmra.mrb[12].mxu0 %vm616_vm1, %v601_v60  ;;  %4944 = vmatprep.subr.bf16.mxu1 %v5062_v53  ;;  %v5063_v54 = vld [vmem:[%s6980_s3 + $0x18] sm:$0xff]   ;;  %v5458_v60 = vld [vmem:[%s6982_s5 + $0x28] sm:$0xff]  ;;  %v963_v62 = vld [vmem:[%s6982_s5 + $0x60] sm:$0xff] }
  0x41   : > { %v2806_v6 = vadd.f32 %v2805_v63, %v2804_v55  ;;  %v2812_v7 = vrot.slane %v2811_v0, 2  ;;  %v2819_v8 = vrot.slane %v2818_v1, 2  ;;  %v2794_v9 = vadd.f32 %v2793_v2, %v2792_v58  ;;  %4945 = vmatpush3.bf16.msra.mxu1 %v5062_v53  ;;  %v951_v55 = vld [vmem:[%s6982_s5] sm:$0xff] }
  0x42   : > { %v2800_v10 = vrot.slane %v2799_v3, 1  ;;  %v2825_v11 = vadd.f32 %v2824_v4, %v2823_v61  ;;  %v2846_v12 = vmul.f32 0.125, %v2787_v5  ;;  %4946 = vmatprep.subr.bf16.mxu1 %v5063_v54  ;;  %v4634_v58 = vcombine.low %v951_v55, %v955_v56  ;;  %v959_v61 = vld [vmem:[%s6982_s5 + $0x40] sm:$0xff] }
  0x43   : > { %v2807_v13 = vrot.slane %v2806_v6, 1  ;;  %v2813_v14 = vadd.f32 %v2812_v7, %v2811_v0  ;;  %v2820_v15 = vadd.f32 %v2819_v8, %v2818_v1  ;;  %v2847_v16 = vmul.f32 0.125, %v2794_v9  ;;  %v967_v2 = vld [vmem:[%s6982_s5 + $0x80] sm:$0xff] }
  0x44   : > { %v2801_v17 = vadd.f32 %v2800_v10, %v2799_v3  ;;  %v2826_v18 = vrot.slane %v2825_v11, 2  ;;  %v2862_v19 = vpack.c.bf16 %v2846_v12, %v2846_v12  ;;  %v4635_v59 = vcombine.high %v951_v55, %v955_v56  ;;  %v971_v3 = vld [vmem:[%s6982_s5 + $0xa0] sm:$0xff]  ;;  %v976_v55 = vld [vmem:[%s6982_s5 + $0xc8] sm:$0xff] }
  0x45   : > { %v2808_v20 = vadd.f32 %v2807_v13, %v2806_v6  ;;  %v2814_v21 = vrot.slane %v2813_v14, 1  ;;  %v2821_v22 = vrot.slane %v2820_v15, 1  ;;  %v2863_v23 = vpack.c.bf16 %v2847_v16, %v2847_v16  ;;  %4947 = vmatpush3.bf16.msra.mxu1 %v5063_v54  ;;  %v975_v6 = vld [vmem:[%s6982_s5 + $0xc0] sm:$0xff]  ;;  %v980_v56 = vld [vmem:[%s6982_s5 + $0xe8] sm:$0xff] }
  0x46   : > { %v2848_v24 = vmul.f32 0.125, %v2801_v17  ;;  %v2827_v25 = vadd.f32 %v2826_v18, %v2825_v11  ;;  %v2903_v26 = vunpack.c.l.b16 %v2862_v19  ;;  %v4636_v63 = vcombine.low %v5453_v57, %v5458_v60  ;;  %1377 = vmatprep.subr.bf16.mxu0 %v4635_v59  ;;  %v979_v7 = vld [vmem:[%s6982_s5 + $0xe0] sm:$0xff] }
  0x47   : > { %v2849_v27 = vmul.f32 0.125, %v2808_v20  ;;  %v2815_v28 = vadd.f32 %v2814_v21, %v2813_v14  ;;  %v2822_v29 = vadd.f32 %v2821_v22, %v2820_v15  ;;  %v2904_v30 = vunpack.c.l.b16 %v2863_v23  ;;  %1378 = vmatpush1.bf16.msra.mxu0 %v4634_v58  ;;  %v983_v10 = vld [vmem:[%s6982_s5 + $0x100] sm:$0xff] }
  0x48   : > { %v2864_v31 = vpack.c.bf16 %v2848_v24, %v2848_v24  ;;  %v2828_v32 = vrot.slane %v2827_v25, 1  ;;  %v4637_v0 = vcombine.high %v5453_v57, %v5458_v60  ;;  %v4643_v1 = vcombine.high %v959_v61, %v963_v62  ;;  %v987_v11 = vld [vmem:[%s6982_s5 + $0x120] sm:$0xff]  ;;  %v984_v60 = vld [vmem:[%s6982_s5 + $0x108] sm:$0xff] }
  0x49   : > { %v2865_v33 = vpack.c.bf16 %v2849_v27, %v2849_v27  ;;  %v2850_v34 = vmul.f32 0.125, %v2815_v28  ;;  %v2851_v35 = vmul.f32 0.125, %v2822_v29  ;;  %v2925_v36 = vsel %vm2911_vm2, %v2904_v30, %v2903_v26  ;;  %v991_v14 = vld [vmem:[%s6982_s5 + $0x140] sm:$0xff] }
  0x4a   : > { %v2905_v37 = vunpack.c.l.b16 %v2864_v31  ;;  %v2829_v38 = vadd.f32 %v2828_v32, %v2827_v25  ;;  %1490 = vmatprep.subr.bf16.mxu1 %v4637_v0  ;;  %v4642_v4 = vcombine.low %v959_v61, %v963_v62  ;;  %1379 = vmatprep.subr.bf16.mxu0 %v4643_v1  ;;  %v4651_v5 = vcombine.high %v967_v2, %v971_v3  ;;  %v995_v15 = vld [vmem:[%s6982_s5 + $0x160] sm:$0xff]  ;;  %v960_v32 = vld [vmem:[%s6982_s5 + $0x48] sm:$0xff] }
  0x4b   : > { %v2906_v39 = vunpack.c.l.b16 %v2865_v33  ;;  %v2866_v40 = vpack.c.bf16 %v2850_v34, %v2850_v34  ;;  %v2867_v41 = vpack.c.bf16 %v2851_v35, %v2851_v35  ;;  %v4650_v8 = vcombine.low %v967_v2, %v971_v3  ;;  %v5497_v19 = vld [vmem:[%s7019_s21] ss:$0 sm:$0xff]  ;;  %v964_v33 = vld [vmem:[%s6982_s5 + $0x68] sm:$0xff]  ;;  %s4608_s21 = sshll.u32 %s567_s19, 4 }
  0x4c   : > { %v2926_v42 = vsel %vm2913_vm3, %v2905_v37, %v2925_v36  ;;  %v2852_v43 = vmul.f32 0.125, %v2829_v38  ;;  %1380 = vmatpush1.bf16.msra.mxu0 %v4642_v4  ;;  %v4659_v9 = vcombine.high %v975_v6, %v979_v7  ;;  %v4658_v12 = vcombine.low %v975_v6, %v979_v7  ;;  %v988_v62 = vld [vmem:[%s6982_s5 + $0x128] sm:$0xff]  ;;  %s569_s27 = scalar_lea.vmem [#allocation2], %s4608_s21  ;;  %s5160_s21 = scalar_lea.vmem %s5159_s22, 512 }
  0x4d   : > { %v2927_v44 = vsel %vm2915_vm4, %v2906_v39, %v2926_v42  ;;  %v2907_v45 = vunpack.c.l.b16 %v2866_v40  ;;  %v2908_v47 = vunpack.c.l.b16 %v2867_v41  ;;  %1381 = vmatprep.subr.bf16.mxu0 %v4651_v5  ;;  %v4667_v13 = vcombine.high %v983_v10, %v987_v11  ;;  %v968_v42 = vld [vmem:[%s6982_s5 + $0x88] sm:$0xff]  ;;  %s4542_s23 = sshll.u32 %s569_s27, 4  ;;  %s6934_s23 = int_to_ptr.vmem [resolvable:$true] %s4542_s23 }
  0x4e   : > { %v2868_v48 = vpack.c.bf16 %v2852_v43, %v2852_v43  ;;  %v4666_v16 = vcombine.low %v983_v10, %v987_v11  ;;  %v4675_v17 = vcombine.high %v991_v14, %v995_v15  ;;  %v4674_v18 = vcombine.low %v991_v14, %v995_v15  ;;  %v972_v43 = vld [vmem:[%s6982_s5 + $0xa8] sm:$0xff]  ;;  %s5154_s1 = scalar_lea.vmem %s6934_s23, 256  ;;  %p5161_p0 = scmp.lt.s32.totalorder %s6934_s23, %s5159_s22 }
  0x4f   : > { %v2928_v49 = vsel %vm2917_vm5, %v2907_v45, %v2927_v44  ;;  %v4645_v39 = vcombine.high %v960_v32, %v964_v33  ;;  %v4653_v53 = vcombine.high %v968_v42, %v972_v43  ;;  %v4652_v61 = vcombine.low %v968_v42, %v972_v43  ;;  %v992_v4 = vld [vmem:[%s6982_s5 + $0x148] sm:$0xff]  ;;  %v1007_v42 = vld [vmem:[%s6982_s5 + $0x1c0] sm:$0xff]  ;;  %p5155_p11 = scmp.ne.s32.totalorder %s6934_s23, %s5154_s1  ;;  %p5162_p1 = scmp.lt.s32.totalorder %s5160_s21, %s5154_s1 }
  0x50   : > { %v2929_v50 = vsel %vm2919_vm6, %v2908_v47, %v2928_v49  ;;  %v2909_v51 = vunpack.c.l.b16 %v2868_v48  ;;  %1382 = vmatpush1.bf16.msra.mxu0 %v4650_v8  ;;  %v4661_v57 = vcombine.high %v976_v55, %v980_v56  ;;  %v4669_v1 = vcombine.high %v984_v60, %v988_v62  ;;  %v996_v5 = vld [vmem:[%s6982_s5 + $0x168] sm:$0xff]  ;;  %v1011_v43 = vld [vmem:[%s6982_s5 + $0x1e0] sm:$0xff] }
  0x51   : > { %1383 = vmatprep.subr.bf16.mxu0 %v4659_v9  ;;  %v4668_v11 = vcombine.low %v984_v60, %v988_v62  ;;  %v4677_v14 = vcombine.high %v992_v4, %v996_v5  ;;  %v5597_v60 = vld [vmem:[%s6981_s4] ss:$0 sm:$0xff]  ;;  %p5156_p12 = pnand %p5155_p11, %p5357_p5  ;;  %p5163_p2 = por %p5162_p1, %p5161_p0 }
  0x52   : > { %v5436_v52 = vsel %vm2921_vm7, %v2909_v51, %v2929_v50  ;;  %v4644_v50 = vcombine.low %v960_v32, %v964_v33 }
  0x53   : > { %7018 = vst [vmem:[#allocation11_spill] sm:$0xff] %v5436_v52  ;;  %p5157_p13 = pneg %p5156_p12 }
  0x54   : > { %1384 = vmatpush1.bf16.msra.mxu0 %v4658_v12 }
  0x55   : > { %1385 = vmatprep.subr.bf16.mxu0 %v4667_v13  ;;  %p5164_p3 = pnand %p5163_p2, %p5157_p13 }
  0x58   : > { %1386 = vmatpush1.bf16.msra.mxu0 %v4666_v16 }
  0x59   : > { %1387 = vmatprep.subr.bf16.mxu0 %v4675_v17 }
  0x5c   : > { %1388 = vmatpush1.bf16.msra.mxu0 %v4674_v18 }
  0xfa   : > { %v4926_v20 = vpop.f32.mrb[0].mxu0 }
  0xfb   : > { %v688_v21 = vadd.f32 %v4926_v20, %v5497_v19  ;;  %v679_v22 = vpop.f32.mrb[1].mxu0 }
  0xfc   : > { %v680_v23 = vadd.f32 %v5497_v19, %v679_v22  ;;  %v4927_v24 = vpop.f32.mrb[2].mxu0 }
  0xfd   : > { %v691_v25 = vadd.f32 %v4927_v24, %v5497_v19  ;;  %v682_v26 = vpop.f32.mrb[3].mxu0  ;;  %v744_v28 = vmax.f32 %v688_v21, 0.0  ;;  %v4676_v21 = vcombine.low %v992_v4, %v996_v5 }
  0xfe   : > { %v683_v27 = vadd.f32 %v5497_v19, %v682_v26  ;;  %v742_v30 = vmax.f32 %v680_v23, 0.0 }
  0xff   : > { %v745_v29 = vmax.f32 %v691_v25, 0.0 }
 0x100   : > { %v743_v31 = vmax.f32 %v683_v27, 0.0 }
 0x101   : > { %v759_v34 = vpack.c.bf16 %v745_v29, %v744_v28 }
 0x102   : > { %v4930_v35 = vpop.f32.mrb[4].mxu0  ;;  %v758_v36 = vpack.c.bf16 %v743_v31, %v742_v30 }
 0x103   : > { %v704_v37 = vadd.f32 %v4930_v35, %v5497_v19  ;;  %v695_v38 = vpop.f32.mrb[5].mxu0  ;;  %v999_v35 = vld [vmem:[%s6982_s5 + $0x180] sm:$0xff] }
 0x104   : > { %v696_v40 = vadd.f32 %v5497_v19, %v695_v38  ;;  %4948 = vmatprep.mubr.msk.bf16.mxu1 %vm805_vm8, %v758_v36  ;;  %v4931_v41 = vpop.f32.mrb[6].mxu0  ;;  %v1003_v36 = vld [vmem:[%s6982_s5 + $0x1a0] sm:$0xff]  ;;  %v1004_v38 = vld [vmem:[%s6982_s5 + $0x1a8] sm:$0xff] }
 0x105   : > { %v748_v44 = vmax.f32 %v704_v37, 0.0  ;;  %v707_v45 = vadd.f32 %v4931_v41, %v5497_v19  ;;  %4949 = vmatmul.mubr.msk.bf16.vlgmr.msra.gmra.mrb[0].mxu1 %vm805_vm8, %v759_v34  ;;  %v698_v47 = vpop.f32.mrb[7].mxu0  ;;  %v4683_v37 = vcombine.high %v999_v35, %v1003_v36 }
 0x106   : > { %v746_v48 = vmax.f32 %v696_v40, 0.0  ;;  %v699_v49 = vadd.f32 %v5497_v19, %v698_v47  ;;  %1491 = vmatpush1.bf16.msra.mxu1 %v4636_v63  ;;  %v4660_v63 = vcombine.low %v976_v55, %v980_v56  ;;  %v1012_v47 = vld [vmem:[%s6982_s5 + $0x1e8] sm:$0xff] }
 0x107   : > { %v749_v51 = vmax.f32 %v707_v45, 0.0  ;;  %1492 = vmatprep.subr.bf16.mxu1 %v4645_v39  ;;  %v4682_v39 = vcombine.low %v999_v35, %v1003_v36  ;;  %1389 = vmatprep.subr.bf16.mxu0 %v4683_v37  ;;  %v4691_v45 = vcombine.high %v1007_v42, %v1011_v43  ;;  %v977_v37 = vld [vmem:[%s6982_s5 + $0xd0] sm:$0xff] }
 0x108   : > { %v747_v54 = vmax.f32 %v699_v49, 0.0 }
 0x109   : > { %v761_v58 = vpack.c.bf16 %v749_v51, %v748_v44  ;;  %1390 = vmatpush1.bf16.msra.mxu0 %v4682_v39  ;;  %v1008_v44 = vld [vmem:[%s6982_s5 + $0x1c8] sm:$0xff]  ;;  %v5218_v51 = vmov 0   ;;  %v981_v39 = vld [vmem:[%s6982_s5 + $0xf0] sm:$0xff] }
 0x10a   : > { %v760_v59 = vpack.c.bf16 %v747_v54, %v746_v48  ;;  %1493 = vmatpush1.bf16.msra.mxu1 %v4644_v50  ;;  %v4690_v48 = vcombine.low %v1007_v42, %v1011_v43  ;;  %v4692_v49 = vcombine.low %v1008_v44, %v1012_v47  ;;  %v4693_v50 = vcombine.high %v1008_v44, %v1012_v47  ;;  %v957_v54 = vld [vmem:[%s6982_s5 + $0x30] sm:$0xff] }
 0x10b   : > { %1494 = vmatprep.subr.bf16.mxu1 %v4653_v53  ;;  %v4934_v0 = vpop.f32.mrb[8].mxu0  ;;  %1391 = vmatprep.subr.bf16.mxu0 %v4691_v45  ;;  %v953_v53 = vld [vmem:[%s6982_s5 + $0x10] sm:$0xff]  ;;  %v4663_v47 = vcombine.high %v977_v37, %v981_v39 }
 0x10c   : > { %4952 = vmatprep.mubr.msk.bf16.mxu1 %vm805_vm8, %v760_v59  ;;  %v720_v2 = vadd.f32 %v4934_v0, %v5497_v19  ;;  %v711_v3 = vpop.f32.mrb[9].mxu0  ;;  %1409 = vmatprep.mubr.bf16.mxu0 %v5218_v51  ;;  %v4638_v55 = vcombine.low %v953_v53, %v957_v54  ;;  %v4639_v56 = vcombine.high %v953_v53, %v957_v54  ;;  %v958_v59 = vld [vmem:[%s6982_s5 + $0x38] sm:$0xff] }
 0x10d   : > { %4953 = vmatmul.mubr.msk.bf16.gmra.mrb[4].mxu1 %vm805_vm8, %v761_v58  ;;  %v712_v6 = vadd.f32 %v5497_v19, %v711_v3  ;;  %v4935_v7 = vpop.f32.mrb[10].mxu0  ;;  %1392 = vmatpush1.bf16.msra.mxu0 %v4690_v48  ;;  %v954_v58 = vld [vmem:[%s6982_s5 + $0x18] sm:$0xff] }
 0x10e   : > { %1495 = vmatpush1.bf16.msra.mxu1 %v4652_v61  ;;  %v752_v8 = vmax.f32 %v720_v2, 0.0  ;;  %v723_v9 = vadd.f32 %v4935_v7, %v5497_v19  ;;  %v714_v10 = vpop.f32.mrb[11].mxu0  ;;  %1603 = vmatprep.subr.bf16.mxu0 %v4639_v56  ;;  %v4640_v61 = vcombine.low %v954_v58, %v958_v59  ;;  %v986_v53 = vld [vmem:[%s6982_s5 + $0x118] sm:$0xff] }
 0x10f   : > { %1496 = vmatprep.subr.bf16.mxu1 %v4661_v57  ;;  %v750_v12 = vmax.f32 %v712_v6, 0.0  ;;  %v715_v13 = vadd.f32 %v5497_v19, %v714_v10  ;;  %v4641_v57 = vcombine.high %v954_v58, %v958_v59  ;;  %v990_v54 = vld [vmem:[%s6982_s5 + $0x138] sm:$0xff] }
 0x110   : > { %v753_v15 = vmax.f32 %v723_v9, 0.0 }
 0x111   : > { %v751_v16 = vmax.f32 %v715_v13, 0.0  ;;  %v966_v13 = vld [vmem:[%s6982_s5 + $0x78] sm:$0xff] }
 0x112   : > { %1497 = vmatpush1.bf16.msra.mxu1 %v4660_v63  ;;  %v763_v17 = vpack.c.bf16 %v753_v15, %v752_v8  ;;  %v961_v8 = vld [vmem:[%s6982_s5 + $0x50] sm:$0xff] }
 0x113   : > { %1498 = vmatprep.subr.bf16.mxu1 %v4669_v1  ;;  %v762_v18 = vpack.c.bf16 %v751_v16, %v750_v12  ;;  %v4938_v20 = vpop.f32.mrb[12].mxu0  ;;  %v962_v12 = vld [vmem:[%s6982_s5 + $0x58] sm:$0xff] }
 0x114   : > { %v736_v22 = vadd.f32 %v4938_v20, %v5497_v19  ;;  %v727_v23 = vpop.f32.mrb[13].mxu0 }
 0x115   : > { %4956 = vmatprep.mubr.msk.bf16.mxu1 %vm805_vm8, %v762_v18  ;;  %v728_v24 = vadd.f32 %v5497_v19, %v727_v23  ;;  %v4939_v25 = vpop.f32.mrb[14].mxu0  ;;  %v973_v23 = vld [vmem:[%s6982_s5 + $0xb0] sm:$0xff] }
 0x116   : > { %1499 = vmatpush1.bf16.msra.mxu1 %v4668_v11  ;;  %v756_v26 = vmax.f32 %v736_v22, 0.0  ;;  %v739_v27 = vadd.f32 %v4939_v25, %v5497_v19  ;;  %v730_v28 = vpop.f32.mrb[15].mxu0  ;;  %v965_v11 = vld [vmem:[%s6982_s5 + $0x70] sm:$0xff]  ;;  %v4649_v22 = vcombine.high %v962_v12, %v966_v13  ;;  %v974_v25 = vld [vmem:[%s6982_s5 + $0xb8] sm:$0xff] }
 0x117   : > { %1500 = vmatprep.subr.bf16.mxu1 %v4677_v14  ;;  %4957 = vmatmul.mubr.msk.bf16.gmra.mrb[8].mxu1 %vm805_vm8, %v763_v17  ;;  %v754_v29 = vmax.f32 %v728_v24, 0.0  ;;  %v731_v30 = vadd.f32 %v5497_v19, %v730_v28  ;;  %v1000_v19 = vld [vmem:[%s6982_s5 + $0x188] sm:$0xff]  ;;  %v969_v17 = vld [vmem:[%s6982_s5 + $0x90] sm:$0xff]  ;;  %v970_v24 = vld [vmem:[%s6982_s5 + $0x98] sm:$0xff] }
 0x118   : > { %v757_v31 = vmax.f32 %v739_v27, 0.0  ;;  %v4684_v40 = vcombine.low %v1000_v19, %v1004_v38  ;;  %v4685_v41 = vcombine.high %v1000_v19, %v1004_v38  ;;  %v4655_v35 = vcombine.high %v969_v17, %v973_v23 }
 0x119   : > { %v755_v32 = vmax.f32 %v731_v30, 0.0  ;;  %v4657_v36 = vcombine.high %v970_v24, %v974_v25  ;;  %v4654_v44 = vcombine.low %v969_v17, %v973_v23  ;;  %v4656_v45 = vcombine.low %v970_v24, %v974_v25 }
 0x11a   : > { %1501 = vmatpush1.bf16.msra.mxu1 %v4676_v21  ;;  %v765_v33 = vpack.c.bf16 %v757_v31, %v756_v26  ;;  %v4647_v21 = vcombine.high %v961_v8, %v965_v11  ;;  %v4646_v31 = vcombine.low %v961_v8, %v965_v11 }
 0x11b   : > { %v764_v34 = vpack.c.bf16 %v755_v32, %v754_v29  ;;  %1502 = vmatprep.subr.bf16.mxu1 %v4685_v41  ;;  %v4648_v32 = vcombine.low %v962_v12, %v966_v13  ;;  %v982_v41 = vld [vmem:[%s6982_s5 + $0xf8] sm:$0xff] }
 0x11d   : > { %4960 = vmatprep.mubr.msk.bf16.mxu1 %vm805_vm8, %v764_v34 }
 0x11e   : > { %1503 = vmatpush1.bf16.msra.mxu1 %v4684_v40  ;;  %v978_v40 = vld [vmem:[%s6982_s5 + $0xd8] sm:$0xff] }
 0x11f   : > { %4961 = vmatmul.mubr.msk.bf16.gmra.mrb[12].mxu1 %vm805_vm8, %v765_v33  ;;  %1504 = vmatprep.subr.bf16.mxu1 %v4693_v50  ;;  %v4665_v48 = vcombine.high %v978_v40, %v982_v41  ;;  %v989_v50 = vld [vmem:[%s6982_s5 + $0x130] sm:$0xff]  ;;  %v4664_v56 = vcombine.low %v978_v40, %v982_v41 }
 0x120   : > { %1522 = vmatprep.mubr.bf16.mxu1 %v5218_v51 }
 0x122   : > { %1505 = vmatpush1.bf16.msra.mxu1 %v4692_v49  ;;  %v985_v49 = vld [vmem:[%s6982_s5 + $0x110] sm:$0xff] }
 0x123   : > { %1716 = vmatprep.subr.bf16.mxu1 %v4641_v57  ;;  %v4671_v59 = vcombine.high %v985_v49, %v989_v50  ;;  %v993_v57 = vld [vmem:[%s6982_s5 + $0x150] sm:$0xff]  ;;  %v4670_v8 = vcombine.low %v985_v49, %v989_v50 }
 0x1d8   : > { %v4950_v62 = vpop.f32.mrb[0].mxu1 }
 0x1d9   : > { %v873_v63 = vadd.f32 %v4950_v62, %v5597_v60  ;;  %v864_v0 = vpop.f32.mrb[1].mxu1 }
 0x1da   : > { %v865_v1 = vadd.f32 %v5597_v60, %v864_v0  ;;  %v4951_v2 = vpop.f32.mrb[2].mxu1  ;;  %v997_v0 = vld [vmem:[%s6982_s5 + $0x170] sm:$0xff] }
 0x1db   : > { %v876_v3 = vadd.f32 %v4951_v2, %v5597_v60  ;;  %v867_v4 = vpop.f32.mrb[3].mxu1  ;;  %v929_v6 = vmax.f32 %v873_v63, 0.0  ;;  %v998_v2 = vld [vmem:[%s6982_s5 + $0x178] sm:$0xff]  ;;  %v4679_v12 = vcombine.high %v993_v57, %v997_v0  ;;  %v4678_v24 = vcombine.low %v993_v57, %v997_v0 }
 0x1dc   : > { %v868_v5 = vadd.f32 %v5597_v60, %v867_v4  ;;  %v927_v9 = vmax.f32 %v865_v1, 0.0  ;;  %v994_v1 = vld [vmem:[%s6982_s5 + $0x158] sm:$0xff] }
 0x1dd   : > { %v930_v7 = vmax.f32 %v876_v3, 0.0  ;;  %v4681_v13 = vcombine.high %v994_v1, %v998_v2  ;;  %v4680_v25 = vcombine.low %v994_v1, %v998_v2 }
 0x1de   : > { %v928_v10 = vmax.f32 %v868_v5, 0.0 }
 0x1df   : > { %v5615_v14 = vpack.c.bf16 %v930_v7, %v929_v6 }
 0x1e0   : > { %v5617_v15 = vpack.c.bf16 %v928_v10, %v927_v9  ;;  %v4954_v16 = vpop.f32.mrb[4].mxu1  ;;  %v4672_v9 = vcombine.low %v986_v53, %v990_v54 }
 0x1e1   : > { %v889_v18 = vadd.f32 %v4954_v16, %v5597_v60  ;;  %v880_v20 = vpop.f32.mrb[5].mxu1  ;;  %v1001_v16 = vld [vmem:[%s6982_s5 + $0x190] sm:$0xff] }
 0x1e2   : > { %v881_v26 = vadd.f32 %v5597_v60, %v880_v20  ;;  %1410 = vmatmul.mubr.bf16.vlgmr.msra.gmra.mrb[16].mxu0 %v5617_v15  ;;  %1523 = vmatmul.mubr.bf16.vlgmr.msra.gmra.mrb[16].mxu1 %v5617_v15  ;;  %v4955_v27 = vpop.f32.mrb[6].mxu1  ;;  %v1002_v20 = vld [vmem:[%s6982_s5 + $0x198] sm:$0xff] }
 0x1e3   : > { %v933_v28 = vmax.f32 %v889_v18, 0.0  ;;  %1604 = vmatpush1.bf16.msra.mxu0 %v4638_v55  ;;  %v892_v29 = vadd.f32 %v4955_v27, %v5597_v60  ;;  %v883_v30 = vpop.f32.mrb[7].mxu1  ;;  %1717 = vmatpush1.bf16.msra.mxu1 %v4640_v61  ;;  %v4662_v55 = vcombine.low %v977_v37, %v981_v39  ;;  %v4673_v61 = vcombine.high %v986_v53, %v990_v54  ;;  %v1005_v18 = vld [vmem:[%s6982_s5 + $0x1b0] sm:$0xff] }
 0x1e4   : > { %v931_v33 = vmax.f32 %v881_v26, 0.0  ;;  %v884_v34 = vadd.f32 %v5597_v60, %v883_v30  ;;  %1419 = vmatprep.mubr.bf16.mxu0 %v5218_v51  ;;  %1532 = vmatprep.mubr.bf16.mxu1 %v5218_v51  ;;  %v1009_v30 = vld [vmem:[%s6982_s5 + $0x1d0] sm:$0xff]  ;;  %v4686_v40 = vcombine.low %v1001_v16, %v1005_v18 }
 0x1e5   : > { %v934_v19 = vmax.f32 %v892_v29, 0.0  ;;  %1605 = vmatprep.subr.bf16.mxu0 %v4647_v21  ;;  %1718 = vmatprep.subr.bf16.mxu1 %v4649_v22  ;;  %v1006_v21 = vld [vmem:[%s6982_s5 + $0x1b8] sm:$0xff] }
 0x1e6   : > { %v932_v38 = vmax.f32 %v884_v34, 0.0  ;;  %v4689_v29 = vcombine.high %v1002_v20, %v1006_v21  ;;  %v1010_v34 = vld [vmem:[%s6982_s5 + $0x1d8] sm:$0xff]  ;;  %v4688_v41 = vcombine.low %v1002_v20, %v1006_v21 }
 0x1e7   : > { %v5651_v42 = vpack.c.bf16 %v934_v19, %v933_v28  ;;  %1606 = vmatpush1.bf16.msra.mxu0 %v4646_v31  ;;  %1719 = vmatpush1.bf16.msra.mxu1 %v4648_v32  ;;  %v4687_v28 = vcombine.high %v1001_v16, %v1005_v18 }
 0x1e8   : > { %v5653_v43 = vpack.c.bf16 %v932_v38, %v931_v33  ;;  %1607 = vmatprep.subr.bf16.mxu0 %v4655_v35  ;;  %1720 = vmatprep.subr.bf16.mxu1 %v4657_v36  ;;  %v1013_v33 = vld [vmem:[%s6982_s5 + $0x1f0] sm:$0xff]  ;;  %v1014_v35 = vld [vmem:[%s6982_s5 + $0x1f8] sm:$0xff] }
 0x1e9   : > { %v4694_v54 = vcombine.low %v1009_v30, %v1013_v33 }
 0x1ea   : > { %1420 = vmatmul.mubr.bf16.gmra.mrb[20].mxu0 %v5615_v14  ;;  %1533 = vmatmul.mubr.bf16.gmra.mrb[20].mxu1 %v5615_v14  ;;  %v4958_v58 = vpop.f32.mrb[8].mxu1 }
 0x1eb   : > { %1429 = vmatprep.mubr.bf16.mxu0 %v5218_v51  ;;  %1542 = vmatprep.mubr.bf16.mxu1 %v5218_v51  ;;  %v905_v62 = vadd.f32 %v4958_v58, %v5597_v60  ;;  %v896_v63 = vpop.f32.mrb[9].mxu1  ;;  %v5152_v58 = vld [vmem:[%s5382_s20 + $0x78] sm:$0xff] }
 0x1ec   : > { %1608 = vmatpush1.bf16.msra.mxu0 %v4654_v44  ;;  %1721 = vmatpush1.bf16.msra.mxu1 %v4656_v45  ;;  %v897_v3 = vadd.f32 %v5597_v60, %v896_v63  ;;  %v4959_v4 = vpop.f32.mrb[10].mxu1 }
 0x1ed   : > { %1609 = vmatprep.subr.bf16.mxu0 %v4663_v47  ;;  %1722 = vmatprep.subr.bf16.mxu1 %v4665_v48  ;;  %v937_v5 = vmax.f32 %v905_v62, 0.0  ;;  %v908_v6 = vadd.f32 %v4959_v4, %v5597_v60  ;;  %v899_v7 = vpop.f32.mrb[11].mxu1  ;;  %v4695_v47 = vcombine.high %v1009_v30, %v1013_v33  ;;  %v4697_v48 = vcombine.high %v1010_v34, %v1014_v35 }
 0x1ee   : > { %v935_v10 = vmax.f32 %v897_v3, 0.0  ;;  %v900_v11 = vadd.f32 %v5597_v60, %v899_v7  ;;  %v1017_v3 = vlaneseq }
 0x1ef   : > { %v938_v17 = vmax.f32 %v908_v6, 0.0 }
 0x1f0   : > { %1610 = vmatpush1.bf16.msra.mxu0 %v4662_v55  ;;  %1723 = vmatpush1.bf16.msra.mxu1 %v4664_v56  ;;  %v936_v22 = vmax.f32 %v900_v11, 0.0  ;;  %v4696_v55 = vcombine.low %v1010_v34, %v1014_v35  ;;  %v5774_v6 = vshrl.u32 %v1017_v3, 7 }
 0x1f1   : > { %1611 = vmatprep.subr.bf16.mxu0 %v4671_v59  ;;  %1724 = vmatprep.subr.bf16.mxu1 %v4673_v61  ;;  %v5703_v23 = vpack.c.bf16 %v938_v17, %v937_v5  ;;  %v2830_v59 = vsel %vm616_vm1, %v5152_v58, 0.0 }
 0x1f2   : > { %1430 = vmatmul.mubr.bf16.gmra.mrb[24].mxu0 %v5653_v43  ;;  %1543 = vmatmul.mubr.bf16.gmra.mrb[24].mxu1 %v5653_v43  ;;  %v5705_v26 = vpack.c.bf16 %v936_v22, %v935_v10  ;;  %v4962_v27 = vpop.f32.mrb[12].mxu1  ;;  %7020 = vst [vmem:[#allocation12_spill] sm:$0xff] %v5774_v6  ;;  %v1027_v10 = vsub.s32 2, %v5774_v6  ;;  %v1023_v16 = vsub.s32 1, %v5774_v6  ;;  %v1031_v17 = vsub.s32 3, %v5774_v6 }
 0x1f3   : > { %1439 = vmatprep.mubr.bf16.mxu0 %v5218_v51  ;;  %1552 = vmatprep.mubr.bf16.mxu1 %v5218_v51  ;;  %v921_v31 = vadd.f32 %v4962_v27, %v5597_v60  ;;  %v912_v32 = vpop.f32.mrb[13].mxu1 }
 0x1f4   : > { %1612 = vmatpush1.bf16.msra.mxu0 %v4670_v8  ;;  %1725 = vmatpush1.bf16.msra.mxu1 %v4672_v9  ;;  %v913_v36 = vadd.f32 %v5597_v60, %v912_v32  ;;  %v4963_v19 = vpop.f32.mrb[14].mxu1  ;;  %v1019_v9 = vsub.s32 0, %v5774_v6 }
 0x1f5   : > { %1613 = vmatprep.subr.bf16.mxu0 %v4679_v12  ;;  %1726 = vmatprep.subr.bf16.mxu1 %v4681_v13  ;;  %v941_v37 = vmax.f32 %v921_v31, 0.0  ;;  %v924_v38 = vadd.f32 %v4963_v19, %v5597_v60  ;;  %v915_v39 = vpop.f32.mrb[15].mxu1  ;;  %v1015_v13 = vld [vmem:[%s6983_s6] sm:$0xff] }
 0x1f6   : > { %v939_v44 = vmax.f32 %v913_v36, 0.0  ;;  %v916_v45 = vadd.f32 %v5597_v60, %v915_v39  ;;  %v5783_v18 = vrot.slane %v1015_v13, %v1019_v9  ;;  %v5785_v20 = vrot.slane %v1015_v13, %v1027_v10 }
 0x1f7   : > { %v942_v49 = vmax.f32 %v924_v38, 0.0 }
 0x1f8   : > { %1614 = vmatpush1.bf16.msra.mxu0 %v4678_v24  ;;  %1727 = vmatpush1.bf16.msra.mxu1 %v4680_v25  ;;  %v940_v50 = vmax.f32 %v916_v45, 0.0  ;;  %v5789_v24 = vrot.slane %v1015_v13, %v1031_v17 }
 0x1f9   : > { %1615 = vmatprep.subr.bf16.mxu0 %v4687_v28  ;;  %1728 = vmatprep.subr.bf16.mxu1 %v4689_v29  ;;  %v950_v53 = vpack.c.bf16 %v942_v49, %v941_v37 }
 0x1fa   : > { %1440 = vmatmul.mubr.bf16.gmra.mrb[28].mxu0 %v5651_v42  ;;  %1553 = vmatmul.mubr.bf16.gmra.mrb[28].mxu1 %v5651_v42  ;;  %v949_v60 = vpack.c.bf16 %v940_v50, %v939_v44 }
 0x1fb   : > { %1449 = vmatprep.mubr.bf16.mxu0 %v5218_v51  ;;  %1562 = vmatprep.mubr.bf16.mxu1 %v5218_v51 }
 0x1fc   : > { %1616 = vmatpush1.bf16.msra.mxu0 %v4686_v40  ;;  %1729 = vmatpush1.bf16.msra.mxu1 %v4688_v41 }
 0x1fd   : > { %1617 = vmatprep.subr.bf16.mxu0 %v4695_v47  ;;  %1730 = vmatprep.subr.bf16.mxu1 %v4697_v48 }
 0x200   : > { %1618 = vmatpush1.bf16.msra.mxu0 %v4694_v54  ;;  %1731 = vmatpush1.bf16.msra.mxu1 %v4696_v55 }
 0x202   : > { %1450 = vmatmul.mubr.bf16.gmra.mrb[32].mxu0 %v5705_v26  ;;  %1563 = vmatmul.mubr.bf16.gmra.mrb[32].mxu1 %v5705_v26 }
 0x203   : > { %1459 = vmatprep.mubr.bf16.mxu0 %v5218_v51  ;;  %1572 = vmatprep.mubr.bf16.mxu1 %v5218_v51 }
 0x20a   : > { %1460 = vmatmul.mubr.bf16.gmra.mrb[36].mxu0 %v5703_v23  ;;  %1573 = vmatmul.mubr.bf16.gmra.mrb[36].mxu1 %v5703_v23 }
 0x20b   : > { %1469 = vmatprep.mubr.bf16.mxu0 %v5218_v51  ;;  %1582 = vmatprep.mubr.bf16.mxu1 %v5218_v51 }
 0x212   : > { %1470 = vmatmul.mubr.bf16.gmra.mrb[40].mxu0 %v949_v60  ;;  %1583 = vmatmul.mubr.bf16.gmra.mrb[40].mxu1 %v949_v60 }
 0x213   : > { %1479 = vmatprep.mubr.bf16.mxu0 %v5218_v51  ;;  %1592 = vmatprep.mubr.bf16.mxu1 %v5218_v51 }
 0x21a   : > { %1480 = vmatmul.mubr.bf16.gmra.mrb[44].mxu0 %v950_v53  ;;  %1593 = vmatmul.mubr.bf16.gmra.mrb[44].mxu1 %v950_v53 }
 0x21b   : > { %1635 = vmatprep.mubr.bf16.mxu0 %v5218_v51  ;;  %1748 = vmatprep.mubr.bf16.mxu1 %v5218_v51 }
 0x222   : > { %1636 = vmatmul.mubr.bf16.vlgmr.msra.gmra.mrb[48].mxu0 %v5617_v15  ;;  %1749 = vmatmul.mubr.bf16.vlgmr.msra.gmra.mrb[48].mxu1 %v5617_v15  ;;  %v7001_v15 = vmov 0.0  }
 0x223   : > { %1645 = vmatprep.mubr.bf16.mxu0 %v5218_v51  ;;  %1758 = vmatprep.mubr.bf16.mxu1 %v5218_v51 }
 0x224   : > { %4964 = vmatprep.subr.bf16.mxu0 %v7001_v15 }
 0x22a   : > { %1646 = vmatmul.mubr.bf16.gmra.mrb[52].mxu0 %v5615_v14  ;;  %1759 = vmatmul.mubr.bf16.gmra.mrb[52].mxu1 %v5615_v14  ;;  %v5064_v14 = vld [vmem:[%s6984_s7] sm:$0x1f]  }
 0x22b   : > { %1655 = vmatprep.mubr.bf16.mxu0 %v5218_v51  ;;  %1768 = vmatprep.mubr.bf16.mxu1 %v5218_v51 }
 0x232   : > { %1656 = vmatmul.mubr.bf16.gmra.mrb[56].mxu0 %v5653_v43  ;;  %1769 = vmatmul.mubr.bf16.gmra.mrb[56].mxu1 %v5653_v43  ;;  %v5151_v43 = vld [vmem:[%s5382_s20 + $0x38] sm:$0xff] }
 0x233   : > { %1665 = vmatprep.mubr.bf16.mxu0 %v5218_v51  ;;  %1778 = vmatprep.mubr.bf16.mxu1 %v5218_v51  ;;  %v2774_v56 = vsel %vm616_vm1, %v5151_v43, 0.0 }
 0x234   : > { %v2775_v61 = vrot.slane %v2774_v56, 4 }
 0x236   : > { %v2776_v57 = vadd.f32 %v2775_v61, %v2774_v56 }
 0x238   : > { %v2777_v63 = vrot.slane %v2776_v57, 2 }
 0x23a   : > { %1666 = vmatmul.mubr.bf16.gmra.mrb[60].mxu0 %v5651_v42  ;;  %1779 = vmatmul.mubr.bf16.gmra.mrb[60].mxu1 %v5651_v42  ;;  %v2942_v42 = vsel %vm641_vm0, %v5064_v14, 0  ;;  %v2778_v1 = vadd.f32 %v2777_v63, %v2776_v57 }
 0x23b   : > { %1675 = vmatprep.mubr.bf16.mxu0 %v5218_v51  ;;  %1788 = vmatprep.mubr.bf16.mxu1 %v5218_v51 }
 0x23c   : > { %4965 = vmatpush3.bf16.msra.mxu0 %v2942_v42  ;;  %v2779_v4 = vrot.slane %v2778_v1, 1 }
 0x23e   : > { %v2780_v7 = vadd.f32 %v2779_v4, %v2778_v1 }
 0x240   : > { %v2845_v11 = vmul.f32 0.125, %v2780_v7 }
 0x242   : > { %1676 = vmatmul.mubr.bf16.gmra.mrb[64].mxu0 %v5705_v26  ;;  %1789 = vmatmul.mubr.bf16.gmra.mrb[64].mxu1 %v5705_v26  ;;  %v2861_v21 = vpack.c.bf16 %v2845_v11, %v2845_v11 }
 0x243   : > { %1685 = vmatprep.mubr.bf16.mxu0 %v5218_v51  ;;  %1798 = vmatprep.mubr.bf16.mxu1 %v5218_v51 }
 0x244   : > { %v5793_v31 = vunpack.c.l.b16 %v2861_v21 }
 0x246   : > { %7021 = vst [vmem:[#allocation13_spill] sm:$0xff] %v5793_v31 }
 0x24a   : > { %1686 = vmatmul.mubr.bf16.gmra.mrb[68].mxu0 %v5703_v23  ;;  %1799 = vmatmul.mubr.bf16.gmra.mrb[68].mxu1 %v5703_v23  ;;  %v5787_v23 = vrot.slane %v1015_v13, %v1023_v16 }
 0x24b   : > { %1695 = vmatprep.mubr.bf16.mxu0 %v5218_v51  ;;  %1808 = vmatprep.mubr.bf16.mxu1 %v5218_v51 }
 0x252   : > { %1696 = vmatmul.mubr.bf16.gmra.mrb[72].mxu0 %v949_v60  ;;  %1809 = vmatmul.mubr.bf16.gmra.mrb[72].mxu1 %v949_v60 }
 0x253   : > { %1705 = vmatprep.mubr.bf16.mxu0 %v5218_v51  ;;  %1818 = vmatprep.mubr.bf16.mxu1 %v5218_v51  ;;  %v2831_v51 = vrot.slane %v2830_v59, 4 }
 0x255   : > { %v2832_v62 = vadd.f32 %v2831_v51, %v2830_v59 }
 0x257   : > { %v2833_v0 = vrot.slane %v2832_v62, 2 }
 0x259   : > { %v2834_v2 = vadd.f32 %v2833_v0, %v2832_v62 }
 0x25a   : > { %1706 = vmatmul.mubr.bf16.gmra.mrb[76].mxu0 %v950_v53  ;;  %1819 = vmatmul.mubr.bf16.gmra.mrb[76].mxu1 %v950_v53 }
 0x25b   : > { %v2835_v5 = vrot.slane %v2834_v2, 1 }
 0x25d   : > { %v2836_v8 = vadd.f32 %v2835_v5, %v2834_v2 }
 0x25f   : > { %v2853_v12 = vmul.f32 0.125, %v2836_v8 }
 0x261   : > { %v2869_v22 = vpack.c.bf16 %v2853_v12, %v2853_v12 }
 0x263   : > { %v5795_v32 = vunpack.c.l.b16 %v2869_v22 }
 0x265   : > { %7022 = vst [vmem:[#allocation14_spill] sm:$0xff] %v5795_v32 }
 0x2b5   : > { %v1411_v25 = vpop.f32.mrb[16].mxu0  ;;  %v1524_v26 = vpop.f32.mrb[16].mxu1 }
 0x2b6   : > { %v1412_v27 = vadd.f32 %v1411_v25, %v5783_v18  ;;  %v1525_v28 = vadd.f32 %v1524_v26, %v5785_v20  ;;  %v1413_v29 = vpop.f32.mrb[17].mxu0  ;;  %v1526_v30 = vpop.f32.mrb[17].mxu1 }
 0x2b7   : > { %v1414_v33 = vadd.f32 %v1413_v29, %v5787_v23  ;;  %v1527_v34 = vadd.f32 %v1526_v30, %v5789_v24  ;;  %v1415_v35 = vpop.f32.mrb[18].mxu0  ;;  %v1528_v36 = vpop.f32.mrb[18].mxu1 }
 0x2b8   : > { %v1829_v19 = vmax.f32 %v1412_v27, 0.0  ;;  %v1831_v37 = vmax.f32 %v1525_v28, 0.0  ;;  %v1416_v38 = vadd.f32 %v1415_v35, %v5783_v18  ;;  %v1529_v39 = vadd.f32 %v1528_v36, %v5785_v20  ;;  %v1417_v40 = vpop.f32.mrb[19].mxu0  ;;  %v1530_v41 = vpop.f32.mrb[19].mxu1 }
 0x2b9   : > { %v1830_v44 = vmax.f32 %v1414_v33, 0.0  ;;  %v1832_v45 = vmax.f32 %v1527_v34, 0.0  ;;  %v1418_v47 = vadd.f32 %v1417_v40, %v5787_v23  ;;  %v1531_v48 = vadd.f32 %v1530_v41, %v5789_v24 }
 0x2ba   : > { %v1957_v49 = vrot.slane %v1829_v19, 4  ;;  %v1969_v50 = vrot.slane %v1831_v37, 4  ;;  %v1837_v53 = vmax.f32 %v1416_v38, 0.0  ;;  %v1839_v54 = vmax.f32 %v1529_v39, 0.0 }
 0x2bb   : > { %v1963_v55 = vrot.slane %v1830_v44, 4  ;;  %v1975_v60 = vrot.slane %v1832_v45, 4  ;;  %v1838_v14 = vmax.f32 %v1418_v47, 0.0  ;;  %v1840_v42 = vmax.f32 %v1531_v48, 0.0 }
 0x2bc   : > { %v1958_v43 = vmax.f32 %v1829_v19, %v1957_v49  ;;  %v1970_v56 = vmax.f32 %v1831_v37, %v1969_v50  ;;  %v2005_v58 = vrot.slane %v1837_v53, 4  ;;  %v2017_v59 = vrot.slane %v1839_v54, 4 }
 0x2bd   : > { %v1964_v61 = vmax.f32 %v1830_v44, %v1963_v55  ;;  %v1976_v51 = vmax.f32 %v1832_v45, %v1975_v60  ;;  %v2011_v57 = vrot.slane %v1838_v14, 4  ;;  %v2023_v62 = vrot.slane %v1840_v42, 4  ;;  %v5803_v63 = vpop.f32.mrb[20].mxu0  ;;  %v5805_v0 = vpop.f32.mrb[20].mxu1 }
 0x2be   : > { %v1959_v1 = vrot.slane %v1958_v43, 2  ;;  %v1971_v2 = vrot.slane %v1970_v56, 2  ;;  %v2006_v3 = vmax.f32 %v1837_v53, %v2005_v58  ;;  %v2018_v4 = vmax.f32 %v1839_v54, %v2017_v59  ;;  %v5807_v5 = vpop.f32.mrb[21].mxu0  ;;  %v5809_v7 = vpop.f32.mrb[21].mxu1 }
 0x2bf   : > { %v1965_v8 = vrot.slane %v1964_v61, 2  ;;  %v1977_v9 = vrot.slane %v1976_v51, 2  ;;  %v2012_v10 = vmax.f32 %v1838_v14, %v2011_v57  ;;  %v2024_v11 = vmax.f32 %v1840_v42, %v2023_v62  ;;  %v5811_v12 = vpop.f32.mrb[22].mxu0  ;;  %v5813_v13 = vpop.f32.mrb[22].mxu1 }
 0x2c0   : > { %v1960_v16 = vmax.f32 %v1958_v43, %v1959_v1  ;;  %v1972_v17 = vmax.f32 %v1970_v56, %v1971_v2  ;;  %v2007_v21 = vrot.slane %v2006_v3, 2  ;;  %v2019_v22 = vrot.slane %v2018_v4, 2  ;;  %v5815_v25 = vpop.f32.mrb[23].mxu0  ;;  %v5817_v26 = vpop.f32.mrb[23].mxu1  ;;  %v5065_v1 = vld [vmem:[%s6986_s9 + $0x40] sm:$0xff]  }
 0x2c1   : > { %v1966_v27 = vmax.f32 %v1964_v61, %v1965_v8  ;;  %v1978_v28 = vmax.f32 %v1976_v51, %v1977_v9  ;;  %v2013_v29 = vrot.slane %v2012_v10, 2  ;;  %v2025_v30 = vrot.slane %v2024_v11, 2  ;;  %v5066_v2 = vld [vmem:[%s6986_s9 + $0xc0] sm:$0xff]   ;;  %4816 = vmatprep.subr.bf16.mxu1 %v5065_v1 }
 0x2c2   : > { %v1961_v33 = vrot.slane %v1960_v16, 1  ;;  %v1973_v34 = vrot.slane %v1972_v17, 1  ;;  %v2008_v35 = vmax.f32 %v2006_v3, %v2007_v21  ;;  %v2020_v36 = vmax.f32 %v2018_v4, %v2019_v22  ;;  %4838 = vmatprep.subr.bf16.mxu0 %v5066_v2 }
 0x2c3   : > { %v1967_v19 = vrot.slane %v1966_v27, 1  ;;  %v1979_v37 = vrot.slane %v1978_v28, 1  ;;  %v2014_v38 = vmax.f32 %v2012_v10, %v2013_v29  ;;  %v2026_v39 = vmax.f32 %v2024_v11, %v2025_v30 }
 0x2c4   : > { %v1962_v40 = vmax.f32 %v1960_v16, %v1961_v33  ;;  %v1974_v41 = vmax.f32 %v1972_v17, %v1973_v34  ;;  %v2009_v44 = vrot.slane %v2008_v35, 1  ;;  %v2021_v45 = vrot.slane %v2020_v36, 1  ;;  %v5067_v33 = vld [vmem:[%s6986_s9] sm:$0xff]  }
 0x2c5   : > { %v1968_v47 = vmax.f32 %v1966_v27, %v1967_v19  ;;  %v1980_v48 = vmax.f32 %v1978_v28, %v1979_v37  ;;  %v2015_v49 = vrot.slane %v2014_v38, 1  ;;  %v2027_v50 = vrot.slane %v2026_v39, 1  ;;  %v5819_v53 = vpop.f32.mrb[24].mxu0  ;;  %v5821_v54 = vpop.f32.mrb[24].mxu1  ;;  %4817 = vmatpush3.bf16.msra.mxu1 %v5067_v33 }
 0x2c6   : > { %v2987_v55 = vpack.c.bf16 %v1962_v40, %v1962_v40  ;;  %v2989_v60 = vpack.c.bf16 %v1974_v41, %v1974_v41  ;;  %v2010_v14 = vmax.f32 %v2008_v35, %v2009_v44  ;;  %v2022_v42 = vmax.f32 %v2020_v36, %v2021_v45  ;;  %v5823_v43 = vpop.f32.mrb[25].mxu0  ;;  %v5825_v56 = vpop.f32.mrb[25].mxu1 }
 0x2c7   : > { %v2988_v58 = vpack.c.bf16 %v1968_v47, %v1968_v47  ;;  %v2990_v59 = vpack.c.bf16 %v1980_v48, %v1980_v48  ;;  %v2016_v61 = vmax.f32 %v2014_v38, %v2015_v49  ;;  %v2028_v51 = vmax.f32 %v2026_v39, %v2027_v50  ;;  %v5827_v57 = vpop.f32.mrb[26].mxu0  ;;  %v5829_v62 = vpop.f32.mrb[26].mxu1 }
 0x2c8   : > { %v3378_v3 = vunpack.c.l.b16 %v2987_v55  ;;  %v3380_v4 = vunpack.c.l.b16 %v2989_v60  ;;  %v2995_v8 = vpack.c.bf16 %v2010_v14, %v2010_v14  ;;  %v2997_v9 = vpack.c.bf16 %v2022_v42, %v2022_v42  ;;  %v5837_v10 = vpop.f32.mrb[27].mxu0  ;;  %v5839_v11 = vpop.f32.mrb[27].mxu1  ;;  %v5069_v60 = vld [vmem:[%s6986_s9 + $0x48] sm:$0xff]  }
 0x2c9   : > { %v3379_v16 = vunpack.c.l.b16 %v2988_v58  ;;  %v3381_v17 = vunpack.c.l.b16 %v2990_v59  ;;  %v2996_v21 = vpack.c.bf16 %v2016_v61, %v2016_v61  ;;  %v2998_v22 = vpack.c.bf16 %v2028_v51, %v2028_v51  ;;  %4818 = vmatprep.subr.bf16.mxu1 %v5069_v60 }
 0x2ca   : > { %v3386_v27 = vunpack.c.l.b16 %v2995_v8  ;;  %v3388_v28 = vunpack.c.l.b16 %v2997_v9  ;;  %v1422_v29 = vadd.f32 %v5803_v63, %v5783_v18  ;;  %v1535_v30 = vadd.f32 %v5805_v0, %v5785_v20 }
 0x2cb   : > { %v3387_v34 = vunpack.c.l.b16 %v2996_v21  ;;  %v3389_v35 = vunpack.c.l.b16 %v2998_v22  ;;  %v1424_v36 = vadd.f32 %v5807_v5, %v5787_v23  ;;  %v1537_v19 = vadd.f32 %v5809_v7, %v5789_v24 }
 0x2cc   : > { %v5853_v37 = vsel %vm2911_vm2, %v3386_v27, %v3378_v3  ;;  %v5856_v63 = vsel %vm2911_vm2, %v3388_v28, %v3380_v4  ;;  %v1845_v38 = vmax.f32 %v1422_v29, 0.0  ;;  %v1847_v0 = vmax.f32 %v1535_v30, 0.0  ;;  %v5073_v28 = vld [vmem:[%s6986_s9 + $0x50] sm:$0xff]  }
 0x2cd   : > { %v5859_v39 = vsel %vm2911_vm2, %v3387_v34, %v3379_v16  ;;  %v5862_v40 = vsel %vm2911_vm2, %v3389_v35, %v3381_v17  ;;  %v1846_v41 = vmax.f32 %v1424_v36, 0.0  ;;  %v1848_v5 = vmax.f32 %v1537_v19, 0.0  ;;  %v5864_v44 = vpop.f32.mrb[28].mxu0  ;;  %v5866_v7 = vpop.f32.mrb[28].mxu1  ;;  %v5075_v35 = vld [vmem:[%s6986_s9 + $0x10] sm:$0xff]  }
 0x2ce   : > { %v2053_v45 = vrot.slane %v1845_v38, 4  ;;  %v2065_v47 = vrot.slane %v1847_v0, 4  ;;  %v1426_v48 = vadd.f32 %v5811_v12, %v5783_v18  ;;  %v1539_v49 = vadd.f32 %v5813_v13, %v5785_v20  ;;  %v5872_v50 = vpop.f32.mrb[29].mxu0  ;;  %v5874_v55 = vpop.f32.mrb[29].mxu1  ;;  %v5071_v13 = vld [vmem:[%s6986_s9 + $0x8] sm:$0xff]  }
 0x2cf   : > { %v2059_v14 = vrot.slane %v1846_v41, 4  ;;  %v2071_v42 = vrot.slane %v1848_v5, 4  ;;  %v1428_v58 = vadd.f32 %v5815_v25, %v5787_v23  ;;  %v1541_v59 = vadd.f32 %v5817_v26, %v5789_v24  ;;  %v5883_v12 = vpop.f32.mrb[30].mxu0  ;;  %v5885_v61 = vpop.f32.mrb[30].mxu1  ;;  %4819 = vmatpush3.bf16.msra.mxu1 %v5071_v13 }
 0x2d0   : > { %v2054_v51 = vmax.f32 %v1845_v38, %v2053_v45  ;;  %v2066_v1 = vmax.f32 %v1847_v0, %v2065_v47  ;;  %v1853_v2 = vmax.f32 %v1426_v48, 0.0  ;;  %v1855_v3 = vmax.f32 %v1539_v49, 0.0  ;;  %v5890_v4 = vpop.f32.mrb[31].mxu0  ;;  %v5892_v8 = vpop.f32.mrb[31].mxu1  ;;  %4820 = vmatprep.subr.bf16.mxu1 %v5073_v28 }
 0x2d1   : > { %v2060_v25 = vmax.f32 %v1846_v41, %v2059_v14  ;;  %v2072_v9 = vmax.f32 %v1848_v5, %v2071_v42  ;;  %v1854_v26 = vmax.f32 %v1428_v58, 0.0  ;;  %v1856_v16 = vmax.f32 %v1541_v59, 0.0 }
 0x2d2   : > { %v2055_v17 = vrot.slane %v2054_v51, 2  ;;  %v2067_v21 = vrot.slane %v2066_v1, 2  ;;  %v2101_v22 = vrot.slane %v1853_v2, 4  ;;  %v2113_v27 = vrot.slane %v1855_v3, 4 }
 0x2d3   : > { %v2061_v29 = vrot.slane %v2060_v25, 2  ;;  %v2073_v30 = vrot.slane %v2072_v9, 2  ;;  %v2107_v33 = vrot.slane %v1854_v26, 4  ;;  %v2119_v34 = vrot.slane %v1856_v16, 4  ;;  %4821 = vmatpush3.bf16.msra.mxu1 %v5075_v35 }
 0x2d4   : > { %v2056_v36 = vmax.f32 %v2054_v51, %v2055_v17  ;;  %v2068_v19 = vmax.f32 %v2066_v1, %v2067_v21  ;;  %v2102_v38 = vmax.f32 %v1853_v2, %v2101_v22  ;;  %v2114_v0 = vmax.f32 %v1855_v3, %v2113_v27 }
 0x2d5   : > { %v2062_v41 = vmax.f32 %v2060_v25, %v2061_v29  ;;  %v2074_v5 = vmax.f32 %v2072_v9, %v2073_v30  ;;  %v2108_v45 = vmax.f32 %v1854_v26, %v2107_v33  ;;  %v2120_v47 = vmax.f32 %v1856_v16, %v2119_v34  ;;  %v5900_v48 = vpop.f32.mrb[32].mxu0  ;;  %v5902_v49 = vpop.f32.mrb[32].mxu1 }
 0x2d6   : > { %v2057_v60 = vrot.slane %v2056_v36, 1  ;;  %v2069_v14 = vrot.slane %v2068_v19, 1  ;;  %v2103_v42 = vrot.slane %v2102_v38, 2  ;;  %v2115_v58 = vrot.slane %v2114_v0, 2  ;;  %v5904_v59 = vpop.f32.mrb[33].mxu0  ;;  %v5906_v13 = vpop.f32.mrb[33].mxu1 }
 0x2d7   : > { %v2063_v51 = vrot.slane %v2062_v41, 1  ;;  %v2075_v1 = vrot.slane %v2074_v5, 1  ;;  %v2109_v2 = vrot.slane %v2108_v45, 2  ;;  %v2121_v3 = vrot.slane %v2120_v47, 2  ;;  %v5908_v25 = vpop.f32.mrb[34].mxu0  ;;  %v5910_v9 = vpop.f32.mrb[34].mxu1 }
 0x2d8   : > { %v2058_v26 = vmax.f32 %v2056_v36, %v2057_v60  ;;  %v2070_v16 = vmax.f32 %v2068_v19, %v2069_v14  ;;  %v2104_v17 = vmax.f32 %v2102_v38, %v2103_v42  ;;  %v2116_v21 = vmax.f32 %v2114_v0, %v2115_v58  ;;  %v5912_v22 = vpop.f32.mrb[35].mxu0  ;;  %v5914_v27 = vpop.f32.mrb[35].mxu1 }
 0x2d9   : > { %v2064_v28 = vmax.f32 %v2062_v41, %v2063_v51  ;;  %v2076_v29 = vmax.f32 %v2074_v5, %v2075_v1  ;;  %v2110_v30 = vmax.f32 %v2108_v45, %v2109_v2  ;;  %v2122_v33 = vmax.f32 %v2120_v47, %v2121_v3 }
 0x2da   : > { %v3003_v34 = vpack.c.bf16 %v2058_v26, %v2058_v26  ;;  %v3005_v35 = vpack.c.bf16 %v2070_v16, %v2070_v16  ;;  %v2105_v15 = vrot.slane %v2104_v17, 1  ;;  %v2117_v6 = vrot.slane %v2116_v21, 1 }
 0x2db   : > { %v3004_v32 = vpack.c.bf16 %v2064_v28, %v2064_v28  ;;  %v3006_v52 = vpack.c.bf16 %v2076_v29, %v2076_v29  ;;  %v2111_v31 = vrot.slane %v2110_v30, 1  ;;  %v2123_v46 = vrot.slane %v2122_v33, 1 }
 0x2dc   : > { %v3394_v36 = vunpack.c.l.b16 %v3003_v34  ;;  %v3396_v19 = vunpack.c.l.b16 %v3005_v35  ;;  %v2106_v38 = vmax.f32 %v2104_v17, %v2105_v15  ;;  %v2118_v0 = vmax.f32 %v2116_v21, %v2117_v6 }
 0x2dd   : > { %v3395_v60 = vunpack.c.l.b16 %v3004_v32  ;;  %v3397_v14 = vunpack.c.l.b16 %v3006_v52  ;;  %v2112_v42 = vmax.f32 %v2110_v30, %v2111_v31  ;;  %v2124_v58 = vmax.f32 %v2122_v33, %v2123_v46  ;;  %v5916_v41 = vpop.f32.mrb[36].mxu0  ;;  %v5918_v5 = vpop.f32.mrb[36].mxu1 }
 0x2de   : > { %v3507_v45 = vsel %vm2913_vm3, %v3394_v36, %v5853_v37  ;;  %v3521_v47 = vsel %vm2913_vm3, %v3396_v19, %v5856_v63  ;;  %v3011_v51 = vpack.c.bf16 %v2106_v38, %v2106_v38  ;;  %v3013_v1 = vpack.c.bf16 %v2118_v0, %v2118_v0  ;;  %v5924_v2 = vpop.f32.mrb[37].mxu0  ;;  %v5926_v15 = vpop.f32.mrb[37].mxu1 }
 0x2df   : > { %v3514_v52 = vsel %vm2913_vm3, %v3395_v60, %v5859_v39  ;;  %v3528_v46 = vsel %vm2913_vm3, %v3397_v14, %v5862_v40  ;;  %v3012_v6 = vpack.c.bf16 %v2112_v42, %v2112_v42  ;;  %v3014_v31 = vpack.c.bf16 %v2124_v58, %v2124_v58  ;;  %v5932_v32 = vpop.f32.mrb[38].mxu0  ;;  %v5934_v37 = vpop.f32.mrb[38].mxu1  ;;  %v5077_v40 = vld [vmem:[%s6986_s9 + $0x58] sm:$0xff]   ;;  %v5081_v42 = vld [vmem:[%s6986_s9 + $0x60] sm:$0xff]  }
 0x2e0   : > { %v3402_v3 = vunpack.c.l.b16 %v3011_v51  ;;  %v3404_v63 = vunpack.c.l.b16 %v3013_v1  ;;  %v1432_v26 = vadd.f32 %v5819_v53, %v5783_v18  ;;  %v1545_v16 = vadd.f32 %v5821_v54, %v5785_v20  ;;  %v5940_v17 = vpop.f32.mrb[39].mxu0  ;;  %v5942_v39 = vpop.f32.mrb[39].mxu1  ;;  %v5079_v53 = vld [vmem:[%s6986_s9 + $0x18] sm:$0xff]   ;;  %4822 = vmatprep.subr.bf16.mxu1 %v5077_v40 }
 0x2e1   : > { %v3403_v21 = vunpack.c.l.b16 %v3012_v6  ;;  %v3405_v28 = vunpack.c.l.b16 %v3014_v31  ;;  %v1434_v29 = vadd.f32 %v5823_v43, %v5787_v23  ;;  %v1547_v30 = vadd.f32 %v5825_v56, %v5789_v24  ;;  %4823 = vmatpush3.bf16.msra.mxu1 %v5079_v53 }
 0x2e2   : > { %v5955_v54 = vsel %vm2915_vm4, %v3402_v3, %v3507_v45  ;;  %v5958_v33 = vsel %vm2915_vm4, %v3404_v63, %v3521_v47  ;;  %v1861_v34 = vmax.f32 %v1432_v26, 0.0  ;;  %v1863_v35 = vmax.f32 %v1545_v16, 0.0  ;;  %4824 = vmatprep.subr.bf16.mxu1 %v5081_v42 }
 0x2e3   : > { %v5961_v36 = vsel %vm2915_vm4, %v3403_v21, %v3514_v52  ;;  %v5964_v43 = vsel %vm2915_vm4, %v3405_v28, %v3528_v46  ;;  %v1862_v56 = vmax.f32 %v1434_v29, 0.0  ;;  %v1864_v19 = vmax.f32 %v1547_v30, 0.0 }
 0x2e4   : > { %7023 = vst [vmem:[#allocation15_spill] sm:$0xff] %v5961_v36  ;;  %7024 = vst [vmem:[#allocation16_spill] sm:$0xff] %v5964_v43  ;;  %v2149_v38 = vrot.slane %v1861_v34, 4  ;;  %v2161_v0 = vrot.slane %v1863_v35, 4  ;;  %v1436_v60 = vadd.f32 %v5827_v57, %v5783_v18  ;;  %v1549_v14 = vadd.f32 %v5829_v62, %v5785_v20  ;;  %v5083_v57 = vld [vmem:[%s6986_s9 + $0x20] sm:$0xff]  }
 0x2e5   : > { %v2155_v58 = vrot.slane %v1862_v56, 4  ;;  %v2167_v45 = vrot.slane %v1864_v19, 4  ;;  %v1438_v47 = vadd.f32 %v5837_v10, %v5787_v23  ;;  %v1551_v51 = vadd.f32 %v5839_v11, %v5789_v24  ;;  %v5977_v1 = vpop.f32.mrb[40].mxu0  ;;  %v5979_v52 = vpop.f32.mrb[40].mxu1  ;;  %4825 = vmatpush3.bf16.msra.mxu1 %v5083_v57 }
 0x2e6   : > { %7025 = vst [vmem:[#allocation17_spill] sm:$0xff] %v5977_v1  ;;  %7026 = vst [vmem:[#allocation18_spill] sm:$0xff] %v5979_v52  ;;  %v2150_v62 = vmax.f32 %v1861_v34, %v2149_v38  ;;  %v2162_v46 = vmax.f32 %v1863_v35, %v2161_v0  ;;  %v1869_v6 = vmax.f32 %v1436_v60, 0.0  ;;  %v1871_v31 = vmax.f32 %v1549_v14, 0.0  ;;  %v5984_v3 = vpop.f32.mrb[41].mxu0  ;;  %v5986_v63 = vpop.f32.mrb[41].mxu1 }
 0x2e7   : > { %7027 = vst [vmem:[#allocation19_spill] sm:$0xff] %v5984_v3  ;;  %7028 = vst [vmem:[#allocation20_spill] sm:$0xff] %v5986_v63  ;;  %v2156_v10 = vmax.f32 %v1862_v56, %v2155_v58  ;;  %v2168_v26 = vmax.f32 %v1864_v19, %v2167_v45  ;;  %v1870_v11 = vmax.f32 %v1438_v47, 0.0  ;;  %v1872_v16 = vmax.f32 %v1551_v51, 0.0  ;;  %v5988_v40 = vpop.f32.mrb[42].mxu0  ;;  %v5990_v21 = vpop.f32.mrb[42].mxu1 }
 0x2e8   : > { %7029 = vst [vmem:[#allocation21_spill] sm:$0xff] %v5988_v40  ;;  %7030 = vst [vmem:[#allocation22_spill] sm:$0xff] %v5990_v21  ;;  %v2151_v28 = vrot.slane %v2150_v62, 2  ;;  %v2163_v29 = vrot.slane %v2162_v46, 2  ;;  %v2197_v30 = vrot.slane %v1869_v6, 4  ;;  %v2209_v53 = vrot.slane %v1871_v31, 4 }
 0x2e9   : > { %v5992_v34 = vpop.f32.mrb[43].mxu0  ;;  %v5994_v35 = vpop.f32.mrb[43].mxu1  ;;  %v2157_v38 = vrot.slane %v2156_v10, 2  ;;  %v2169_v0 = vrot.slane %v2168_v26, 2  ;;  %v2203_v60 = vrot.slane %v1870_v11, 4  ;;  %v2215_v56 = vrot.slane %v1872_v16, 4 }
 0x2ea   : > { %7031 = vst [vmem:[#allocation23_spill] sm:$0xff] %v5992_v34  ;;  %7032 = vst [vmem:[#allocation24_spill] sm:$0xff] %v5994_v35  ;;  %v2152_v19 = vmax.f32 %v2150_v62, %v2151_v28  ;;  %v2164_v14 = vmax.f32 %v2162_v46, %v2163_v29  ;;  %v2198_v42 = vmax.f32 %v1869_v6, %v2197_v30 }
 0x2eb   : > { %v2210_v58 = vmax.f32 %v1871_v31, %v2209_v53  ;;  %v2158_v45 = vmax.f32 %v2156_v10, %v2157_v38  ;;  %v2170_v47 = vmax.f32 %v2168_v26, %v2169_v0  ;;  %v2204_v51 = vmax.f32 %v1870_v11, %v2203_v60 }
 0x2ec   : > { %v2216_v57 = vmax.f32 %v1872_v16, %v2215_v56  ;;  %v2153_v43 = vrot.slane %v2152_v19, 1  ;;  %v2165_v36 = vrot.slane %v2164_v14, 1  ;;  %v2199_v21 = vrot.slane %v2198_v42, 2 }
 0x2ed   : > { %v2211_v40 = vrot.slane %v2210_v58, 2  ;;  %v2159_v63 = vrot.slane %v2158_v45, 1  ;;  %v2171_v34 = vrot.slane %v2170_v47, 1  ;;  %v2205_v3 = vrot.slane %v2204_v51, 2  ;;  %v5996_v52 = vpop.f32.mrb[44].mxu0  ;;  %v5998_v1 = vpop.f32.mrb[44].mxu1 }
 0x2ee   : > { %v2217_v35 = vrot.slane %v2216_v57, 2  ;;  %v2154_v62 = vmax.f32 %v2152_v19, %v2153_v43  ;;  %v2166_v46 = vmax.f32 %v2164_v14, %v2165_v36  ;;  %v2200_v6 = vmax.f32 %v2198_v42, %v2199_v21  ;;  %v6000_v10 = vpop.f32.mrb[45].mxu0  ;;  %v6002_v26 = vpop.f32.mrb[45].mxu1 }
 0x2ef   : > { %v2212_v31 = vmax.f32 %v2210_v58, %v2211_v40  ;;  %v2160_v11 = vmax.f32 %v2158_v45, %v2159_v63  ;;  %v2172_v16 = vmax.f32 %v2170_v47, %v2171_v34  ;;  %v2206_v28 = vmax.f32 %v2204_v51, %v2205_v3  ;;  %v6004_v30 = vpop.f32.mrb[46].mxu0  ;;  %v6006_v53 = vpop.f32.mrb[46].mxu1 }
 0x2f0   : > { %v2218_v29 = vmax.f32 %v2216_v57, %v2217_v35  ;;  %v3019_v38 = vpack.c.bf16 %v2154_v62, %v2154_v62  ;;  %v3021_v0 = vpack.c.bf16 %v2166_v46, %v2166_v46  ;;  %v2201_v60 = vrot.slane %v2200_v6, 1  ;;  %v6008_v43 = vpop.f32.mrb[47].mxu0  ;;  %v6010_v36 = vpop.f32.mrb[47].mxu1 }
 0x2f1   : > { %v2213_v56 = vrot.slane %v2212_v31, 1  ;;  %v3020_v40 = vpack.c.bf16 %v2160_v11, %v2160_v11  ;;  %v3022_v21 = vpack.c.bf16 %v2172_v16, %v2172_v16  ;;  %v2207_v19 = vrot.slane %v2206_v28, 1  ;;  %v5085_v11 = vld [vmem:[%s6986_s9 + $0x68] sm:$0xff]  }
 0x2f2   : > { %v2219_v14 = vrot.slane %v2218_v29, 1  ;;  %v3410_v63 = vunpack.c.l.b16 %v3019_v38  ;;  %v3412_v34 = vunpack.c.l.b16 %v3021_v0  ;;  %v2202_v3 = vmax.f32 %v2200_v6, %v2201_v60  ;;  %4826 = vmatprep.subr.bf16.mxu1 %v5085_v11 }
 0x2f3   : > { %v2214_v35 = vmax.f32 %v2212_v31, %v2213_v56  ;;  %v6012_v42 = vunpack.c.l.b16 %v3020_v40  ;;  %v6014_v58 = vunpack.c.l.b16 %v3022_v21  ;;  %v2208_v45 = vmax.f32 %v2206_v28, %v2207_v19 }
 0x2f4   : > { %v2220_v47 = vmax.f32 %v2218_v29, %v2219_v14  ;;  %v3509_v51 = vsel %vm2917_vm5, %v3410_v63, %v5955_v54  ;;  %v3523_v57 = vsel %vm2917_vm5, %v3412_v34, %v5958_v33  ;;  %v3027_v62 = vpack.c.bf16 %v2202_v3, %v2202_v3  ;;  %v5087_v33 = vld [vmem:[%s6986_s9 + $0x28] sm:$0xff]  }
 0x2f5   : > { %7033 = vst [vmem:[#allocation25_spill] sm:$0xff] %v6012_v42  ;;  %7034 = vst [vmem:[#allocation26_spill] sm:$0xff] %v6014_v58  ;;  %v3029_v46 = vpack.c.bf16 %v2214_v35, %v2214_v35  ;;  %v3028_v6 = vpack.c.bf16 %v2208_v45, %v2208_v45  ;;  %v1442_v16 = vadd.f32 %v5864_v44, %v5783_v18  ;;  %v6027_v29 = vpop.f32.mrb[48].mxu0  ;;  %v6029_v54 = vpop.f32.mrb[48].mxu1  ;;  %4827 = vmatpush3.bf16.msra.mxu1 %v5087_v33 }
 0x2f6   : > { %v3030_v31 = vpack.c.bf16 %v2220_v47, %v2220_v47  ;;  %v1555_v28 = vadd.f32 %v5866_v7, %v5785_v20  ;;  %7035 = vst [vmem:[#allocation27_spill] sm:$0xff] %v6027_v29  ;;  %7036 = vst [vmem:[#allocation28_spill] sm:$0xff] %v6029_v54  ;;  %v3418_v38 = vunpack.c.l.b16 %v3027_v62  ;;  %v1444_v60 = vadd.f32 %v5872_v50, %v5787_v23  ;;  %v6038_v44 = vpop.f32.mrb[49].mxu0  ;;  %v6040_v40 = vpop.f32.mrb[49].mxu1  ;;  %v5089_v62 = vld [vmem:[%s6986_s9 + $0x70] sm:$0xff]  }
 0x2f7   : > { %v3420_v0 = vunpack.c.l.b16 %v3029_v46  ;;  %v1557_v56 = vadd.f32 %v5874_v55, %v5789_v24  ;;  %7037 = vst [vmem:[#allocation29_spill] sm:$0xff] %v6038_v44  ;;  %7038 = vst [vmem:[#allocation30_spill] sm:$0xff] %v6040_v40  ;;  %v6042_v7 = vunpack.c.l.b16 %v3028_v6  ;;  %v1877_v19 = vmax.f32 %v1442_v16, 0.0  ;;  %v6046_v63 = vpop.f32.mrb[50].mxu0  ;;  %v6048_v34 = vpop.f32.mrb[50].mxu1  ;;  %4828 = vmatprep.subr.bf16.mxu1 %v5089_v62 }
 0x2f8   : > { %v6044_v21 = vunpack.c.l.b16 %v3030_v31  ;;  %v1879_v14 = vmax.f32 %v1555_v28, 0.0  ;;  %7041 = vst [vmem:[#allocation33_spill] sm:$0xff] %v6046_v63  ;;  %7042 = vst [vmem:[#allocation34_spill] sm:$0xff] %v6048_v34  ;;  %v6051_v50 = vsel %vm2919_vm6, %v3418_v38, %v3509_v51  ;;  %v1878_v3 = vmax.f32 %v1444_v60, 0.0  ;;  %v6056_v45 = vpop.f32.mrb[51].mxu0  ;;  %v6058_v47 = vpop.f32.mrb[51].mxu1 }
 0x2f9   : > { %7039 = vst [vmem:[#allocation31_spill] sm:$0xff] %v6042_v7  ;;  %v6054_v55 = vsel %vm2919_vm6, %v3420_v0, %v3523_v57  ;;  %v1880_v35 = vmax.f32 %v1557_v56, 0.0  ;;  %7044 = vst [vmem:[#allocation36_spill] sm:$0xff] %v6056_v45  ;;  %v2245_v46 = vrot.slane %v1877_v19, 4  ;;  %v1446_v6 = vadd.f32 %v5883_v12, %v5783_v18  ;;  %v5091_v57 = vld [vmem:[%s6986_s9 + $0x30] sm:$0xff]  }
 0x2fa   : > { %7040 = vst [vmem:[#allocation32_spill] sm:$0xff] %v6044_v21  ;;  %7043 = vst [vmem:[#allocation35_spill] sm:$0xff] %v6054_v55  ;;  %v2257_v11 = vrot.slane %v1879_v14, 4  ;;  %v1559_v51 = vadd.f32 %v5885_v61, %v5785_v20  ;;  %v2251_v31 = vrot.slane %v1878_v3, 4  ;;  %v1448_v28 = vadd.f32 %v5890_v4, %v5787_v23  ;;  %4829 = vmatpush3.bf16.msra.mxu1 %v5091_v57 }
 0x2fb   : > { %7045 = vst [vmem:[#allocation37_spill] sm:$0xff] %v6058_v47  ;;  %v2263_v16 = vrot.slane %v1880_v35, 4  ;;  %v1561_v33 = vadd.f32 %v5892_v8, %v5789_v24  ;;  %v2246_v38 = vmax.f32 %v1877_v19, %v2245_v46  ;;  %v1885_v60 = vmax.f32 %v1446_v6, 0.0 }
 0x2fc   : > { %v2258_v0 = vmax.f32 %v1879_v14, %v2257_v11  ;;  %v1887_v12 = vmax.f32 %v1559_v51, 0.0  ;;  %v2252_v56 = vmax.f32 %v1878_v3, %v2251_v31  ;;  %v1886_v55 = vmax.f32 %v1448_v28, 0.0 }
 0x2fd   : > { %v2264_v61 = vmax.f32 %v1880_v35, %v2263_v16  ;;  %v1888_v21 = vmax.f32 %v1561_v33, 0.0  ;;  %v2247_v58 = vrot.slane %v2246_v38, 2  ;;  %v2293_v42 = vrot.slane %v1885_v60, 4  ;;  %v6074_v45 = vpop.f32.mrb[52].mxu0  ;;  %v6076_v4 = vpop.f32.mrb[52].mxu1 }
 0x2fe   : > { %v2259_v7 = vrot.slane %v2258_v0, 2  ;;  %v2305_v47 = vrot.slane %v1887_v12, 4  ;;  %7046 = vst [vmem:[#allocation38_spill] sm:$0xff] %v6074_v45  ;;  %7047 = vst [vmem:[#allocation39_spill] sm:$0xff] %v6076_v4  ;;  %v2253_v40 = vrot.slane %v2252_v56, 2  ;;  %v2299_v62 = vrot.slane %v1886_v55, 4 }
 0x2ff   : > { %v2265_v8 = vrot.slane %v2264_v61, 2  ;;  %v2311_v19 = vrot.slane %v1888_v21, 4  ;;  %v6078_v14 = vpop.f32.mrb[53].mxu0  ;;  %v6080_v46 = vpop.f32.mrb[53].mxu1  ;;  %v2248_v3 = vmax.f32 %v2246_v38, %v2247_v58  ;;  %v2294_v11 = vmax.f32 %v1885_v60, %v2293_v42 }
 0x300   : > { %7048 = vst [vmem:[#allocation40_spill] sm:$0xff] %v6078_v14  ;;  %7049 = vst [vmem:[#allocation41_spill] sm:$0xff] %v6080_v46  ;;  %v2260_v35 = vmax.f32 %v2258_v0, %v2259_v7  ;;  %v2306_v6 = vmax.f32 %v1887_v12, %v2305_v47  ;;  %v6082_v51 = vpop.f32.mrb[54].mxu0  ;;  %v6084_v57 = vpop.f32.mrb[54].mxu1  ;;  %v2254_v31 = vmax.f32 %v2252_v56, %v2253_v40 }
 0x301   : > { %7050 = vst [vmem:[#allocation42_spill] sm:$0xff] %v6082_v51  ;;  %7051 = vst [vmem:[#allocation43_spill] sm:$0xff] %v6084_v57  ;;  %v2266_v16 = vmax.f32 %v2264_v61, %v2265_v8  ;;  %v2300_v28 = vmax.f32 %v1886_v55, %v2299_v62  ;;  %v2312_v33 = vmax.f32 %v1888_v21, %v2311_v19  ;;  %v6086_v4 = vpop.f32.mrb[55].mxu0  ;;  %v6088_v45 = vpop.f32.mrb[55].mxu1  ;;  %v2249_v44 = vrot.slane %v2248_v3, 1 }
 0x302   : > { %7052 = vst [vmem:[#allocation44_spill] sm:$0xff] %v6086_v4  ;;  %7053 = vst [vmem:[#allocation45_spill] sm:$0xff] %v6088_v45  ;;  %v2261_v14 = vrot.slane %v2260_v35, 1  ;;  %v2295_v34 = vrot.slane %v2294_v11, 2  ;;  %v2307_v46 = vrot.slane %v2306_v6, 2  ;;  %v2255_v58 = vrot.slane %v2254_v31, 1 }
 0x303   : > { %v2267_v7 = vrot.slane %v2266_v16, 1  ;;  %v2301_v42 = vrot.slane %v2300_v28, 2  ;;  %v2313_v47 = vrot.slane %v2312_v33, 2  ;;  %v2250_v38 = vmax.f32 %v2248_v3, %v2249_v44 }
 0x304   : > { %v2262_v0 = vmax.f32 %v2260_v35, %v2261_v14  ;;  %v2296_v60 = vmax.f32 %v2294_v11, %v2295_v34  ;;  %v2308_v40 = vmax.f32 %v2306_v6, %v2307_v46  ;;  %v2256_v12 = vmax.f32 %v2254_v31, %v2255_v58 }
 0x305   : > { %v2268_v55 = vmax.f32 %v2266_v16, %v2267_v7  ;;  %v2302_v21 = vmax.f32 %v2300_v28, %v2301_v42  ;;  %v2314_v56 = vmax.f32 %v2312_v33, %v2313_v47  ;;  %v3035_v61 = vpack.c.bf16 %v2250_v38, %v2250_v38  ;;  %v6090_v45 = vpop.f32.mrb[56].mxu0  ;;  %v6120_v47 = vpop.f32.mrb[56].mxu1 }
 0x306   : > { %v3037_v8 = vpack.c.bf16 %v2262_v0, %v2262_v0  ;;  %v2297_v62 = vrot.slane %v2296_v60, 1  ;;  %v2309_v19 = vrot.slane %v2308_v40, 1  ;;  %v3036_v4 = vpack.c.bf16 %v2256_v12, %v2256_v12  ;;  %v6129_v12 = vpop.f32.mrb[57].mxu1 }
 0x307   : > { %v3038_v57 = vpack.c.bf16 %v2268_v55, %v2268_v55  ;;  %v2303_v51 = vrot.slane %v2302_v21, 1  ;;  %v2315_v63 = vrot.slane %v2314_v56, 1  ;;  %v3426_v54 = vunpack.c.l.b16 %v3035_v61 }
 0x308   : > { %v6092_v29 = vunpack.c.l.b16 %v3037_v8  ;;  %v2298_v44 = vmax.f32 %v2296_v60, %v2297_v62  ;;  %v2310_v34 = vmax.f32 %v2308_v40, %v2309_v19  ;;  %v6094_v14 = vunpack.c.l.b16 %v3036_v4  ;;  %v6127_v40 = vpop.f32.mrb[57].mxu0  ;;  %v6137_v62 = vpop.f32.mrb[58].mxu1 }
 0x309   : > { %v6096_v46 = vunpack.c.l.b16 %v3038_v57  ;;  %v2304_v3 = vmax.f32 %v2302_v21, %v2303_v51  ;;  %v2316_v35 = vmax.f32 %v2314_v56, %v2315_v63  ;;  %v3511_v11 = vsel %vm2921_vm7, %v3426_v54, %v6051_v50  ;;  %v5093_v63 = vld [vmem:[%s6986_s9 + $0x78] sm:$0xff]   ;;  %v6135_v8 = vpop.f32.mrb[58].mxu0 }
 0x30a   : > { %7054 = vst [vmem:[#allocation46_spill] sm:$0xff] %v6092_v29  ;;  %v3043_v6 = vpack.c.bf16 %v2298_v44, %v2298_v44  ;;  %v3045_v31 = vpack.c.bf16 %v2310_v34, %v2310_v34  ;;  %v1452_v16 = vadd.f32 %v5900_v48, %v5783_v18  ;;  %v1565_v58 = vadd.f32 %v5902_v49, %v5785_v20  ;;  %v5095_v48 = vld [vmem:[%s6986_s9 + $0x38] sm:$0xff]  }
 0x30b   : > { %7055 = vst [vmem:[#allocation47_spill] sm:$0xff] %v6096_v46  ;;  %v3044_v28 = vpack.c.bf16 %v2304_v3, %v2304_v3  ;;  %v3046_v33 = vpack.c.bf16 %v2316_v35, %v2316_v35  ;;  %v1454_v4 = vadd.f32 %v5904_v59, %v5787_v23  ;;  %v1567_v50 = vadd.f32 %v5906_v13, %v5789_v24  ;;  %v6141_v3 = vpop.f32.mrb[59].mxu0  ;;  %v6143_v35 = vpop.f32.mrb[59].mxu1 }
 0x30c   : > { %v3434_v51 = vunpack.c.l.b16 %v3043_v6  ;;  %v6109_v57 = vunpack.c.l.b16 %v3045_v31  ;;  %v1893_v54 = vmax.f32 %v1452_v16, 0.0  ;;  %v1895_v59 = vmax.f32 %v1565_v58, 0.0  ;;  %4830 = vmatprep.subr.bf16.mxu1 %v5093_v63 }
 0x30d   : > { %v6116_v7 = vunpack.c.l.b16 %v3044_v28  ;;  %v6118_v49 = vunpack.c.l.b16 %v3046_v33  ;;  %v1894_v42 = vmax.f32 %v1454_v4, 0.0  ;;  %v1896_v60 = vmax.f32 %v1567_v50, 0.0  ;;  %4831 = vmatpush3.bf16.msra.mxu1 %v5095_v48 }
 0x30e   : > { %7056 = vst [vmem:[#allocation48_spill] sm:$0xff] %v6109_v57  ;;  %v6123_v38 = vsel %vm2923_vm9, %v3434_v51, %v3511_v11  ;;  %v2341_v0 = vrot.slane %v1893_v54, 4  ;;  %v1456_v13 = vadd.f32 %v5908_v25, %v5783_v18  ;;  %v2353_v55 = vrot.slane %v1895_v59, 4 }
 0x30f   : > { %7057 = vst [vmem:[#allocation49_spill] sm:$0xff] %v6118_v49  ;;  %7058 = vst [vmem:[#allocation50_spill] sm:$0xff] %v6123_v38  ;;  %v2347_v21 = vrot.slane %v1894_v42, 4  ;;  %v1569_v56 = vadd.f32 %v5910_v9, %v5785_v20  ;;  %v1458_v61 = vadd.f32 %v5912_v22, %v5787_v23  ;;  %v2359_v44 = vrot.slane %v1896_v60, 4 }
 0x310   : > { %v2342_v19 = vmax.f32 %v1893_v54, %v2341_v0  ;;  %v1901_v25 = vmax.f32 %v1456_v13, 0.0  ;;  %v1571_v34 = vadd.f32 %v5914_v27, %v5789_v24  ;;  %v2354_v11 = vmax.f32 %v1895_v59, %v2353_v55 }
 0x311   : > { %v2348_v6 = vmax.f32 %v1894_v42, %v2347_v21  ;;  %v1903_v9 = vmax.f32 %v1569_v56, 0.0  ;;  %v1902_v31 = vmax.f32 %v1458_v61, 0.0  ;;  %v2360_v22 = vmax.f32 %v1896_v60, %v2359_v44 }
 0x312   : > { %v2343_v16 = vrot.slane %v2342_v19, 2  ;;  %v2389_v28 = vrot.slane %v1901_v25, 4  ;;  %v1904_v33 = vmax.f32 %v1571_v34, 0.0  ;;  %v2355_v58 = vrot.slane %v2354_v11, 2 }
 0x313   : > { %v2349_v4 = vrot.slane %v2348_v6, 2  ;;  %v2401_v63 = vrot.slane %v1903_v9, 4  ;;  %v2395_v51 = vrot.slane %v1902_v31, 4  ;;  %v2361_v50 = vrot.slane %v2360_v22, 2 }
 0x314   : > { %v2344_v54 = vmax.f32 %v2342_v19, %v2343_v16  ;;  %v2390_v48 = vmax.f32 %v1901_v25, %v2389_v28  ;;  %v2407_v27 = vrot.slane %v1904_v33, 4  ;;  %v2356_v0 = vmax.f32 %v2354_v11, %v2355_v58 }
 0x315   : > { %v2350_v13 = vmax.f32 %v2348_v6, %v2349_v4  ;;  %v2402_v57 = vmax.f32 %v1903_v9, %v2401_v63  ;;  %v2396_v29 = vmax.f32 %v1902_v31, %v2395_v51  ;;  %v2362_v42 = vmax.f32 %v2360_v22, %v2361_v50 }
 0x316   : > { %v2345_v59 = vrot.slane %v2344_v54, 1  ;;  %v2391_v55 = vrot.slane %v2390_v48, 2  ;;  %v2408_v21 = vmax.f32 %v1904_v33, %v2407_v27  ;;  %v2357_v56 = vrot.slane %v2356_v0, 1 }
 0x317   : > { %v2351_v60 = vrot.slane %v2350_v13, 1  ;;  %v2403_v61 = vrot.slane %v2402_v57, 2  ;;  %v2397_v44 = vrot.slane %v2396_v29, 2  ;;  %v2363_v49 = vrot.slane %v2362_v42, 1 }
 0x318   : > { %v2346_v34 = vmax.f32 %v2344_v54, %v2345_v59  ;;  %v2392_v38 = vmax.f32 %v2390_v48, %v2391_v55  ;;  %v2409_v46 = vrot.slane %v2408_v21, 2  ;;  %v2358_v19 = vmax.f32 %v2356_v0, %v2357_v56 }
 0x319   : > { %v2352_v16 = vmax.f32 %v2350_v13, %v2351_v60  ;;  %v2404_v25 = vmax.f32 %v2402_v57, %v2403_v61  ;;  %v2398_v28 = vmax.f32 %v2396_v29, %v2397_v44  ;;  %v2364_v6 = vmax.f32 %v2362_v42, %v2363_v49 }
 0x31a   : > { %v3051_v11 = vpack.c.bf16 %v2346_v34, %v2346_v34  ;;  %v2393_v9 = vrot.slane %v2392_v38, 1  ;;  %v2410_v31 = vmax.f32 %v2408_v21, %v2409_v46  ;;  %v3053_v58 = vpack.c.bf16 %v2358_v19, %v2358_v19 }
 0x31b   : > { %v3052_v22 = vpack.c.bf16 %v2352_v16, %v2352_v16  ;;  %v2405_v4 = vrot.slane %v2404_v25, 1  ;;  %v2399_v33 = vrot.slane %v2398_v28, 1  ;;  %v3054_v51 = vpack.c.bf16 %v2364_v6, %v2364_v6 }
 0x31c   : > { %v3442_v63 = vunpack.c.l.b16 %v3051_v11  ;;  %v2394_v50 = vmax.f32 %v2392_v38, %v2393_v9  ;;  %v2411_v27 = vrot.slane %v2410_v31, 1  ;;  %v3444_v54 = vunpack.c.l.b16 %v3053_v58 }
 0x31d   : > { %v3443_v59 = vunpack.c.l.b16 %v3052_v22  ;;  %v2406_v48 = vmax.f32 %v2404_v25, %v2405_v4  ;;  %v2400_v55 = vmax.f32 %v2398_v28, %v2399_v33  ;;  %v3445_v0 = vunpack.c.l.b16 %v3054_v51 }
 0x31e   : > { %v3059_v13 = vpack.c.bf16 %v2394_v50, %v2394_v50  ;;  %v2412_v57 = vmax.f32 %v2410_v31, %v2411_v27  ;;  %v1462_v29 = vadd.f32 %v5916_v41, %v5783_v18  ;;  %v1575_v42 = vadd.f32 %v5918_v5, %v5785_v20 }
 0x31f   : > { %v3061_v49 = vpack.c.bf16 %v2406_v48, %v2406_v48  ;;  %v3060_v46 = vpack.c.bf16 %v2400_v55, %v2400_v55  ;;  %v1464_v21 = vadd.f32 %v5924_v2, %v5787_v23  ;;  %v1577_v61 = vadd.f32 %v5926_v15, %v5789_v24 }
 0x320   : > { %v3450_v38 = vunpack.c.l.b16 %v3059_v13  ;;  %v3062_v56 = vpack.c.bf16 %v2412_v57, %v2412_v57  ;;  %v1909_v60 = vmax.f32 %v1462_v29, 0.0  ;;  %v1911_v19 = vmax.f32 %v1575_v42, 0.0 }
 0x321   : > { %v3452_v44 = vunpack.c.l.b16 %v3061_v49  ;;  %v3451_v34 = vunpack.c.l.b16 %v3060_v46  ;;  %v1910_v16 = vmax.f32 %v1464_v21, 0.0  ;;  %v1912_v11 = vmax.f32 %v1577_v61, 0.0 }
 0x322   : > { %v6154_v41 = vsel %vm2911_vm2, %v3450_v38, %v3442_v63  ;;  %v3453_v25 = vunpack.c.l.b16 %v3062_v56  ;;  %v2437_v28 = vrot.slane %v1909_v60, 4  ;;  %v2449_v6 = vrot.slane %v1911_v19, 4 }
 0x323   : > { %v6157_v5 = vsel %vm2911_vm2, %v3452_v44, %v3444_v54  ;;  %v6160_v2 = vsel %vm2911_vm2, %v3451_v34, %v3443_v59  ;;  %v2443_v9 = vrot.slane %v1910_v16, 4  ;;  %v2455_v58 = vrot.slane %v1912_v11, 4 }
 0x324   : > { %v6163_v15 = vsel %vm2911_vm2, %v3453_v25, %v3445_v0  ;;  %v2438_v31 = vmax.f32 %v1909_v60, %v2437_v28  ;;  %v1466_v22 = vadd.f32 %v5932_v32, %v5783_v18  ;;  %v2450_v4 = vmax.f32 %v1911_v19, %v2449_v6 }
 0x325   : > { %v2444_v33 = vmax.f32 %v1910_v16, %v2443_v9  ;;  %v1579_v63 = vadd.f32 %v5934_v37, %v5785_v20  ;;  %v1468_v51 = vadd.f32 %v5940_v17, %v5787_v23  ;;  %v2456_v27 = vmax.f32 %v1912_v11, %v2455_v58  ;;  %v6173_v11 = vpop.f32.mrb[60].mxu0 }
 0x326   : > { %v2439_v50 = vrot.slane %v2438_v31, 2  ;;  %v1917_v54 = vmax.f32 %v1466_v22, 0.0  ;;  %v1581_v59 = vadd.f32 %v5942_v39, %v5789_v24  ;;  %v2451_v48 = vrot.slane %v2450_v4, 2  ;;  %7059 = vst [vmem:[#allocation51_spill] sm:$0xff] %v6173_v11 }
 0x327   : > { %v2445_v55 = vrot.slane %v2444_v33, 2  ;;  %v1919_v0 = vmax.f32 %v1579_v63, 0.0  ;;  %v1918_v13 = vmax.f32 %v1468_v51, 0.0  ;;  %v2457_v32 = vrot.slane %v2456_v27, 2 }
 0x328   : > { %v2440_v57 = vmax.f32 %v2438_v31, %v2439_v50  ;;  %v2485_v29 = vrot.slane %v1917_v54, 4  ;;  %v1920_v49 = vmax.f32 %v1581_v59, 0.0  ;;  %v2452_v46 = vmax.f32 %v2450_v4, %v2451_v48 }
 0x329   : > { %v2446_v42 = vmax.f32 %v2444_v33, %v2445_v55  ;;  %v2497_v37 = vrot.slane %v1919_v0, 4  ;;  %v2491_v21 = vrot.slane %v1918_v13, 4  ;;  %v2458_v17 = vmax.f32 %v2456_v27, %v2457_v32 }
 0x32a   : > { %v2441_v38 = vrot.slane %v2440_v57, 1  ;;  %v2486_v56 = vmax.f32 %v1917_v54, %v2485_v29  ;;  %v2503_v60 = vrot.slane %v1920_v49, 4  ;;  %v2453_v61 = vrot.slane %v2452_v46, 1 }
 0x32b   : > { %v2447_v44 = vrot.slane %v2446_v42, 1  ;;  %v2498_v34 = vmax.f32 %v1919_v0, %v2497_v37  ;;  %v2492_v39 = vmax.f32 %v1918_v13, %v2491_v21  ;;  %v2459_v16 = vrot.slane %v2458_v17, 1 }
 0x32c   : > { %v2442_v19 = vmax.f32 %v2440_v57, %v2441_v38  ;;  %v2487_v25 = vrot.slane %v2486_v56, 2  ;;  %v2504_v28 = vmax.f32 %v1920_v49, %v2503_v60  ;;  %v2454_v6 = vmax.f32 %v2452_v46, %v2453_v61 }
 0x32d   : > { %v2448_v9 = vmax.f32 %v2446_v42, %v2447_v44  ;;  %v2499_v31 = vrot.slane %v2498_v34, 2  ;;  %v2493_v58 = vrot.slane %v2492_v39, 2  ;;  %v2460_v4 = vmax.f32 %v2458_v17, %v2459_v16  ;;  %v7061_v16 = vld [vmem:[#allocation18_spill] sm:$0xff] }
 0x32e   : > { %v3067_v22 = vpack.c.bf16 %v2442_v19, %v2442_v19  ;;  %v2488_v33 = vmax.f32 %v2486_v56, %v2487_v25  ;;  %v2505_v63 = vrot.slane %v2504_v28, 2  ;;  %v3069_v51 = vpack.c.bf16 %v2454_v6, %v2454_v6 }
 0x32f   : > { %v3068_v50 = vpack.c.bf16 %v2448_v9, %v2448_v9  ;;  %v2500_v27 = vmax.f32 %v2498_v34, %v2499_v31  ;;  %v2494_v54 = vmax.f32 %v2492_v39, %v2493_v58  ;;  %v3070_v48 = vpack.c.bf16 %v2460_v4, %v2460_v4  ;;  %v7060_v34 = vld [vmem:[#allocation17_spill] sm:$0xff]  ;;  %v7063_v31 = vld [vmem:[#allocation20_spill] sm:$0xff] }
 0x330   : > { %v3458_v59 = vunpack.c.l.b16 %v3067_v22  ;;  %v2489_v55 = vrot.slane %v2488_v33, 1  ;;  %v2506_v0 = vmax.f32 %v2504_v28, %v2505_v63  ;;  %v3460_v13 = vunpack.c.l.b16 %v3069_v51 }
 0x331   : > { %v3459_v57 = vunpack.c.l.b16 %v3068_v50  ;;  %v2501_v32 = vrot.slane %v2500_v27, 1  ;;  %v2495_v29 = vrot.slane %v2494_v54, 1  ;;  %v3461_v46 = vunpack.c.l.b16 %v3070_v48 }
 0x332   : > { %v3563_v49 = vsel %vm2913_vm3, %v3458_v59, %v6154_v41  ;;  %v2490_v42 = vmax.f32 %v2488_v33, %v2489_v55  ;;  %v2507_v37 = vrot.slane %v2506_v0, 1  ;;  %v3577_v21 = vsel %vm2913_vm3, %v3460_v13, %v6157_v5  ;;  %v7062_v5 = vld [vmem:[#allocation19_spill] sm:$0xff] }
 0x333   : > { %v3570_v38 = vsel %vm2913_vm3, %v3459_v57, %v6160_v2  ;;  %v2502_v17 = vmax.f32 %v2500_v27, %v2501_v32  ;;  %v2496_v56 = vmax.f32 %v2494_v54, %v2495_v29  ;;  %v3584_v60 = vsel %vm2913_vm3, %v3461_v46, %v6163_v15  ;;  %v7064_v32 = vld [vmem:[#allocation21_spill] sm:$0xff] }
 0x334   : > { %v3075_v61 = vpack.c.bf16 %v2490_v42, %v2490_v42  ;;  %v2508_v44 = vmax.f32 %v2506_v0, %v2507_v37  ;;  %v1472_v39 = vadd.f32 %v7060_v34, %v5783_v18  ;;  %v1585_v25 = vadd.f32 %v7061_v16, %v5785_v20  ;;  %v7065_v42 = vld [vmem:[#allocation22_spill] sm:$0xff] }
 0x335   : > { %v3077_v41 = vpack.c.bf16 %v2502_v17, %v2502_v17  ;;  %v3076_v19 = vpack.c.bf16 %v2496_v56, %v2496_v56  ;;  %v1474_v28 = vadd.f32 %v7062_v5, %v5787_v23  ;;  %v1587_v58 = vadd.f32 %v7063_v31, %v5789_v24 }
 0x336   : > { %v3466_v6 = vunpack.c.l.b16 %v3075_v61  ;;  %v3078_v2 = vpack.c.bf16 %v2508_v44, %v2508_v44  ;;  %v1925_v9 = vmax.f32 %v1472_v39, 0.0  ;;  %v1927_v4 = vmax.f32 %v1585_v25, 0.0  ;;  %v6213_v39 = vpop.f32.mrb[61].mxu0 }
 0x337   : > { %v3468_v15 = vunpack.c.l.b16 %v3077_v41  ;;  %v3467_v22 = vunpack.c.l.b16 %v3076_v19  ;;  %v1926_v33 = vmax.f32 %v1474_v28, 0.0  ;;  %v1928_v27 = vmax.f32 %v1587_v58, 0.0  ;;  %7069 = vst [vmem:[#allocation18_spill] sm:$0xff] %v6213_v39  ;;  %v6217_v28 = vpop.f32.mrb[62].mxu0 }
 0x338   : > { %v6192_v63 = vsel %vm2915_vm4, %v3466_v6, %v3563_v49  ;;  %v3469_v51 = vunpack.c.l.b16 %v3078_v2  ;;  %v2533_v50 = vrot.slane %v1925_v9, 4  ;;  %v2545_v48 = vrot.slane %v1927_v4, 4  ;;  %7071 = vst [vmem:[#allocation20_spill] sm:$0xff] %v6217_v28 }
 0x339   : > { %v6195_v54 = vsel %vm2915_vm4, %v3468_v15, %v3577_v21  ;;  %v6198_v59 = vsel %vm2915_vm4, %v3467_v22, %v3570_v38  ;;  %v2539_v55 = vrot.slane %v1926_v33, 4  ;;  %v2551_v57 = vrot.slane %v1928_v27, 4  ;;  %v7066_v21 = vld [vmem:[#allocation23_spill] sm:$0xff]  ;;  %v6209_v38 = vpop.f32.mrb[60].mxu1  ;;  %v6221_v15 = vpop.f32.mrb[63].mxu0 }
 0x33a   : > { %v6201_v0 = vsel %vm2915_vm4, %v3469_v51, %v3584_v60  ;;  %v2534_v13 = vmax.f32 %v1925_v9, %v2533_v50  ;;  %v1476_v29 = vadd.f32 %v7064_v32, %v5783_v18  ;;  %v2546_v49 = vmax.f32 %v1927_v4, %v2545_v48  ;;  %7067 = vst [vmem:[#allocation17_spill] sm:$0xff] %v6209_v38  ;;  %v7068_v60 = vld [vmem:[#allocation24_spill] sm:$0xff]  ;;  %v6215_v41 = vpop.f32.mrb[61].mxu1 }
 0x33b   : > { %v2540_v46 = vmax.f32 %v1926_v33, %v2539_v55  ;;  %v1589_v37 = vadd.f32 %v7065_v42, %v5785_v20  ;;  %v1478_v17 = vadd.f32 %v7066_v21, %v5787_v23  ;;  %v2552_v61 = vmax.f32 %v1928_v27, %v2551_v57  ;;  %7070 = vst [vmem:[#allocation19_spill] sm:$0xff] %v6215_v41  ;;  %v6219_v6 = vpop.f32.mrb[62].mxu1  ;;  %v6225_v27 = vpop.f32.mrb[64].mxu0 }
 0x33c   : > { %v2535_v56 = vrot.slane %v2534_v13, 2  ;;  %v1933_v44 = vmax.f32 %v1476_v29, 0.0  ;;  %v1591_v34 = vadd.f32 %v7068_v60, %v5789_v24  ;;  %v2547_v19 = vrot.slane %v2546_v49, 2  ;;  %7072 = vst [vmem:[#allocation21_spill] sm:$0xff] %v6219_v6  ;;  %7073 = vst [vmem:[#allocation22_spill] sm:$0xff] %v6221_v15  ;;  %v6223_v22 = vpop.f32.mrb[63].mxu1 }
 0x33d   : > { %v2541_v16 = vrot.slane %v2540_v46, 2  ;;  %v1935_v25 = vmax.f32 %v1589_v37, 0.0  ;;  %v1934_v5 = vmax.f32 %v1478_v17, 0.0  ;;  %v2553_v9 = vrot.slane %v2552_v61, 2  ;;  %7074 = vst [vmem:[#allocation23_spill] sm:$0xff] %v6223_v22  ;;  %7075 = vst [vmem:[#allocation24_spill] sm:$0xff] %v6225_v27 }
 0x33e   : > { %v2536_v2 = vmax.f32 %v2534_v13, %v2535_v56  ;;  %v2581_v31 = vrot.slane %v1933_v44, 4  ;;  %v1936_v58 = vmax.f32 %v1591_v34, 0.0  ;;  %v2548_v4 = vmax.f32 %v2546_v49, %v2547_v19 }
 0x33f   : > { %v2542_v33 = vmax.f32 %v2540_v46, %v2541_v16  ;;  %v2593_v51 = vrot.slane %v1935_v25, 4  ;;  %v2587_v50 = vrot.slane %v1934_v5, 4  ;;  %v2554_v55 = vmax.f32 %v2552_v61, %v2553_v9 }
 0x340   : > { %v2537_v48 = vrot.slane %v2536_v2, 1  ;;  %v2582_v57 = vmax.f32 %v1933_v44, %v2581_v31  ;;  %v2599_v32 = vrot.slane %v1936_v58, 4  ;;  %v2549_v29 = vrot.slane %v2548_v4, 1 }
 0x341   : > { %v2543_v42 = vrot.slane %v2542_v33, 1  ;;  %v2594_v13 = vmax.f32 %v1935_v25, %v2593_v51  ;;  %v2588_v37 = vmax.f32 %v1934_v5, %v2587_v50  ;;  %v2555_v17 = vrot.slane %v2554_v55, 1 }
 0x342   : > { %v2538_v21 = vmax.f32 %v2536_v2, %v2537_v48  ;;  %v2583_v56 = vrot.slane %v2582_v57, 2  ;;  %v2600_v60 = vmax.f32 %v1936_v58, %v2599_v32  ;;  %v2550_v34 = vmax.f32 %v2548_v4, %v2549_v29 }
 0x343   : > { %v2544_v22 = vmax.f32 %v2542_v33, %v2543_v42  ;;  %v2595_v49 = vrot.slane %v2594_v13, 2  ;;  %v2589_v46 = vrot.slane %v2588_v37, 2  ;;  %v2556_v16 = vmax.f32 %v2554_v55, %v2555_v17 }
 0x344   : > { %v3083_v19 = vpack.c.bf16 %v2538_v21, %v2538_v21  ;;  %v2584_v15 = vmax.f32 %v2582_v57, %v2583_v56  ;;  %v2601_v27 = vrot.slane %v2600_v60, 2  ;;  %v3085_v6 = vpack.c.bf16 %v2550_v34, %v2550_v34  ;;  %v5070_v34 = vld [vmem:[%s6986_s9 + $0xc8] sm:$0xff]  }
 0x345   : > { %v3084_v61 = vpack.c.bf16 %v2544_v22, %v2544_v22  ;;  %v2596_v44 = vmax.f32 %v2594_v13, %v2595_v49  ;;  %v2590_v9 = vmax.f32 %v2588_v37, %v2589_v46  ;;  %v3086_v28 = vpack.c.bf16 %v2556_v16, %v2556_v16  ;;  %v7078_v13 = vld [vmem:[#allocation13_spill] sm:$0xff] }
 0x346   : > { %v3474_v31 = vunpack.c.l.b16 %v3083_v19  ;;  %v2585_v25 = vrot.slane %v2584_v15, 1  ;;  %v2602_v5 = vmax.f32 %v2600_v60, %v2601_v27  ;;  %v3476_v2 = vunpack.c.l.b16 %v3085_v6  ;;  %v7077_v27 = vld [vmem:[#allocation10_spill] sm:$0xff] }
 0x347   : > { %v6227_v51 = vunpack.c.l.b16 %v3084_v61  ;;  %v2597_v58 = vrot.slane %v2596_v44, 1  ;;  %v2591_v4 = vrot.slane %v2590_v9, 1  ;;  %v6231_v50 = vunpack.c.l.b16 %v3086_v28  ;;  %v7080_v28 = vld [vmem:[#allocation14_spill] sm:$0xff] }
 0x348   : > { %v3565_v33 = vsel %vm2917_vm5, %v3474_v31, %v6192_v63  ;;  %v2586_v48 = vmax.f32 %v2584_v15, %v2585_v25  ;;  %v2603_v55 = vrot.slane %v2602_v5, 1  ;;  %v3579_v22 = vsel %vm2917_vm5, %v3476_v2, %v6195_v54  ;;  %v7079_v63 = vld [vmem:[#allocation11_spill] sm:$0xff]  ;;  %v5068_v54 = vld [vmem:[%s6986_s9 + $0x80] sm:$0xff]  }
 0x349   : > { %v2598_v57 = vmax.f32 %v2596_v44, %v2597_v58  ;;  %v2592_v32 = vmax.f32 %v2590_v9, %v2591_v4  ;;  %v7076_v6 = vmov 0.0   ;;  %v2924_v37 = vsel %vm2923_vm9, %v7078_v13, %v7077_v27 }
 0x34a   : > { %v3091_v29 = vpack.c.bf16 %v2586_v48, %v2586_v48  ;;  %v2604_v42 = vmax.f32 %v2602_v5, %v2603_v55  ;;  %4966 = vmatprep.mubr.msk.bf16.mxu0 %vm5220_vm10, %v7076_v6  ;;  %v2931_v15 = vsel %vm2923_vm9, %v7080_v28, %v7079_v63  ;;  %v1482_v60 = vadd.f32 %v5996_v52, %v5783_v18  ;;  %v6276_v48 = vpop.f32.mrb[64].mxu1 }
 0x34b   : > { %v3093_v21 = vpack.c.bf16 %v2598_v57, %v2598_v57  ;;  %v3092_v17 = vpack.c.bf16 %v2592_v32, %v2592_v32  ;;  %v2932_v56 = vpack.c.b16 %v2931_v15, %v2924_v37  ;;  %v1595_v19 = vadd.f32 %v5998_v1, %v5785_v20  ;;  %7081 = vst [vmem:[#allocation10_spill] sm:$0xff] %v6276_v48 }
 0x34c   : > { %v3482_v49 = vunpack.c.l.b16 %v3091_v29  ;;  %v3094_v46 = vpack.c.bf16 %v2604_v42, %v2604_v42  ;;  %v1484_v16 = vadd.f32 %v6000_v10, %v5787_v23  ;;  %v1941_v9 = vmax.f32 %v1482_v60, 0.0  ;;  %v5072_v10 = vld [vmem:[%s6986_s9 + $0x88] sm:$0xff]   ;;  %v6282_v29 = vpop.f32.mrb[65].mxu0  ;;  %v6284_v42 = vpop.f32.mrb[65].mxu1 }
 0x34d   : > { %v3484_v61 = vunpack.c.l.b16 %v3093_v21  ;;  %v6255_v44 = vunpack.c.l.b16 %v3092_v17  ;;  %4967 = vmatmul.mubr.msk.bf16.vlgmr.msra.gmra.mrb[80].mxu0 %vm616_vm1, %v2932_v56  ;;  %v1597_v52 = vadd.f32 %v6002_v26, %v5789_v24  ;;  %v1943_v5 = vmax.f32 %v1595_v19, 0.0  ;;  %7082 = vst [vmem:[#allocation13_spill] sm:$0xff] %v6282_v29  ;;  %7083 = vst [vmem:[#allocation11_spill] sm:$0xff] %v6284_v42  ;;  %v6288_v37 = vpop.f32.mrb[66].mxu0 }
 0x34e   : > { %v6261_v31 = vsel %vm2919_vm6, %v3482_v49, %v3565_v33  ;;  %v6263_v25 = vunpack.c.l.b16 %v3094_v46  ;;  %4839 = vmatpush3.bf16.msra.mxu0 %v5068_v54  ;;  %v1942_v1 = vmax.f32 %v1484_v16, 0.0  ;;  %v2629_v58 = vrot.slane %v1941_v9, 4  ;;  %v5074_v33 = vld [vmem:[%s6986_s9 + $0xd0] sm:$0xff]   ;;  %7084 = vst [vmem:[#allocation14_spill] sm:$0xff] %v6288_v37  ;;  %v6298_v17 = vpop.f32.mrb[67].mxu0 }
 0x34f   : > { %v6269_v2 = vsel %vm2919_vm6, %v3484_v61, %v3579_v22  ;;  %4840 = vmatprep.subr.bf16.mxu0 %v5070_v34  ;;  %v1944_v4 = vmax.f32 %v1597_v52, 0.0  ;;  %v1486_v26 = vadd.f32 %v6004_v30, %v5783_v18  ;;  %v2641_v55 = vrot.slane %v1943_v5, 4  ;;  %7086 = vst [vmem:[#allocation53_spill] sm:$0xff] %v6298_v17  ;;  %v6302_v19 = vpop.f32.mrb[68].mxu0 }
 0x350   : > { %v2635_v57 = vrot.slane %v1942_v1, 4  ;;  %v1599_v32 = vadd.f32 %v6006_v53, %v5785_v20  ;;  %v1488_v22 = vadd.f32 %v6008_v43, %v5787_v23  ;;  %v2630_v27 = vmax.f32 %v1941_v9, %v2629_v58  ;;  %v5076_v23 = vld [vmem:[%s6986_s9 + $0x90] sm:$0xff]   ;;  %7088 = vst [vmem:[#allocation55_spill] sm:$0xff] %v6302_v19 }
 0x351   : > { %v2647_v18 = vrot.slane %v1944_v4, 4  ;;  %v1949_v30 = vmax.f32 %v1486_v26, 0.0  ;;  %v1601_v13 = vadd.f32 %v6010_v36, %v5789_v24  ;;  %v2642_v63 = vmax.f32 %v1943_v5, %v2641_v55  ;;  %v5078_v24 = vld [vmem:[%s6986_s9 + $0xd8] sm:$0xff]   ;;  %v6296_v36 = vpop.f32.mrb[66].mxu1 }
 0x352   : > { %v2636_v28 = vmax.f32 %v1942_v1, %v2635_v57  ;;  %4841 = vmatpush3.bf16.msra.mxu0 %v5072_v10  ;;  %v1951_v15 = vmax.f32 %v1599_v32, 0.0  ;;  %v1950_v20 = vmax.f32 %v1488_v22, 0.0  ;;  %v2631_v53 = vrot.slane %v2630_v27, 2  ;;  %7085 = vst [vmem:[#allocation52_spill] sm:$0xff] %v6296_v36  ;;  %v6300_v46 = vpop.f32.mrb[67].mxu1  ;;  %v5082_v32 = vld [vmem:[%s6986_s9 + $0xe0] sm:$0xff]  }
 0x353   : > { %v2648_v43 = vmax.f32 %v1944_v4, %v2647_v18  ;;  %v2677_v54 = vrot.slane %v1949_v30, 4  ;;  %v1952_v21 = vmax.f32 %v1601_v13, 0.0  ;;  %4842 = vmatprep.subr.bf16.mxu0 %v5074_v33  ;;  %v2643_v56 = vrot.slane %v2642_v63, 2  ;;  %7087 = vst [vmem:[#allocation54_spill] sm:$0xff] %v6300_v46  ;;  %v5080_v4 = vld [vmem:[%s6986_s9 + $0x98] sm:$0xff]  }
 0x354   : > { %v2637_v60 = vrot.slane %v2636_v28, 2  ;;  %v2689_v34 = vrot.slane %v1951_v15, 4  ;;  %v2683_v49 = vrot.slane %v1950_v20, 4  ;;  %v2632_v16 = vmax.f32 %v2630_v27, %v2631_v53 }
 0x355   : > { %v2649_v61 = vrot.slane %v2648_v43, 2  ;;  %v2678_v9 = vmax.f32 %v1949_v30, %v2677_v54  ;;  %v2695_v52 = vrot.slane %v1952_v21, 4  ;;  %v2644_v5 = vmax.f32 %v2642_v63, %v2643_v56 }
 0x356   : > { %v2638_v1 = vmax.f32 %v2636_v28, %v2637_v60  ;;  %v2690_v10 = vmax.f32 %v1951_v15, %v2689_v34  ;;  %v2684_v58 = vmax.f32 %v1950_v20, %v2683_v49  ;;  %4843 = vmatpush3.bf16.msra.mxu0 %v5076_v23  ;;  %v2633_v26 = vrot.slane %v2632_v16, 1  ;;  %v5086_v34 = vld [vmem:[%s6986_s9 + $0xe8] sm:$0xff]  }
 0x357   : > { %v2650_v33 = vmax.f32 %v2648_v43, %v2649_v61  ;;  %v2679_v55 = vrot.slane %v2678_v9, 2  ;;  %v2696_v57 = vmax.f32 %v1952_v21, %v2695_v52  ;;  %4844 = vmatprep.subr.bf16.mxu0 %v5078_v24  ;;  %v2645_v22 = vrot.slane %v2644_v5, 1  ;;  %v5084_v43 = vld [vmem:[%s6986_s9 + $0xa0] sm:$0xff]  }
 0x358   : > { %v2639_v27 = vrot.slane %v2638_v1, 1  ;;  %v2691_v18 = vrot.slane %v2690_v10, 2  ;;  %v2685_v30 = vrot.slane %v2684_v58, 2  ;;  %v2634_v13 = vmax.f32 %v2632_v16, %v2633_v26 }
 0x359   : > { %v2651_v63 = vrot.slane %v2650_v33, 1  ;;  %v2680_v28 = vmax.f32 %v2678_v9, %v2679_v55  ;;  %v2697_v15 = vrot.slane %v2696_v57, 2  ;;  %v2646_v20 = vmax.f32 %v2644_v5, %v2645_v22  ;;  %v5088_v55 = vld [vmem:[%s6986_s9 + $0xa8] sm:$0xff]  }
 0x35a   : > { %v2640_v23 = vmax.f32 %v2638_v1, %v2639_v27  ;;  %v2692_v53 = vmax.f32 %v2690_v10, %v2691_v18  ;;  %v2686_v54 = vmax.f32 %v2684_v58, %v2685_v30  ;;  %4845 = vmatpush3.bf16.msra.mxu0 %v5080_v4  ;;  %v3099_v21 = vpack.c.bf16 %v2634_v13, %v2634_v13  ;;  %v5090_v18 = vld [vmem:[%s6986_s9 + $0xf0] sm:$0xff]  }
 0x35b   : > { %v2652_v24 = vmax.f32 %v2650_v33, %v2651_v63  ;;  %v2681_v56 = vrot.slane %v2680_v28, 1  ;;  %v2698_v60 = vmax.f32 %v2696_v57, %v2697_v15  ;;  %4846 = vmatprep.subr.bf16.mxu0 %v5082_v32  ;;  %v3101_v49 = vpack.c.bf16 %v2646_v20, %v2646_v20  ;;  %v7090_v63 = vld [vmem:[#allocation12_spill] sm:$0xff] }
 0x35c   : > { %v3100_v16 = vpack.c.bf16 %v2640_v23, %v2640_v23  ;;  %v2693_v61 = vrot.slane %v2692_v53, 1  ;;  %v2687_v9 = vrot.slane %v2686_v54, 1  ;;  %v3490_v52 = vunpack.c.l.b16 %v3099_v21  ;;  %v5153_v21 = vld [vmem:[%s6983_s6] sm:$0xff] }
 0x35d   : > { %v3102_v5 = vpack.c.bf16 %v2652_v24, %v2652_v24  ;;  %v2682_v1 = vmax.f32 %v2680_v28, %v2681_v56  ;;  %v2699_v10 = vrot.slane %v2698_v60, 1  ;;  %v6316_v58 = vunpack.c.l.b16 %v3101_v49 }
 0x35e   : > { %v6318_v4 = vunpack.c.l.b16 %v3100_v16  ;;  %v2694_v26 = vmax.f32 %v2692_v53, %v2693_v61  ;;  %v2688_v33 = vmax.f32 %v2686_v54, %v2687_v9  ;;  %4847 = vmatpush3.bf16.msra.mxu0 %v5084_v43  ;;  %v3567_v57 = vsel %vm2921_vm7, %v3490_v52, %v6261_v31  ;;  %v5094_v9 = vld [vmem:[%s6986_s9 + $0xf8] sm:$0xff]   ;;  %v7092_v52 = vld [vmem:[#allocation27_spill] sm:$0xff] }
 0x35f   : > { %7089 = vst [vmem:[#allocation56_spill] sm:$0xff] %v6316_v58  ;;  %v6325_v32 = vunpack.c.l.b16 %v3102_v5  ;;  %v3107_v22 = vpack.c.bf16 %v2682_v1, %v2682_v1  ;;  %v2700_v27 = vmax.f32 %v2698_v60, %v2699_v10  ;;  %4848 = vmatprep.subr.bf16.mxu0 %v5086_v34  ;;  %v1035_v28 = vsub.s32 4, %v7090_v63  ;;  %v5092_v60 = vld [vmem:[%s6986_s9 + $0xb0] sm:$0xff]  }
 0x360   : > { %v3109_v30 = vpack.c.bf16 %v2694_v26, %v2694_v26  ;;  %v3108_v13 = vpack.c.bf16 %v2688_v33, %v2688_v33  ;;  %v1043_v15 = vsub.s32 6, %v7090_v63  ;;  %v1039_v53 = vsub.s32 5, %v7090_v63  ;;  %v7093_v1 = vld [vmem:[#allocation28_spill] sm:$0xff]  ;;  %v7094_v26 = vld [vmem:[#allocation33_spill] sm:$0xff] }
 0x361   : > { %v3498_v20 = vunpack.c.l.b16 %v3107_v22  ;;  %v3110_v23 = vpack.c.bf16 %v2700_v27, %v2700_v27  ;;  %v1047_v31 = vsub.s32 7, %v7090_v63  ;;  %v6341_v24 = vrot.slane %v5153_v21, %v1035_v28  ;;  %v7096_v22 = vld [vmem:[#allocation29_spill] sm:$0xff] }
 0x362   : > { %v6334_v54 = vunpack.c.l.b16 %v3109_v30  ;;  %v6336_v43 = vunpack.c.l.b16 %v3108_v13  ;;  %v6343_v56 = vrot.slane %v5153_v21, %v1043_v15  ;;  %4849 = vmatpush3.bf16.msra.mxu0 %v5088_v55  ;;  %v6353_v16 = vrot.slane %v5153_v21, %v1039_v53  ;;  %v7095_v55 = vld [vmem:[#allocation34_spill] sm:$0xff]  ;;  %v7098_v13 = vld [vmem:[#allocation36_spill] sm:$0xff]  ;;  %v7099_v28 = vld [vmem:[#allocation37_spill] sm:$0xff] }
 0x363   : > { %v6349_v34 = vsel %vm2923_vm9, %v3498_v20, %v3567_v57  ;;  %v6351_v49 = vunpack.c.l.b16 %v3110_v23  ;;  %v6355_v61 = vrot.slane %v5153_v21, %v1047_v31  ;;  %4850 = vmatprep.subr.bf16.mxu0 %v5090_v18  ;;  %v1638_v5 = vadd.f32 %v7092_v52, %v6341_v24  ;;  %v7097_v18 = vld [vmem:[#allocation30_spill] sm:$0xff]  ;;  %v5096_v20 = vld [vmem:[%s6986_s9 + $0xb8] sm:$0xff]   ;;  %v6379_v23 = vpop.f32.mrb[68].mxu1 }
 0x364   : > { %7091 = vst [vmem:[#allocation12_spill] sm:$0xff] %v6334_v54  ;;  %v1751_v10 = vadd.f32 %v7093_v1, %v6343_v56  ;;  %v1642_v33 = vadd.f32 %v7094_v26, %v6341_v24  ;;  %v1755_v57 = vadd.f32 %v7095_v55, %v6343_v56  ;;  %v1640_v27 = vadd.f32 %v7096_v22, %v6353_v16  ;;  %v6381_v1 = vpop.f32.mrb[69].mxu0  ;;  %v6383_v26 = vpop.f32.mrb[69].mxu1 }
 0x365   : > { %v1753_v30 = vadd.f32 %v7097_v18, %v6355_v61  ;;  %v1644_v63 = vadd.f32 %v7098_v13, %v6353_v16  ;;  %v1757_v15 = vadd.f32 %v7099_v28, %v6355_v61  ;;  %7100 = vst [vmem:[#allocation27_spill] sm:$0xff] %v6379_v23  ;;  %v1833_v53 = vmax.f32 %v1638_v5, 0.0  ;;  %7101 = vst [vmem:[#allocation28_spill] sm:$0xff] %v6381_v1  ;;  %v6385_v28 = vpop.f32.mrb[70].mxu0 }
 0x366   : > { %v1835_v31 = vmax.f32 %v1751_v10, 0.0  ;;  %v1841_v21 = vmax.f32 %v1642_v33, 0.0  ;;  %v1843_v52 = vmax.f32 %v1755_v57, 0.0  ;;  %4851 = vmatpush3.bf16.msra.mxu0 %v5092_v60  ;;  %7102 = vst [vmem:[#allocation33_spill] sm:$0xff] %v6383_v26  ;;  %v1834_v55 = vmax.f32 %v1640_v27, 0.0  ;;  %7103 = vst [vmem:[#allocation34_spill] sm:$0xff] %v6385_v28 }
 0x367   : > { %v1836_v22 = vmax.f32 %v1753_v30, 0.0  ;;  %v1842_v18 = vmax.f32 %v1644_v63, 0.0  ;;  %v1844_v13 = vmax.f32 %v1757_v15, 0.0  ;;  %4852 = vmatprep.subr.bf16.mxu0 %v5094_v9  ;;  %v1981_v19 = vrot.slane %v1833_v53, 4  ;;  %v6387_v60 = vpop.f32.mrb[70].mxu1  ;;  %v6389_v1 = vpop.f32.mrb[71].mxu0 }
 0x368   : > { %v1993_v6 = vrot.slane %v1835_v31, 4  ;;  %v2029_v46 = vrot.slane %v1841_v21, 4  ;;  %v2041_v23 = vrot.slane %v1843_v52, 4  ;;  %v1987_v5 = vrot.slane %v1834_v55, 4  ;;  %7104 = vst [vmem:[#allocation29_spill] sm:$0xff] %v6387_v60  ;;  %7105 = vst [vmem:[#allocation30_spill] sm:$0xff] %v6389_v1 }
 0x369   : > { %v1999_v10 = vrot.slane %v1836_v22, 4  ;;  %v2035_v33 = vrot.slane %v1842_v18, 4  ;;  %v2047_v57 = vrot.slane %v1844_v13, 4  ;;  %v1982_v26 = vmax.f32 %v1833_v53, %v1981_v19  ;;  %v6391_v9 = vpop.f32.mrb[71].mxu1  ;;  %v6393_v15 = vpop.f32.mrb[72].mxu0 }
 0x36a   : > { %v1994_v27 = vmax.f32 %v1835_v31, %v1993_v6  ;;  %v2030_v30 = vmax.f32 %v1841_v21, %v2029_v46  ;;  %v2042_v63 = vmax.f32 %v1843_v52, %v2041_v23  ;;  %4853 = vmatpush3.bf16.msra.mxu0 %v5096_v20  ;;  %7106 = vst [vmem:[#allocation36_spill] sm:$0xff] %v6391_v9  ;;  %7107 = vst [vmem:[#allocation37_spill] sm:$0xff] %v6393_v15 }
 0x36b   : > { %v1988_v28 = vmax.f32 %v1834_v55, %v1987_v5  ;;  %v2000_v17 = vmax.f32 %v1836_v22, %v1999_v10  ;;  %v2036_v36 = vmax.f32 %v1842_v18, %v2035_v33  ;;  %v2048_v37 = vmax.f32 %v1844_v13, %v2047_v57  ;;  %v6395_v55 = vpop.f32.mrb[72].mxu1  ;;  %v6397_v10 = vpop.f32.mrb[73].mxu0 }
 0x36c   : > { %v1983_v42 = vrot.slane %v1982_v26, 2  ;;  %v1995_v29 = vrot.slane %v1994_v27, 2  ;;  %v2031_v48 = vrot.slane %v2030_v30, 2  ;;  %v2043_v41 = vrot.slane %v2042_v63, 2  ;;  %7108 = vst [vmem:[#allocation57_spill] sm:$0xff] %v6395_v55  ;;  %7109 = vst [vmem:[#allocation58_spill] sm:$0xff] %v6397_v10 }
 0x36d   : > { %v1989_v60 = vrot.slane %v1988_v28, 2  ;;  %v2001_v39 = vrot.slane %v2000_v17, 2  ;;  %v2037_v1 = vrot.slane %v2036_v36, 2  ;;  %v2049_v19 = vrot.slane %v2048_v37, 2  ;;  %v6399_v33 = vpop.f32.mrb[73].mxu1 }
 0x36e   : > { %v1984_v6 = vmax.f32 %v1982_v26, %v1983_v42  ;;  %v1996_v46 = vmax.f32 %v1994_v27, %v1995_v29  ;;  %v2032_v23 = vmax.f32 %v2030_v30, %v2031_v48  ;;  %v2044_v20 = vmax.f32 %v2042_v63, %v2043_v41  ;;  %7110 = vst [vmem:[#allocation59_spill] sm:$0xff] %v6399_v33  ;;  %v6401_v48 = vpop.f32.mrb[74].mxu0  ;;  %v6403_v41 = vpop.f32.mrb[74].mxu1 }
 0x36f   : > { %v1990_v53 = vmax.f32 %v1988_v28, %v1989_v60  ;;  %v2002_v31 = vmax.f32 %v2000_v17, %v2001_v39  ;;  %v2038_v21 = vmax.f32 %v2036_v36, %v2037_v1  ;;  %v2050_v52 = vmax.f32 %v2048_v37, %v2049_v19  ;;  %7111 = vst [vmem:[#allocation60_spill] sm:$0xff] %v6401_v48  ;;  %v6405_v1 = vpop.f32.mrb[75].mxu0  ;;  %v6407_v26 = vpop.f32.mrb[75].mxu1  ;;  %v5097_v28 = vld [vmem:[%s6986_s9 + $0x140] sm:$0xff]  }
 0x370   : > { %v1985_v22 = vrot.slane %v1984_v6, 1  ;;  %v1997_v18 = vrot.slane %v1996_v46, 1  ;;  %v2033_v13 = vrot.slane %v2032_v23, 1  ;;  %v2045_v5 = vrot.slane %v2044_v20, 1  ;;  %7112 = vst [vmem:[#allocation61_spill] sm:$0xff] %v6403_v41  ;;  %7113 = vst [vmem:[#allocation62_spill] sm:$0xff] %v6405_v1  ;;  %4860 = vmatprep.subr.bf16.mxu1 %v5097_v28 }
 0x371   : > { %v1991_v57 = vrot.slane %v1990_v53, 1  ;;  %v2003_v15 = vrot.slane %v2002_v31, 1  ;;  %v2039_v42 = vrot.slane %v2038_v21, 1  ;;  %v2051_v29 = vrot.slane %v2050_v52, 1  ;;  %7114 = vst [vmem:[#allocation63_spill] sm:$0xff] %v6407_v26  ;;  %v5098_v60 = vld [vmem:[%s6986_s9 + $0x1c0] sm:$0xff]  }
 0x372   : > { %v1986_v39 = vmax.f32 %v1984_v6, %v1985_v22  ;;  %v1998_v37 = vmax.f32 %v1996_v46, %v1997_v18  ;;  %v2034_v36 = vmax.f32 %v2032_v23, %v2033_v13  ;;  %v2046_v17 = vmax.f32 %v2044_v20, %v2045_v5  ;;  %4882 = vmatprep.subr.bf16.mxu0 %v5098_v60  ;;  %v7120_v60 = vld [vmem:[#allocation42_spill] sm:$0xff] }
 0x373   : > { %v1992_v27 = vmax.f32 %v1990_v53, %v1991_v57  ;;  %v2004_v30 = vmax.f32 %v2002_v31, %v2003_v15  ;;  %v2040_v63 = vmax.f32 %v2038_v21, %v2039_v42  ;;  %v2052_v19 = vmax.f32 %v2050_v52, %v2051_v29  ;;  %v6415_v31 = vpop.f32.mrb[76].mxu0  ;;  %v7116_v57 = vld [vmem:[#allocation38_spill] sm:$0xff]  ;;  %v7117_v29 = vld [vmem:[#allocation39_spill] sm:$0xff] }
 0x374   : > { %v2991_v6 = vpack.c.bf16 %v1986_v39, %v1986_v39  ;;  %v2993_v46 = vpack.c.bf16 %v1998_v37, %v1998_v37  ;;  %v2999_v23 = vpack.c.bf16 %v2034_v36, %v2034_v36  ;;  %v3001_v20 = vpack.c.bf16 %v2046_v17, %v2046_v17  ;;  %7115 = vst [vmem:[#allocation64_spill] sm:$0xff] %v6415_v31  ;;  %v7118_v17 = vld [vmem:[#allocation40_spill] sm:$0xff] }
 0x375   : > { %v2992_v22 = vpack.c.bf16 %v1992_v27, %v1992_v27  ;;  %v2994_v18 = vpack.c.bf16 %v2004_v30, %v2004_v30  ;;  %v3000_v13 = vpack.c.bf16 %v2040_v63, %v2040_v63  ;;  %v3002_v5 = vpack.c.bf16 %v2052_v19, %v2052_v19  ;;  %v7121_v30 = vld [vmem:[#allocation43_spill] sm:$0xff] }
 0x376   : > { %v3382_v26 = vunpack.c.l.b16 %v2991_v6  ;;  %v3384_v1 = vunpack.c.l.b16 %v2993_v46  ;;  %v3390_v41 = vunpack.c.l.b16 %v2999_v23  ;;  %v3392_v48 = vunpack.c.l.b16 %v3001_v20  ;;  %v7122_v6 = vld [vmem:[#allocation44_spill] sm:$0xff]  ;;  %v7123_v46 = vld [vmem:[#allocation45_spill] sm:$0xff]  ;;  %v6445_v20 = vpop.f32.mrb[76].mxu1 }
 0x377   : > { %v3383_v33 = vunpack.c.l.b16 %v2992_v22  ;;  %v3385_v10 = vunpack.c.l.b16 %v2994_v18  ;;  %v3391_v53 = vunpack.c.l.b16 %v3000_v13  ;;  %v3393_v15 = vunpack.c.l.b16 %v3002_v5  ;;  %7124 = vst [vmem:[#allocation38_spill] sm:$0xff] %v6445_v20 }
 0x378   : > { %v6418_v21 = vsel %vm2911_vm2, %v3390_v41, %v3382_v26  ;;  %v6421_v52 = vsel %vm2911_vm2, %v3392_v48, %v3384_v1  ;;  %v1648_v42 = vadd.f32 %v7116_v57, %v6341_v24  ;;  %v1761_v39 = vadd.f32 %v7117_v29, %v6343_v56  ;;  %v7119_v41 = vld [vmem:[#allocation41_spill] sm:$0xff] }
 0x379   : > { %v6428_v37 = vsel %vm2911_vm2, %v3391_v53, %v3383_v33  ;;  %v6431_v36 = vsel %vm2911_vm2, %v3393_v15, %v3385_v10  ;;  %v1650_v28 = vadd.f32 %v7118_v17, %v6353_v16  ;;  %v1763_v26 = vadd.f32 %v7119_v41, %v6355_v61  ;;  %v6447_v53 = vpop.f32.mrb[77].mxu0  ;;  %v6449_v15 = vpop.f32.mrb[77].mxu1 }
 0x37a   : > { %v1849_v48 = vmax.f32 %v1648_v42, 0.0  ;;  %v1851_v1 = vmax.f32 %v1761_v39, 0.0  ;;  %v1652_v27 = vadd.f32 %v7120_v60, %v6341_v24  ;;  %v1765_v63 = vadd.f32 %v7121_v30, %v6343_v56  ;;  %7125 = vst [vmem:[#allocation39_spill] sm:$0xff] %v6447_v53  ;;  %7126 = vst [vmem:[#allocation40_spill] sm:$0xff] %v6449_v15  ;;  %v6451_v60 = vpop.f32.mrb[78].mxu0  ;;  %v6453_v30 = vpop.f32.mrb[78].mxu1 }
 0x37b   : > { %v1850_v19 = vmax.f32 %v1650_v28, 0.0  ;;  %v1852_v33 = vmax.f32 %v1763_v26, 0.0  ;;  %v1654_v10 = vadd.f32 %v7122_v6, %v6353_v16  ;;  %v1767_v23 = vadd.f32 %v7123_v46, %v6355_v61  ;;  %7127 = vst [vmem:[#allocation41_spill] sm:$0xff] %v6451_v60  ;;  %7128 = vst [vmem:[#allocation42_spill] sm:$0xff] %v6453_v30  ;;  %v6455_v55 = vpop.f32.mrb[79].mxu0 }
 0x37c   : > { %v2077_v22 = vrot.slane %v1849_v48, 4  ;;  %v2089_v18 = vrot.slane %v1851_v1, 4  ;;  %v1857_v13 = vmax.f32 %v1652_v27, 0.0  ;;  %v1859_v5 = vmax.f32 %v1765_v63, 0.0  ;;  %7129 = vst [vmem:[#allocation43_spill] sm:$0xff] %v6455_v55 }
 0x37d   : > { %v2083_v57 = vrot.slane %v1850_v19, 4  ;;  %v2095_v42 = vrot.slane %v1852_v33, 4  ;;  %v1858_v29 = vmax.f32 %v1654_v10, 0.0  ;;  %v1860_v39 = vmax.f32 %v1767_v23, 0.0  ;;  %v6457_v10 = vpop.f32.mrb[79].mxu1 }
 0x37e   : > { %v2078_v17 = vmax.f32 %v1849_v48, %v2077_v22  ;;  %v2090_v28 = vmax.f32 %v1851_v1, %v2089_v18  ;;  %v2125_v41 = vrot.slane %v1857_v13, 4  ;;  %v2137_v26 = vrot.slane %v1859_v5, 4  ;;  %7130 = vst [vmem:[#allocation44_spill] sm:$0xff] %v6457_v10 }
 0x37f   : > { %v2084_v6 = vmax.f32 %v1850_v19, %v2083_v57  ;;  %v2096_v46 = vmax.f32 %v1852_v33, %v2095_v42  ;;  %v2131_v27 = vrot.slane %v1858_v29, 4  ;;  %v2143_v63 = vrot.slane %v1860_v39, 4 }
 0x380   : > { %v2079_v20 = vrot.slane %v2078_v17, 2  ;;  %v2091_v53 = vrot.slane %v2090_v28, 2  ;;  %v2126_v31 = vmax.f32 %v1857_v13, %v2125_v41  ;;  %v2138_v15 = vmax.f32 %v1859_v5, %v2137_v26 }
 0x381   : > { %v2085_v48 = vrot.slane %v2084_v6, 2  ;;  %v2097_v1 = vrot.slane %v2096_v46, 2  ;;  %v2132_v23 = vmax.f32 %v1858_v29, %v2131_v27  ;;  %v2144_v22 = vmax.f32 %v1860_v39, %v2143_v63 }
 0x382   : > { %v2080_v18 = vmax.f32 %v2078_v17, %v2079_v20  ;;  %v2092_v60 = vmax.f32 %v2090_v28, %v2091_v53  ;;  %v2127_v9 = vrot.slane %v2126_v31, 2  ;;  %v2139_v30 = vrot.slane %v2138_v15, 2 }
 0x383   : > { %v2086_v19 = vmax.f32 %v2084_v6, %v2085_v48  ;;  %v2098_v33 = vmax.f32 %v2096_v46, %v2097_v1  ;;  %v2133_v57 = vrot.slane %v2132_v23, 2  ;;  %v2145_v42 = vrot.slane %v2144_v22, 2 }
 0x384   : > { %v2081_v38 = vrot.slane %v2080_v18, 1  ;;  %v2093_v11 = vrot.slane %v2092_v60, 1  ;;  %v2128_v13 = vmax.f32 %v2126_v31, %v2127_v9  ;;  %v2140_v5 = vmax.f32 %v2138_v15, %v2139_v30 }
 0x385   : > { %v2087_v41 = vrot.slane %v2086_v19, 1  ;;  %v2099_v26 = vrot.slane %v2098_v33, 1  ;;  %v2134_v55 = vmax.f32 %v2132_v23, %v2133_v57  ;;  %v2146_v10 = vmax.f32 %v2144_v22, %v2145_v42 }
 0x386   : > { %v2082_v54 = vmax.f32 %v2080_v18, %v2081_v38  ;;  %v2094_v58 = vmax.f32 %v2092_v60, %v2093_v11  ;;  %v2129_v29 = vrot.slane %v2128_v13, 1  ;;  %v2141_v39 = vrot.slane %v2140_v5, 1 }
 0x387   : > { %v2088_v20 = vmax.f32 %v2086_v19, %v2087_v41  ;;  %v2100_v53 = vmax.f32 %v2098_v33, %v2099_v26  ;;  %v2135_v17 = vrot.slane %v2134_v55, 1  ;;  %v2147_v28 = vrot.slane %v2146_v10, 1 }
 0x388   : > { %v3007_v6 = vpack.c.bf16 %v2082_v54, %v2082_v54  ;;  %v3009_v46 = vpack.c.bf16 %v2094_v58, %v2094_v58  ;;  %v2130_v27 = vmax.f32 %v2128_v13, %v2129_v29  ;;  %v2142_v63 = vmax.f32 %v2140_v5, %v2141_v39 }
 0x389   : > { %v3008_v48 = vpack.c.bf16 %v2088_v20, %v2088_v20  ;;  %v3010_v1 = vpack.c.bf16 %v2100_v53, %v2100_v53  ;;  %v2136_v9 = vmax.f32 %v2134_v55, %v2135_v17  ;;  %v2148_v31 = vmax.f32 %v2146_v10, %v2147_v28 }
 0x38a   : > { %v3398_v15 = vunpack.c.l.b16 %v3007_v6  ;;  %v3400_v30 = vunpack.c.l.b16 %v3009_v46  ;;  %v3015_v23 = vpack.c.bf16 %v2130_v27, %v2130_v27  ;;  %v3017_v22 = vpack.c.bf16 %v2142_v63, %v2142_v63 }
 0x38b   : > { %v3399_v38 = vunpack.c.l.b16 %v3008_v48  ;;  %v3401_v11 = vunpack.c.l.b16 %v3010_v1  ;;  %v3016_v60 = vpack.c.bf16 %v2136_v9, %v2136_v9  ;;  %v3018_v18 = vpack.c.bf16 %v2148_v31, %v2148_v31 }
 0x38c   : > { %v3535_v19 = vsel %vm2913_vm3, %v3398_v15, %v6418_v21  ;;  %v3549_v58 = vsel %vm2913_vm3, %v3400_v30, %v6421_v52  ;;  %v3406_v54 = vunpack.c.l.b16 %v3015_v23  ;;  %v3408_v33 = vunpack.c.l.b16 %v3017_v22 }
 0x38d   : > { %v3542_v55 = vsel %vm2913_vm3, %v3399_v38, %v6428_v37  ;;  %v3556_v10 = vsel %vm2913_vm3, %v3401_v11, %v6431_v36  ;;  %v3407_v57 = vunpack.c.l.b16 %v3016_v60  ;;  %v3409_v42 = vunpack.c.l.b16 %v3018_v18 }
 0x38e   : > { %v6468_v13 = vsel %vm2915_vm4, %v3406_v54, %v3535_v19  ;;  %v6471_v5 = vsel %vm2915_vm4, %v3408_v33, %v3549_v58  ;;  %v1658_v21 = vadd.f32 %v6090_v45, %v6341_v24  ;;  %v1771_v52 = vadd.f32 %v6120_v47, %v6343_v56 }
 0x38f   : > { %v6478_v41 = vsel %vm2915_vm4, %v3407_v57, %v3542_v55  ;;  %v6481_v37 = vsel %vm2915_vm4, %v3409_v42, %v3556_v10  ;;  %v1660_v36 = vadd.f32 %v6127_v40, %v6353_v16  ;;  %v1773_v26 = vadd.f32 %v6129_v12, %v6355_v61 }
 0x390   : > { %v1865_v29 = vmax.f32 %v1658_v21, 0.0  ;;  %v1867_v39 = vmax.f32 %v1771_v52, 0.0  ;;  %v1662_v45 = vadd.f32 %v6135_v8, %v6341_v24  ;;  %v1775_v47 = vadd.f32 %v6137_v62, %v6343_v56 }
 0x391   : > { %v1866_v20 = vmax.f32 %v1660_v36, 0.0  ;;  %v1868_v53 = vmax.f32 %v1773_v26, 0.0  ;;  %v1664_v17 = vadd.f32 %v6141_v3, %v6353_v16  ;;  %v1777_v28 = vadd.f32 %v6143_v35, %v6355_v61 }
 0x392   : > { %v2173_v40 = vrot.slane %v1865_v29, 4  ;;  %v2185_v6 = vrot.slane %v1867_v39, 4  ;;  %v1873_v46 = vmax.f32 %v1662_v45, 0.0  ;;  %v1875_v12 = vmax.f32 %v1775_v47, 0.0 }
 0x393   : > { %v2179_v27 = vrot.slane %v1866_v20, 4  ;;  %v2191_v63 = vrot.slane %v1868_v53, 4  ;;  %v1874_v48 = vmax.f32 %v1664_v17, 0.0  ;;  %v1876_v1 = vmax.f32 %v1777_v28, 0.0 }
 0x394   : > { %v2174_v8 = vmax.f32 %v1865_v29, %v2173_v40  ;;  %v2186_v9 = vmax.f32 %v1867_v39, %v2185_v6  ;;  %v2221_v31 = vrot.slane %v1873_v46, 4  ;;  %v2233_v62 = vrot.slane %v1875_v12, 4 }
 0x395   : > { %v2180_v15 = vmax.f32 %v1866_v20, %v2179_v27  ;;  %v2192_v30 = vmax.f32 %v1868_v53, %v2191_v63  ;;  %v2227_v23 = vrot.slane %v1874_v48, 4  ;;  %v2239_v22 = vrot.slane %v1876_v1, 4 }
 0x396   : > { %v2175_v3 = vrot.slane %v2174_v8, 2  ;;  %v2187_v38 = vrot.slane %v2186_v9, 2  ;;  %v2222_v11 = vmax.f32 %v1873_v46, %v2221_v31  ;;  %v2234_v35 = vmax.f32 %v1875_v12, %v2233_v62 }
 0x397   : > { %v2181_v60 = vrot.slane %v2180_v15, 2  ;;  %v2193_v18 = vrot.slane %v2192_v30, 2  ;;  %v2228_v19 = vmax.f32 %v1874_v48, %v2227_v23  ;;  %v2240_v58 = vmax.f32 %v1876_v1, %v2239_v22 }
 0x398   : > { %v2176_v54 = vmax.f32 %v2174_v8, %v2175_v3  ;;  %v2188_v33 = vmax.f32 %v2186_v9, %v2187_v38  ;;  %v2223_v55 = vrot.slane %v2222_v11, 2  ;;  %v2235_v10 = vrot.slane %v2234_v35, 2 }
 0x399   : > { %v2182_v57 = vmax.f32 %v2180_v15, %v2181_v60  ;;  %v2194_v42 = vmax.f32 %v2192_v30, %v2193_v18  ;;  %v2229_v21 = vrot.slane %v2228_v19, 2  ;;  %v2241_v52 = vrot.slane %v2240_v58, 2 }
 0x39a   : > { %v2177_v36 = vrot.slane %v2176_v54, 1  ;;  %v2189_v26 = vrot.slane %v2188_v33, 1  ;;  %v2224_v29 = vmax.f32 %v2222_v11, %v2223_v55  ;;  %v2236_v39 = vmax.f32 %v2234_v35, %v2235_v10 }
 0x39b   : > { %v2183_v45 = vrot.slane %v2182_v57, 1  ;;  %v2195_v47 = vrot.slane %v2194_v42, 1  ;;  %v2230_v20 = vmax.f32 %v2228_v19, %v2229_v21  ;;  %v2242_v53 = vmax.f32 %v2240_v58, %v2241_v52 }
 0x39c   : > { %v2178_v17 = vmax.f32 %v2176_v54, %v2177_v36  ;;  %v2190_v28 = vmax.f32 %v2188_v33, %v2189_v26  ;;  %v2225_v40 = vrot.slane %v2224_v29, 1  ;;  %v2237_v6 = vrot.slane %v2236_v39, 1 }
 0x39d   : > { %v2184_v46 = vmax.f32 %v2182_v57, %v2183_v45  ;;  %v2196_v12 = vmax.f32 %v2194_v42, %v2195_v47  ;;  %v2231_v27 = vrot.slane %v2230_v20, 1  ;;  %v2243_v63 = vrot.slane %v2242_v53, 1  ;;  %v7131_v57 = vld [vmem:[#allocation15_spill] sm:$0xff]  ;;  %v7132_v42 = vld [vmem:[#allocation25_spill] sm:$0xff]  ;;  %v7134_v47 = vld [vmem:[#allocation16_spill] sm:$0xff] }
 0x39e   : > { %v3023_v48 = vpack.c.bf16 %v2178_v17, %v2178_v17  ;;  %v3025_v1 = vpack.c.bf16 %v2190_v28, %v2190_v28  ;;  %v2226_v8 = vmax.f32 %v2224_v29, %v2225_v40  ;;  %v2238_v9 = vmax.f32 %v2236_v39, %v2237_v6  ;;  %v7136_v17 = vld [vmem:[#allocation32_spill] sm:$0xff]  ;;  %v7137_v40 = vld [vmem:[#allocation47_spill] sm:$0xff] }
 0x39f   : > { %v3024_v31 = vpack.c.bf16 %v2184_v46, %v2184_v46  ;;  %v3026_v62 = vpack.c.bf16 %v2196_v12, %v2196_v12  ;;  %v2232_v15 = vmax.f32 %v2230_v20, %v2231_v27  ;;  %v2244_v30 = vmax.f32 %v2242_v53, %v2243_v63  ;;  %v7140_v27 = vld [vmem:[#allocation35_spill] sm:$0xff]  ;;  %v7141_v63 = vld [vmem:[#allocation46_spill] sm:$0xff] }
 0x3a0   : > { %v3414_v23 = vunpack.c.l.b16 %v3023_v48  ;;  %v3416_v22 = vunpack.c.l.b16 %v3025_v1  ;;  %v3031_v3 = vpack.c.bf16 %v2226_v8, %v2226_v8  ;;  %v3033_v38 = vpack.c.bf16 %v2238_v9, %v2238_v9  ;;  %v7142_v1 = vld [vmem:[#allocation56_spill] sm:$0xff] }
 0x3a1   : > { %v6495_v11 = vunpack.c.l.b16 %v3024_v31  ;;  %v6497_v35 = vunpack.c.l.b16 %v3026_v62  ;;  %v3032_v60 = vpack.c.bf16 %v2232_v15, %v2232_v15  ;;  %v3034_v18 = vpack.c.bf16 %v2244_v30, %v2244_v30  ;;  %v7143_v9 = vld [vmem:[#allocation48_spill] sm:$0xff]  ;;  %v7145_v15 = vld [vmem:[#allocation51_spill] sm:$0xff] }
 0x3a2   : > { %v3537_v19 = vsel %vm2917_vm5, %v3414_v23, %v6468_v13  ;;  %v3551_v58 = vsel %vm2917_vm5, %v3416_v22, %v6471_v5  ;;  %v3422_v54 = vunpack.c.l.b16 %v3031_v3  ;;  %v3424_v33 = vunpack.c.l.b16 %v3033_v38  ;;  %v7133_v5 = vld [vmem:[#allocation31_spill] sm:$0xff]  ;;  %v7144_v62 = vld [vmem:[#allocation12_spill] sm:$0xff]  ;;  %v5100_v23 = vld [vmem:[%s6986_s9 + $0x180] sm:$0xff]  }
 0x3a3   : > { %v6503_v55 = vunpack.c.l.b16 %v3032_v60  ;;  %v6505_v10 = vunpack.c.l.b16 %v3034_v18  ;;  %v3516_v21 = vsel %vm2917_vm5, %v7132_v42, %v7131_v57  ;;  %v3572_v52 = vsel %vm2917_vm5, %v6227_v51, %v6198_v59  ;;  %v7135_v59 = vld [vmem:[#allocation26_spill] sm:$0xff]  ;;  %v7146_v22 = vld [vmem:[#allocation17_spill] sm:$0xff]  ;;  %v7148_v18 = vld [vmem:[#allocation19_spill] sm:$0xff] }
 0x3a4   : > { %v6514_v36 = vsel %vm2919_vm6, %v3422_v54, %v3537_v19  ;;  %v6517_v13 = vsel %vm2919_vm6, %v3424_v33, %v3551_v58  ;;  %v3517_v26 = vsel %vm2919_vm6, %v7133_v5, %v3516_v21  ;;  %v3573_v29 = vsel %vm2919_vm6, %v6255_v44, %v3572_v52  ;;  %v7147_v38 = vld [vmem:[#allocation18_spill] sm:$0xff]  ;;  %v5102_v58 = vld [vmem:[%s6986_s9 + $0x1c8] sm:$0xff]   ;;  %v7149_v33 = vld [vmem:[#allocation20_spill] sm:$0xff] }
 0x3a5   : > { %v3518_v39 = vsel %vm2921_vm7, %v6094_v14, %v3517_v26  ;;  %v3574_v45 = vsel %vm2921_vm7, %v6318_v4, %v3573_v29  ;;  %v3530_v51 = vsel %vm2917_vm5, %v7135_v59, %v7134_v47  ;;  %v3586_v20 = vsel %vm2917_vm5, %v6231_v50, %v6201_v0  ;;  %v7138_v0 = vld [vmem:[#allocation50_spill] sm:$0xff]  ;;  %v7150_v42 = vld [vmem:[#allocation21_spill] sm:$0xff]  ;;  %v5103_v26 = vld [vmem:[%s6986_s9 + $0x108] sm:$0xff]  }
 0x3a6   : > { %v3519_v53 = vsel %vm2923_vm9, %v6116_v7, %v3518_v39  ;;  %v3575_v44 = vsel %vm2923_vm9, %v6336_v43, %v3574_v45  ;;  %v3531_v14 = vsel %vm2919_vm6, %v7136_v17, %v3530_v51  ;;  %v3587_v4 = vsel %vm2919_vm6, %v6263_v25, %v3586_v20  ;;  %v5099_v7 = vld [vmem:[%s6986_s9 + $0x100] sm:$0xff]   ;;  %v7139_v43 = vld [vmem:[#allocation49_spill] sm:$0xff]  ;;  %v7152_v47 = vld [vmem:[#allocation23_spill] sm:$0xff] }
 0x3a7   : > { %v3619_v28 = vpack.c.b16 %v3575_v44, %v3519_v53  ;;  %v3532_v6 = vsel %vm2921_vm7, %v7137_v40, %v3531_v14  ;;  %v3588_v46 = vsel %vm2921_vm7, %v6325_v32, %v3587_v4  ;;  %v3618_v50 = vpack.c.b16 %v6349_v34, %v7138_v0  ;;  %v5101_v34 = vld [vmem:[%s6986_s9 + $0x148] sm:$0xff]   ;;  %v7151_v52 = vld [vmem:[#allocation22_spill] sm:$0xff]  ;;  %v5105_v51 = vld [vmem:[%s6986_s9 + $0x150] sm:$0xff]  }
 0x3a8   : > { %v3533_v12 = vsel %vm2923_vm9, %v7139_v43, %v3532_v6  ;;  %v3589_v25 = vsel %vm2923_vm9, %v6351_v49, %v3588_v46  ;;  %v3525_v48 = vsel %vm2921_vm7, %v7141_v63, %v7140_v27  ;;  %v3581_v32 = vsel %vm2921_vm7, %v7142_v1, %v6269_v2  ;;  %v5104_v14 = vld [vmem:[%s6986_s9 + $0x188] sm:$0xff]   ;;  %v5106_v46 = vld [vmem:[%s6986_s9 + $0x1d0] sm:$0xff]   ;;  %v5109_v1 = vld [vmem:[%s6986_s9 + $0x158] sm:$0xff]  }
 0x3a9   : > { %4050 = vmatprep.mubr.bf16.mxu1 %v3619_v28  ;;  %v3621_v8 = vpack.c.b16 %v3589_v25, %v3533_v12  ;;  %v3526_v31 = vsel %vm2923_vm9, %v7143_v9, %v3525_v48  ;;  %v3582_v49 = vsel %vm2923_vm9, %v7144_v62, %v3581_v32  ;;  %v1668_v30 = vadd.f32 %v7145_v15, %v6341_v24  ;;  %v5107_v12 = vld [vmem:[%s6986_s9 + $0x110] sm:$0xff]  }
 0x3aa   : > { %4051 = vmatmul.mubr.bf16.vlgmr.msra.gmra.mrb[80].mxu1 %v3618_v50  ;;  %v3620_v2 = vpack.c.b16 %v3582_v49, %v3526_v31  ;;  %v1781_v3 = vadd.f32 %v7146_v22, %v6343_v56  ;;  %v1670_v60 = vadd.f32 %v7147_v38, %v6353_v16  ;;  %v1783_v19 = vadd.f32 %v7148_v18, %v6355_v61  ;;  %v5108_v31 = vld [vmem:[%s6986_s9 + $0x190] sm:$0xff]  }
 0x3ab   : > { %4091 = vmatprep.mubr.bf16.mxu0 %v3621_v8  ;;  %v1881_v54 = vmax.f32 %v1668_v30, 0.0  ;;  %v1672_v57 = vadd.f32 %v7149_v33, %v6341_v24  ;;  %v1785_v21 = vadd.f32 %v7150_v42, %v6343_v56  ;;  %v1674_v5 = vadd.f32 %v7151_v52, %v6353_v16  ;;  %4861 = vmatpush3.bf16.msra.mxu1 %v5099_v7  ;;  %v5113_v33 = vld [vmem:[%s6986_s9 + $0x160] sm:$0xff]  }
 0x3ac   : > { %4092 = vmatmul.mubr.bf16.vlgmr.msra.gmra.mrb[84].mxu0 %v3620_v2  ;;  %v1883_v29 = vmax.f32 %v1781_v3, 0.0  ;;  %v1882_v39 = vmax.f32 %v1670_v60, 0.0  ;;  %v1884_v45 = vmax.f32 %v1783_v19, 0.0  ;;  %v1787_v59 = vadd.f32 %v7152_v47, %v6355_v61  ;;  %4862 = vmatprep.subr.bf16.mxu1 %v5101_v34  ;;  %v5111_v60 = vld [vmem:[%s6986_s9 + $0x118] sm:$0xff]   ;;  %v5114_v47 = vld [vmem:[%s6986_s9 + $0x1e0] sm:$0xff]  }
 0x3ad   : > { %v2269_v20 = vrot.slane %v1881_v54, 4  ;;  %v1889_v53 = vmax.f32 %v1672_v57, 0.0  ;;  %v1891_v44 = vmax.f32 %v1785_v21, 0.0  ;;  %v1890_v17 = vmax.f32 %v1674_v5, 0.0  ;;  %4883 = vmatpush3.bf16.msra.mxu0 %v5100_v23  ;;  %v5110_v23 = vld [vmem:[%s6986_s9 + $0x1d8] sm:$0xff]  }
 0x3ae   : > { %v2281_v4 = vrot.slane %v1883_v29, 4  ;;  %v2275_v28 = vrot.slane %v1882_v39, 4  ;;  %v2287_v40 = vrot.slane %v1884_v45, 4  ;;  %v1892_v6 = vmax.f32 %v1787_v59, 0.0  ;;  %4884 = vmatprep.subr.bf16.mxu0 %v5102_v58  ;;  %v5112_v5 = vld [vmem:[%s6986_s9 + $0x198] sm:$0xff]  }
 0x3af   : > { %v2270_v0 = vmax.f32 %v1881_v54, %v2269_v20  ;;  %v2317_v50 = vrot.slane %v1889_v53, 4  ;;  %v2329_v7 = vrot.slane %v1891_v44, 4  ;;  %v2323_v43 = vrot.slane %v1890_v17, 4  ;;  %4863 = vmatpush3.bf16.msra.mxu1 %v5103_v26 }
 0x3b0   : > { %v2282_v25 = vmax.f32 %v1883_v29, %v2281_v4  ;;  %v2276_v27 = vmax.f32 %v1882_v39, %v2275_v28  ;;  %v2288_v63 = vmax.f32 %v1884_v45, %v2287_v40  ;;  %v2335_v48 = vrot.slane %v1892_v6, 4  ;;  %4864 = vmatprep.subr.bf16.mxu1 %v5105_v51  ;;  %v5117_v40 = vld [vmem:[%s6986_s9 + $0x168] sm:$0xff]  }
 0x3b1   : > { %v2271_v32 = vrot.slane %v2270_v0, 2  ;;  %v2318_v34 = vmax.f32 %v1889_v53, %v2317_v50  ;;  %v2330_v8 = vmax.f32 %v1891_v44, %v2329_v7  ;;  %v2324_v9 = vmax.f32 %v1890_v17, %v2323_v43  ;;  %4885 = vmatpush3.bf16.msra.mxu0 %v5104_v14  ;;  %v5115_v44 = vld [vmem:[%s6986_s9 + $0x120] sm:$0xff]  }
 0x3b2   : > { %v2283_v62 = vrot.slane %v2282_v25, 2  ;;  %v2277_v49 = vrot.slane %v2276_v27, 2  ;;  %v2289_v15 = vrot.slane %v2288_v63, 2  ;;  %v2336_v30 = vmax.f32 %v1892_v6, %v2335_v48  ;;  %4886 = vmatprep.subr.bf16.mxu0 %v5106_v46  ;;  %v5116_v7 = vld [vmem:[%s6986_s9 + $0x1a0] sm:$0xff]  }
 0x3b3   : > { %v2272_v2 = vmax.f32 %v2270_v0, %v2271_v32  ;;  %v2319_v22 = vrot.slane %v2318_v34, 2  ;;  %v2331_v3 = vrot.slane %v2330_v8, 2  ;;  %v2325_v38 = vrot.slane %v2324_v9, 2  ;;  %4865 = vmatpush3.bf16.msra.mxu1 %v5107_v12 }
 0x3b4   : > { %v2284_v18 = vmax.f32 %v2282_v25, %v2283_v62  ;;  %v2278_v19 = vmax.f32 %v2276_v27, %v2277_v49  ;;  %v2290_v58 = vmax.f32 %v2288_v63, %v2289_v15  ;;  %v2337_v54 = vrot.slane %v2336_v30, 2  ;;  %4866 = vmatprep.subr.bf16.mxu1 %v5109_v1  ;;  %v5118_v63 = vld [vmem:[%s6986_s9 + $0x1e8] sm:$0xff]   ;;  %v5121_v15 = vld [vmem:[%s6986_s9 + $0x170] sm:$0xff]  }
 0x3b5   : > { %v2273_v57 = vrot.slane %v2272_v2, 1  ;;  %v2320_v42 = vmax.f32 %v2318_v34, %v2319_v22  ;;  %v2332_v21 = vmax.f32 %v2330_v8, %v2331_v3  ;;  %v2326_v52 = vmax.f32 %v2324_v9, %v2325_v38  ;;  %4887 = vmatpush3.bf16.msra.mxu0 %v5108_v31  ;;  %v5119_v8 = vld [vmem:[%s6986_s9 + $0x128] sm:$0xff]   ;;  %v7153_v22 = vld [vmem:[#allocation24_spill] sm:$0xff] }
 0x3b6   : > { %v2285_v26 = vrot.slane %v2284_v18, 1  ;;  %v2279_v29 = vrot.slane %v2278_v19, 1  ;;  %v2291_v39 = vrot.slane %v2290_v58, 1  ;;  %v2338_v45 = vmax.f32 %v2336_v30, %v2337_v54  ;;  %4888 = vmatprep.subr.bf16.mxu0 %v5110_v23  ;;  %v5120_v38 = vld [vmem:[%s6986_s9 + $0x1a8] sm:$0xff]  }
 0x3b7   : > { %v2274_v59 = vmax.f32 %v2272_v2, %v2273_v57  ;;  %v2321_v51 = vrot.slane %v2320_v42, 1  ;;  %v2333_v20 = vrot.slane %v2332_v21, 1  ;;  %v2327_v53 = vrot.slane %v2326_v52, 1  ;;  %4867 = vmatpush3.bf16.msra.mxu1 %v5111_v60 }
 0x3b8   : > { %v2286_v17 = vmax.f32 %v2284_v18, %v2285_v26  ;;  %v2280_v14 = vmax.f32 %v2278_v19, %v2279_v29  ;;  %v2292_v4 = vmax.f32 %v2290_v58, %v2291_v39  ;;  %v2339_v28 = vrot.slane %v2338_v45, 1  ;;  %4868 = vmatprep.subr.bf16.mxu1 %v5113_v33  ;;  %v7154_v18 = vld [vmem:[#allocation10_spill] sm:$0xff]  ;;  %v7155_v58 = vld [vmem:[#allocation13_spill] sm:$0xff]  ;;  %v7156_v33 = vld [vmem:[#allocation11_spill] sm:$0xff] }
 0x3b9   : > { %v3039_v6 = vpack.c.bf16 %v2274_v59, %v2274_v59  ;;  %v2322_v46 = vmax.f32 %v2320_v42, %v2321_v51  ;;  %v2334_v0 = vmax.f32 %v2332_v21, %v2333_v20  ;;  %v2328_v50 = vmax.f32 %v2326_v52, %v2327_v53  ;;  %4889 = vmatpush3.bf16.msra.mxu0 %v5112_v5  ;;  %v5122_v42 = vld [vmem:[%s6986_s9 + $0x1f0] sm:$0xff]   ;;  %v7157_v52 = vld [vmem:[#allocation14_spill] sm:$0xff]  ;;  %v7159_v39 = vld [vmem:[#allocation53_spill] sm:$0xff] }
 0x3ba   : > { %v3041_v43 = vpack.c.bf16 %v2286_v17, %v2286_v17  ;;  %v3040_v12 = vpack.c.bf16 %v2280_v14, %v2280_v14  ;;  %v3042_v25 = vpack.c.bf16 %v2292_v4, %v2292_v4  ;;  %v2340_v27 = vmax.f32 %v2338_v45, %v2339_v28  ;;  %4890 = vmatprep.subr.bf16.mxu0 %v5114_v47  ;;  %v7158_v26 = vld [vmem:[#allocation52_spill] sm:$0xff]  ;;  %v7160_v53 = vld [vmem:[#allocation54_spill] sm:$0xff]  ;;  %v5125_v17 = vld [vmem:[%s6986_s9 + $0x178] sm:$0xff]  }
 0x3bb   : > { %v6637_v48 = vunpack.c.l.b16 %v3039_v6  ;;  %v3047_v1 = vpack.c.bf16 %v2322_v46, %v2322_v46  ;;  %v3049_v32 = vpack.c.bf16 %v2334_v0, %v2334_v0  ;;  %v3048_v34 = vpack.c.bf16 %v2328_v50, %v2328_v50  ;;  %4869 = vmatpush3.bf16.msra.mxu1 %v5115_v44  ;;  %v5123_v47 = vld [vmem:[%s6986_s9 + $0x130] sm:$0xff]  }
 0x3bc   : > { %v6642_v9 = vunpack.c.l.b16 %v3041_v43  ;;  %v6644_v31 = vunpack.c.l.b16 %v3040_v12  ;;  %v6646_v62 = vunpack.c.l.b16 %v3042_v25  ;;  %v3050_v49 = vpack.c.bf16 %v2340_v27, %v2340_v27  ;;  %4870 = vmatprep.subr.bf16.mxu1 %v5117_v40  ;;  %v5124_v6 = vld [vmem:[%s6986_s9 + $0x1b0] sm:$0xff]   ;;  %v5126_v43 = vld [vmem:[%s6986_s9 + $0x1f8] sm:$0xff]  }
 0x3bd   : > { %v6651_v30 = vunpack.c.l.b16 %v3047_v1  ;;  %v6653_v23 = vunpack.c.l.b16 %v3049_v32  ;;  %v6655_v2 = vunpack.c.l.b16 %v3048_v34  ;;  %v1678_v3 = vadd.f32 %v7153_v22, %v6341_v24  ;;  %4891 = vmatpush3.bf16.msra.mxu0 %v5116_v7  ;;  %v5127_v1 = vld [vmem:[%s6986_s9 + $0x138] sm:$0xff]  }
 0x3be   : > { %v6662_v60 = vunpack.c.l.b16 %v3050_v49  ;;  %v1791_v19 = vadd.f32 %v7154_v18, %v6343_v56  ;;  %v1680_v54 = vadd.f32 %v7155_v58, %v6353_v16  ;;  %v1793_v57 = vadd.f32 %v7156_v33, %v6355_v61  ;;  %4892 = vmatprep.subr.bf16.mxu0 %v5118_v63  ;;  %v5128_v18 = vld [vmem:[%s6986_s9 + $0x1b8] sm:$0xff]  }
 0x3bf   : > { %v1897_v21 = vmax.f32 %v1678_v3, 0.0  ;;  %v1682_v5 = vadd.f32 %v7157_v52, %v6341_v24  ;;  %v1795_v29 = vadd.f32 %v7158_v26, %v6343_v56  ;;  %v1684_v45 = vadd.f32 %v7159_v39, %v6353_v16  ;;  %4871 = vmatpush3.bf16.msra.mxu1 %v5119_v8 }
 0x3c0   : > { %v1899_v59 = vmax.f32 %v1791_v19, 0.0  ;;  %v1898_v51 = vmax.f32 %v1680_v54, 0.0  ;;  %v1900_v20 = vmax.f32 %v1793_v57, 0.0  ;;  %v1797_v44 = vadd.f32 %v7160_v53, %v6355_v61  ;;  %4872 = vmatprep.subr.bf16.mxu1 %v5121_v15 }
 0x3c1   : > { %v2365_v14 = vrot.slane %v1897_v21, 4  ;;  %v1905_v4 = vmax.f32 %v1682_v5, 0.0  ;;  %v1907_v28 = vmax.f32 %v1795_v29, 0.0  ;;  %v1906_v40 = vmax.f32 %v1684_v45, 0.0  ;;  %4893 = vmatpush3.bf16.msra.mxu0 %v5120_v38 }
 0x3c2   : > { %v2377_v46 = vrot.slane %v1899_v59, 4  ;;  %v2371_v0 = vrot.slane %v1898_v51, 4  ;;  %v2383_v50 = vrot.slane %v1900_v20, 4  ;;  %v1908_v7 = vmax.f32 %v1797_v44, 0.0  ;;  %4894 = vmatprep.subr.bf16.mxu0 %v5122_v42 }
 0x3c3   : > { %v2366_v12 = vmax.f32 %v1897_v21, %v2365_v14  ;;  %v2413_v25 = vrot.slane %v1905_v4, 4  ;;  %v2425_v27 = vrot.slane %v1907_v28, 4  ;;  %v2419_v63 = vrot.slane %v1906_v40, 4  ;;  %4873 = vmatpush3.bf16.msra.mxu1 %v5123_v47 }
 0x3c4   : > { %v2378_v32 = vmax.f32 %v1899_v59, %v2377_v46  ;;  %v2372_v34 = vmax.f32 %v1898_v51, %v2371_v0  ;;  %v2384_v8 = vmax.f32 %v1900_v20, %v2383_v50  ;;  %v2431_v49 = vrot.slane %v1908_v7, 4  ;;  %4874 = vmatprep.subr.bf16.mxu1 %v5125_v17 }
 0x3c5   : > { %v2367_v15 = vrot.slane %v2366_v12, 2  ;;  %v2414_v22 = vmax.f32 %v1905_v4, %v2413_v25  ;;  %v2426_v3 = vmax.f32 %v1907_v28, %v2425_v27  ;;  %v2420_v38 = vmax.f32 %v1906_v40, %v2419_v63  ;;  %4895 = vmatpush3.bf16.msra.mxu0 %v5124_v6 }
 0x3c6   : > { %v2379_v19 = vrot.slane %v2378_v32, 2  ;;  %v2373_v58 = vrot.slane %v2372_v34, 2  ;;  %v2385_v54 = vrot.slane %v2384_v8, 2  ;;  %v2432_v33 = vmax.f32 %v1908_v7, %v2431_v49  ;;  %4896 = vmatprep.subr.bf16.mxu0 %v5126_v43 }
 0x3c7   : > { %v2368_v57 = vmax.f32 %v2366_v12, %v2367_v15  ;;  %v2415_v42 = vrot.slane %v2414_v22, 2  ;;  %v2427_v21 = vrot.slane %v2426_v3, 2  ;;  %v2421_v52 = vrot.slane %v2420_v38, 2  ;;  %4875 = vmatpush3.bf16.msra.mxu1 %v5127_v1 }
 0x3c8   : > { %v2380_v5 = vmax.f32 %v2378_v32, %v2379_v19  ;;  %v2374_v26 = vmax.f32 %v2372_v34, %v2373_v58  ;;  %v2386_v29 = vmax.f32 %v2384_v8, %v2385_v54  ;;  %v2433_v39 = vrot.slane %v2432_v33, 2 }
 0x3c9   : > { %v7161_v45 = vmov 0.0   ;;  %v2369_v47 = vrot.slane %v2368_v57, 1  ;;  %v2416_v59 = vmax.f32 %v2414_v22, %v2415_v42  ;;  %v2428_v51 = vmax.f32 %v2426_v3, %v2427_v21  ;;  %4897 = vmatpush3.bf16.msra.mxu0 %v5128_v18 }
 0x3ca   : > { %4970 = vmatprep.subr.bf16.mxu1 %v7161_v45  ;;  %v2422_v20 = vmax.f32 %v2420_v38, %v2421_v52  ;;  %v2381_v53 = vrot.slane %v2380_v5, 1  ;;  %v2375_v44 = vrot.slane %v2374_v26, 1  ;;  %v2387_v17 = vrot.slane %v2386_v29, 1  ;;  %4994 = vmatprep.subr.bf16.mxu0 %v7161_v45  ;;  %v7163_v52 = vld [vmem:[#allocation27_spill] sm:$0xff] }
 0x3cb   : > { %v2434_v14 = vmax.f32 %v2432_v33, %v2433_v39  ;;  %v2370_v4 = vmax.f32 %v2368_v57, %v2369_v47  ;;  %v2417_v28 = vrot.slane %v2416_v59, 1  ;;  %v2429_v40 = vrot.slane %v2428_v51, 1  ;;  %v7162_v57 = vld [vmem:[#allocation55_spill] sm:$0xff]  ;;  %v7165_v39 = vld [vmem:[#allocation33_spill] sm:$0xff] }
 0x3cc   : > { %v2423_v6 = vrot.slane %v2422_v20, 1  ;;  %v2382_v46 = vmax.f32 %v2380_v5, %v2381_v53  ;;  %v2376_v0 = vmax.f32 %v2374_v26, %v2375_v44  ;;  %v2388_v50 = vmax.f32 %v2386_v29, %v2387_v17  ;;  %v7164_v26 = vld [vmem:[#allocation28_spill] sm:$0xff] }
 0x3cd   : > { %v2435_v7 = vrot.slane %v2434_v14, 1  ;;  %v3055_v43 = vpack.c.bf16 %v2370_v4, %v2370_v4  ;;  %v2418_v12 = vmax.f32 %v2416_v59, %v2417_v28  ;;  %v2430_v25 = vmax.f32 %v2428_v51, %v2429_v40  ;;  %v7166_v40 = vld [vmem:[#allocation34_spill] sm:$0xff] }
 0x3ce   : > { %v2424_v27 = vmax.f32 %v2422_v20, %v2423_v6  ;;  %v3057_v63 = vpack.c.bf16 %v2382_v46, %v2382_v46  ;;  %v3056_v1 = vpack.c.bf16 %v2376_v0, %v2376_v0  ;;  %v3058_v32 = vpack.c.bf16 %v2388_v50, %v2388_v50  ;;  %v7167_v46 = vld [vmem:[#allocation29_spill] sm:$0xff]  ;;  %v7168_v50 = vld [vmem:[#allocation30_spill] sm:$0xff] }
 0x3cf   : > { %v2436_v34 = vmax.f32 %v2434_v14, %v2435_v7  ;;  %v3446_v8 = vunpack.c.l.b16 %v3055_v43  ;;  %v3063_v49 = vpack.c.bf16 %v2418_v12, %v2418_v12  ;;  %v3065_v15 = vpack.c.bf16 %v2430_v25, %v2430_v25 }
 0x3d0   : > { %v3064_v22 = vpack.c.bf16 %v2424_v27, %v2424_v27  ;;  %v3448_v3 = vunpack.c.l.b16 %v3057_v63  ;;  %v3447_v38 = vunpack.c.l.b16 %v3056_v1  ;;  %v3449_v18 = vunpack.c.l.b16 %v3058_v32  ;;  %v7169_v27 = vld [vmem:[#allocation36_spill] sm:$0xff] }
 0x3d1   : > { %v3066_v19 = vpack.c.bf16 %v2436_v34, %v2436_v34  ;;  %v3454_v58 = vunpack.c.l.b16 %v3063_v49  ;;  %v3456_v54 = vunpack.c.l.b16 %v3065_v15  ;;  %v1688_v42 = vadd.f32 %v7162_v57, %v6341_v24 }
 0x3d2   : > { %v3455_v33 = vunpack.c.l.b16 %v3064_v22  ;;  %v1801_v5 = vadd.f32 %v7163_v52, %v6343_v56  ;;  %v1690_v29 = vadd.f32 %v7164_v26, %v6353_v16  ;;  %v1803_v47 = vadd.f32 %v7165_v39, %v6355_v61 }
 0x3d3   : > { %v3457_v21 = vunpack.c.l.b16 %v3066_v19  ;;  %v6710_v59 = vsel %vm2911_vm2, %v3454_v58, %v3446_v8  ;;  %v6713_v51 = vsel %vm2911_vm2, %v3456_v54, %v3448_v3  ;;  %v1913_v53 = vmax.f32 %v1688_v42, 0.0 }
 0x3d4   : > { %v6716_v20 = vsel %vm2911_vm2, %v3455_v33, %v3447_v38  ;;  %v1915_v17 = vmax.f32 %v1801_v5, 0.0  ;;  %v1914_v14 = vmax.f32 %v1690_v29, 0.0  ;;  %v1916_v4 = vmax.f32 %v1803_v47, 0.0 }
 0x3d5   : > { %v6719_v44 = vsel %vm2911_vm2, %v3457_v21, %v3449_v18  ;;  %v2461_v28 = vrot.slane %v1913_v53, 4  ;;  %v1692_v6 = vadd.f32 %v7166_v40, %v6341_v24  ;;  %v1805_v0 = vadd.f32 %v7167_v46, %v6343_v56 }
 0x3d6   : > { %v1694_v7 = vadd.f32 %v7168_v50, %v6353_v16  ;;  %v2473_v43 = vrot.slane %v1915_v17, 4  ;;  %v2467_v12 = vrot.slane %v1914_v14, 4  ;;  %v2479_v25 = vrot.slane %v1916_v4, 4 }
 0x3d7   : > { %v1807_v63 = vadd.f32 %v7169_v27, %v6355_v61  ;;  %v2462_v1 = vmax.f32 %v1913_v53, %v2461_v28  ;;  %v1921_v32 = vmax.f32 %v1692_v6, 0.0  ;;  %v1923_v34 = vmax.f32 %v1805_v0, 0.0 }
 0x3d8   : > { %v1922_v8 = vmax.f32 %v1694_v7, 0.0  ;;  %v2474_v49 = vmax.f32 %v1915_v17, %v2473_v43  ;;  %v2468_v15 = vmax.f32 %v1914_v14, %v2467_v12  ;;  %v2480_v22 = vmax.f32 %v1916_v4, %v2479_v25 }
 0x3d9   : > { %v1924_v3 = vmax.f32 %v1807_v63, 0.0  ;;  %v2463_v38 = vrot.slane %v2462_v1, 2  ;;  %v2509_v18 = vrot.slane %v1921_v32, 4  ;;  %v2521_v19 = vrot.slane %v1923_v34, 4 }
 0x3da   : > { %v2515_v58 = vrot.slane %v1922_v8, 4  ;;  %v2475_v54 = vrot.slane %v2474_v49, 2  ;;  %v2469_v33 = vrot.slane %v2468_v15, 2  ;;  %v2481_v57 = vrot.slane %v2480_v22, 2 }
 0x3db   : > { %v2527_v42 = vrot.slane %v1924_v3, 4  ;;  %v2464_v21 = vmax.f32 %v2462_v1, %v2463_v38  ;;  %v2510_v52 = vmax.f32 %v1921_v32, %v2509_v18  ;;  %v2522_v5 = vmax.f32 %v1923_v34, %v2521_v19 }
 0x3dc   : > { %v2516_v26 = vmax.f32 %v1922_v8, %v2515_v58  ;;  %v2476_v29 = vmax.f32 %v2474_v49, %v2475_v54  ;;  %v2470_v39 = vmax.f32 %v2468_v15, %v2469_v33  ;;  %v2482_v47 = vmax.f32 %v2480_v22, %v2481_v57 }
 0x3dd   : > { %v2528_v53 = vmax.f32 %v1924_v3, %v2527_v42  ;;  %v2465_v17 = vrot.slane %v2464_v21, 1  ;;  %v2511_v14 = vrot.slane %v2510_v52, 2  ;;  %v2523_v4 = vrot.slane %v2522_v5, 2 }
 0x3de   : > { %v2517_v28 = vrot.slane %v2516_v26, 2  ;;  %v2477_v40 = vrot.slane %v2476_v29, 1  ;;  %v2471_v6 = vrot.slane %v2470_v39, 1  ;;  %v2483_v46 = vrot.slane %v2482_v47, 1 }
 0x3df   : > { %v2529_v0 = vrot.slane %v2528_v53, 2  ;;  %v2466_v50 = vmax.f32 %v2464_v21, %v2465_v17  ;;  %v2512_v7 = vmax.f32 %v2510_v52, %v2511_v14  ;;  %v2524_v43 = vmax.f32 %v2522_v5, %v2523_v4 }
 0x3e0   : > { %v2518_v12 = vmax.f32 %v2516_v26, %v2517_v28  ;;  %v2478_v25 = vmax.f32 %v2476_v29, %v2477_v40  ;;  %v2472_v27 = vmax.f32 %v2470_v39, %v2471_v6  ;;  %v2484_v63 = vmax.f32 %v2482_v47, %v2483_v46  ;;  %v7170_v40 = vld [vmem:[#allocation37_spill] sm:$0xff] }
 0x3e1   : > { %v2530_v1 = vmax.f32 %v2528_v53, %v2529_v0  ;;  %v3071_v32 = vpack.c.bf16 %v2466_v50, %v2466_v50  ;;  %v2513_v34 = vrot.slane %v2512_v7, 1  ;;  %v2525_v8 = vrot.slane %v2524_v43, 1  ;;  %v7171_v46 = vld [vmem:[#allocation57_spill] sm:$0xff]  ;;  %v7172_v50 = vld [vmem:[#allocation58_spill] sm:$0xff] }
 0x3e2   : > { %v2519_v49 = vrot.slane %v2518_v12, 1  ;;  %v3073_v15 = vpack.c.bf16 %v2478_v25, %v2478_v25  ;;  %v3072_v22 = vpack.c.bf16 %v2472_v27, %v2472_v27  ;;  %v3074_v3 = vpack.c.bf16 %v2484_v63, %v2484_v63 }
 0x3e3   : > { %v2531_v38 = vrot.slane %v2530_v1, 1  ;;  %v3462_v18 = vunpack.c.l.b16 %v3071_v32  ;;  %v2514_v19 = vmax.f32 %v2512_v7, %v2513_v34  ;;  %v2526_v58 = vmax.f32 %v2524_v43, %v2525_v8  ;;  %v7173_v7 = vld [vmem:[#allocation59_spill] sm:$0xff]  ;;  %v7174_v8 = vld [vmem:[#allocation60_spill] sm:$0xff] }
 0x3e4   : > { %v2520_v54 = vmax.f32 %v2518_v12, %v2519_v49  ;;  %v3464_v33 = vunpack.c.l.b16 %v3073_v15  ;;  %v3463_v57 = vunpack.c.l.b16 %v3072_v22  ;;  %v3465_v42 = vunpack.c.l.b16 %v3074_v3  ;;  %v7175_v15 = vld [vmem:[#allocation61_spill] sm:$0xff]  ;;  %v7176_v3 = vld [vmem:[#allocation62_spill] sm:$0xff] }
 0x3e5   : > { %v2532_v21 = vmax.f32 %v2530_v1, %v2531_v38  ;;  %v3591_v52 = vsel %vm2913_vm3, %v3462_v18, %v6710_v59  ;;  %v3079_v5 = vpack.c.bf16 %v2514_v19, %v2514_v19  ;;  %v3081_v26 = vpack.c.bf16 %v2526_v58, %v2526_v58 }
 0x3e6   : > { %v3080_v29 = vpack.c.bf16 %v2520_v54, %v2520_v54  ;;  %v3605_v39 = vsel %vm2913_vm3, %v3464_v33, %v6713_v51  ;;  %v3598_v47 = vsel %vm2913_vm3, %v3463_v57, %v6716_v20  ;;  %v3612_v53 = vsel %vm2913_vm3, %v3465_v42, %v6719_v44  ;;  %v7177_v54 = vld [vmem:[#allocation63_spill] sm:$0xff] }
 0x3e7   : > { %v3082_v17 = vpack.c.bf16 %v2532_v21, %v2532_v21  ;;  %v3470_v14 = vunpack.c.l.b16 %v3079_v5  ;;  %v3472_v4 = vunpack.c.l.b16 %v3081_v26  ;;  %v1698_v6 = vadd.f32 %v7170_v40, %v6341_v24 }
 0x3e8   : > { %v3471_v28 = vunpack.c.l.b16 %v3080_v29  ;;  %v1811_v0 = vadd.f32 %v7171_v46, %v6343_v56  ;;  %v1700_v51 = vadd.f32 %v7172_v50, %v6353_v16  ;;  %v1813_v20 = vadd.f32 %v7173_v7, %v6355_v61 }
 0x3e9   : > { %v3473_v59 = vunpack.c.l.b16 %v3082_v17  ;;  %v6746_v43 = vsel %vm2915_vm4, %v3470_v14, %v3591_v52  ;;  %v6749_v44 = vsel %vm2915_vm4, %v3472_v4, %v3605_v39  ;;  %v1929_v25 = vmax.f32 %v1698_v6, 0.0 }
 0x3ea   : > { %v6752_v12 = vsel %vm2915_vm4, %v3471_v28, %v3598_v47  ;;  %v1931_v63 = vmax.f32 %v1811_v0, 0.0  ;;  %v1930_v1 = vmax.f32 %v1700_v51, 0.0  ;;  %v1932_v32 = vmax.f32 %v1813_v20, 0.0 }
 0x3eb   : > { %v6755_v27 = vsel %vm2915_vm4, %v3473_v59, %v3612_v53  ;;  %v2557_v34 = vrot.slane %v1929_v25, 4  ;;  %v1702_v49 = vadd.f32 %v7174_v8, %v6341_v24  ;;  %v1815_v22 = vadd.f32 %v7175_v15, %v6343_v56 }
 0x3ec   : > { %v1704_v38 = vadd.f32 %v7176_v3, %v6353_v16  ;;  %v2569_v18 = vrot.slane %v1931_v63, 4  ;;  %v2563_v19 = vrot.slane %v1930_v1, 4  ;;  %v2575_v58 = vrot.slane %v1932_v32, 4 }
 0x3ed   : > { %v1817_v33 = vadd.f32 %v7177_v54, %v6355_v61  ;;  %v2558_v57 = vmax.f32 %v1929_v25, %v2557_v34  ;;  %v1937_v42 = vmax.f32 %v1702_v49, 0.0  ;;  %v1939_v21 = vmax.f32 %v1815_v22, 0.0 }
 0x3ee   : > { %v1938_v52 = vmax.f32 %v1704_v38, 0.0  ;;  %v2570_v5 = vmax.f32 %v1931_v63, %v2569_v18  ;;  %v2564_v26 = vmax.f32 %v1930_v1, %v2563_v19  ;;  %v2576_v29 = vmax.f32 %v1932_v32, %v2575_v58 }
 0x3ef   : > { %v1940_v39 = vmax.f32 %v1817_v33, 0.0  ;;  %v2559_v47 = vrot.slane %v2558_v57, 2  ;;  %v2605_v53 = vrot.slane %v1937_v42, 4  ;;  %v2617_v17 = vrot.slane %v1939_v21, 4 }
 0x3f0   : > { %v2611_v14 = vrot.slane %v1938_v52, 4  ;;  %v2571_v4 = vrot.slane %v2570_v5, 2  ;;  %v2565_v28 = vrot.slane %v2564_v26, 2  ;;  %v2577_v40 = vrot.slane %v2576_v29, 2 }
 0x3f1   : > { %v2623_v6 = vrot.slane %v1940_v39, 4  ;;  %v2560_v59 = vmax.f32 %v2558_v57, %v2559_v47  ;;  %v2606_v46 = vmax.f32 %v1937_v42, %v2605_v53  ;;  %v2618_v0 = vmax.f32 %v1939_v21, %v2617_v17 }
 0x3f2   : > { %v2612_v50 = vmax.f32 %v1938_v52, %v2611_v14  ;;  %v2572_v51 = vmax.f32 %v2570_v5, %v2571_v4  ;;  %v2566_v7 = vmax.f32 %v2564_v26, %v2565_v28  ;;  %v2578_v20 = vmax.f32 %v2576_v29, %v2577_v40 }
 0x3f3   : > { %v2624_v25 = vmax.f32 %v1940_v39, %v2623_v6  ;;  %v2561_v63 = vrot.slane %v2560_v59, 1  ;;  %v2607_v1 = vrot.slane %v2606_v46, 2  ;;  %v2619_v32 = vrot.slane %v2618_v0, 2 }
 0x3f4   : > { %v2613_v34 = vrot.slane %v2612_v50, 2  ;;  %v2573_v8 = vrot.slane %v2572_v51, 1  ;;  %v2567_v49 = vrot.slane %v2566_v7, 1  ;;  %v2579_v15 = vrot.slane %v2578_v20, 1 }
 0x3f5   : > { %v2625_v22 = vrot.slane %v2624_v25, 2  ;;  %v2562_v3 = vmax.f32 %v2560_v59, %v2561_v63  ;;  %v2608_v38 = vmax.f32 %v2606_v46, %v2607_v1  ;;  %v2620_v18 = vmax.f32 %v2618_v0, %v2619_v32  ;;  %v7179_v1 = vld [vmem:[#allocation38_spill] sm:$0xff] }
 0x3f6   : > { %v2614_v19 = vmax.f32 %v2612_v50, %v2613_v34  ;;  %v2574_v58 = vmax.f32 %v2572_v51, %v2573_v8  ;;  %v2568_v54 = vmax.f32 %v2566_v7, %v2567_v49  ;;  %v2580_v33 = vmax.f32 %v2578_v20, %v2579_v15  ;;  %v7180_v15 = vld [vmem:[#allocation39_spill] sm:$0xff] }
 0x3f7   : > { %v2626_v57 = vmax.f32 %v2624_v25, %v2625_v22  ;;  %v3087_v42 = vpack.c.bf16 %v2562_v3, %v2562_v3  ;;  %v2609_v21 = vrot.slane %v2608_v38, 1  ;;  %v2621_v52 = vrot.slane %v2620_v18, 1  ;;  %v7178_v25 = vld [vmem:[#allocation64_spill] sm:$0xff] }
 0x3f8   : > { %v2615_v5 = vrot.slane %v2614_v19, 1  ;;  %v3089_v26 = vpack.c.bf16 %v2574_v58, %v2574_v58  ;;  %v3088_v29 = vpack.c.bf16 %v2568_v54, %v2568_v54  ;;  %v3090_v39 = vpack.c.bf16 %v2580_v33, %v2580_v33  ;;  %v7182_v33 = vld [vmem:[#allocation41_spill] sm:$0xff] }
 0x3f9   : > { %v2627_v47 = vrot.slane %v2626_v57, 1  ;;  %v3478_v53 = vunpack.c.l.b16 %v3087_v42  ;;  %v2610_v17 = vmax.f32 %v2608_v38, %v2609_v21  ;;  %v2622_v14 = vmax.f32 %v2620_v18, %v2621_v52 }
 0x3fa   : > { %v2616_v4 = vmax.f32 %v2614_v19, %v2615_v5  ;;  %v3480_v28 = vunpack.c.l.b16 %v3089_v26  ;;  %v6765_v40 = vunpack.c.l.b16 %v3088_v29  ;;  %v6767_v6 = vunpack.c.l.b16 %v3090_v39  ;;  %v7183_v5 = vld [vmem:[#allocation42_spill] sm:$0xff] }
 0x3fb   : > { %v2628_v59 = vmax.f32 %v2626_v57, %v2627_v47  ;;  %v3593_v46 = vsel %vm2917_vm5, %v3478_v53, %v6746_v43  ;;  %v3095_v0 = vpack.c.bf16 %v2610_v17, %v2610_v17  ;;  %v3097_v50 = vpack.c.bf16 %v2622_v14, %v2622_v14  ;;  %v7184_v47 = vld [vmem:[#allocation43_spill] sm:$0xff]  ;;  %v7185_v17 = vld [vmem:[#allocation44_spill] sm:$0xff] }
 0x3fc   : > { %v3096_v51 = vpack.c.bf16 %v2616_v4, %v2616_v4  ;;  %v3607_v7 = vsel %vm2917_vm5, %v3480_v28, %v6749_v44  ;;  %v1708_v63 = vadd.f32 %v7178_v25, %v6341_v24  ;;  %v1821_v32 = vadd.f32 %v7179_v1, %v6343_v56  ;;  %v7181_v44 = vld [vmem:[#allocation40_spill] sm:$0xff] }
 0x3fd   : > { %v3098_v20 = vpack.c.bf16 %v2628_v59, %v2628_v59  ;;  %v3486_v34 = vunpack.c.l.b16 %v3095_v0  ;;  %v3488_v8 = vunpack.c.l.b16 %v3097_v50  ;;  %v1710_v43 = vadd.f32 %v7180_v15, %v6353_v16 }
 0x3fe   : > { %v6777_v49 = vunpack.c.l.b16 %v3096_v51  ;;  %v1945_v3 = vmax.f32 %v1708_v63, 0.0  ;;  %v1947_v38 = vmax.f32 %v1821_v32, 0.0  ;;  %v1823_v18 = vadd.f32 %v7181_v44, %v6355_v61 }
 0x3ff   : > { %v6781_v22 = vunpack.c.l.b16 %v3098_v20  ;;  %v6786_v19 = vsel %vm2919_vm6, %v3486_v34, %v3593_v46  ;;  %v6789_v58 = vsel %vm2919_vm6, %v3488_v8, %v3607_v7  ;;  %v1946_v54 = vmax.f32 %v1710_v43, 0.0 }
 0x400   : > { %v1712_v57 = vadd.f32 %v7182_v33, %v6341_v24  ;;  %v2653_v42 = vrot.slane %v1945_v3, 4  ;;  %v2665_v21 = vrot.slane %v1947_v38, 4  ;;  %v1948_v52 = vmax.f32 %v1823_v18, 0.0 }
 0x401   : > { %v1825_v26 = vadd.f32 %v7183_v5, %v6343_v56  ;;  %v2659_v29 = vrot.slane %v1946_v54, 4  ;;  %v1714_v53 = vadd.f32 %v7184_v47, %v6353_v16  ;;  %v1827_v14 = vadd.f32 %v7185_v17, %v6355_v61 }
 0x402   : > { %v1953_v39 = vmax.f32 %v1712_v57, 0.0  ;;  %v2654_v4 = vmax.f32 %v1945_v3, %v2653_v42  ;;  %v2666_v28 = vmax.f32 %v1947_v38, %v2665_v21  ;;  %v2671_v59 = vrot.slane %v1948_v52, 4 }
 0x403   : > { %v1955_v46 = vmax.f32 %v1825_v26, 0.0  ;;  %v2660_v0 = vmax.f32 %v1946_v54, %v2659_v29  ;;  %v1954_v50 = vmax.f32 %v1714_v53, 0.0  ;;  %v1956_v51 = vmax.f32 %v1827_v14, 0.0 }
 0x404   : > { %v2701_v24 = vrot.slane %v1953_v39, 4  ;;  %v2655_v7 = vrot.slane %v2654_v4, 2  ;;  %v2667_v20 = vrot.slane %v2666_v28, 2  ;;  %v2672_v25 = vmax.f32 %v1948_v52, %v2671_v59 }
 0x405   : > { %v2713_v56 = vrot.slane %v1955_v46, 4  ;;  %v2661_v63 = vrot.slane %v2660_v0, 2  ;;  %v2707_v32 = vrot.slane %v1954_v50, 4  ;;  %v2719_v34 = vrot.slane %v1956_v51, 4 }
 0x406   : > { %v2702_v1 = vmax.f32 %v1953_v39, %v2701_v24  ;;  %v2656_v16 = vmax.f32 %v2654_v4, %v2655_v7  ;;  %v2668_v8 = vmax.f32 %v2666_v28, %v2667_v20  ;;  %v2673_v15 = vrot.slane %v2672_v25, 2 }
 0x407   : > { %v2714_v61 = vmax.f32 %v1955_v46, %v2713_v56  ;;  %v2662_v43 = vmax.f32 %v2660_v0, %v2661_v63  ;;  %v2708_v38 = vmax.f32 %v1954_v50, %v2707_v32  ;;  %v2720_v44 = vmax.f32 %v1956_v51, %v2719_v34 }
 0x408   : > { %v2703_v3 = vrot.slane %v2702_v1, 2  ;;  %v2657_v18 = vrot.slane %v2656_v16, 1  ;;  %v2669_v54 = vrot.slane %v2668_v8, 1  ;;  %v2674_v33 = vmax.f32 %v2672_v25, %v2673_v15 }
 0x409   : > { %v2715_v57 = vrot.slane %v2714_v61, 2  ;;  %v2663_v42 = vrot.slane %v2662_v43, 1  ;;  %v2709_v52 = vrot.slane %v2708_v38, 2  ;;  %v2721_v5 = vrot.slane %v2720_v44, 2 }
 0x40a   : > { %v2704_v21 = vmax.f32 %v2702_v1, %v2703_v3  ;;  %v2658_v26 = vmax.f32 %v2656_v16, %v2657_v18  ;;  %v2670_v29 = vmax.f32 %v2668_v8, %v2669_v54  ;;  %v2675_v39 = vrot.slane %v2674_v33, 1 }
 0x40b   : > { %v2716_v47 = vmax.f32 %v2714_v61, %v2715_v57  ;;  %v2664_v53 = vmax.f32 %v2662_v43, %v2663_v42  ;;  %v2710_v14 = vmax.f32 %v2708_v38, %v2709_v52  ;;  %v2722_v4 = vmax.f32 %v2720_v44, %v2721_v5 }
 0x40c   : > { %v2705_v17 = vrot.slane %v2704_v21, 1  ;;  %v3103_v28 = vpack.c.bf16 %v2658_v26, %v2658_v26  ;;  %v3105_v59 = vpack.c.bf16 %v2670_v29, %v2670_v29  ;;  %v2676_v46 = vmax.f32 %v2674_v33, %v2675_v39 }
 0x40d   : > { %v2717_v0 = vrot.slane %v2716_v47, 1  ;;  %v3104_v24 = vpack.c.bf16 %v2664_v53, %v2664_v53  ;;  %v2711_v51 = vrot.slane %v2710_v14, 1  ;;  %v2723_v7 = vrot.slane %v2722_v4, 1 }
 0x40e   : > { %v2706_v50 = vmax.f32 %v2704_v21, %v2705_v17  ;;  %v3494_v20 = vunpack.c.l.b16 %v3103_v28  ;;  %v3496_v25 = vunpack.c.l.b16 %v3105_v59  ;;  %v3106_v56 = vpack.c.bf16 %v2676_v46, %v2676_v46  ;;  %v5130_v28 = vld [vmem:[%s6989_s12 + $0x8] sm:$0xff]   ;;  %v5131_v59 = vld [vmem:[%s6989_s12 + $0x10] sm:$0xff]   ;;  %v5132_v46 = vld [vmem:[%s6989_s12 + $0x18] sm:$0xff]  }
 0x40f   : > { %v2718_v63 = vmax.f32 %v2716_v47, %v2717_v0  ;;  %v3495_v1 = vunpack.c.l.b16 %v3104_v24  ;;  %v2712_v34 = vmax.f32 %v2710_v14, %v2711_v51  ;;  %v2724_v16 = vmax.f32 %v2722_v4, %v2723_v7  ;;  %v4701_v24 = vld [vmem:[%s6987_s10] ss:$0 sm:$0xff] }
 0x410   : > { %v3111_v32 = vpack.c.bf16 %v2706_v50, %v2706_v50  ;;  %v3497_v8 = vunpack.c.l.b16 %v3106_v56  ;;  %v3544_v61 = vsel %vm2917_vm5, %v6495_v11, %v6478_v41  ;;  %v3600_v43 = vsel %vm2917_vm5, %v6765_v40, %v6752_v12 }
 0x411   : > { %v3113_v15 = vpack.c.bf16 %v2718_v63, %v2718_v63  ;;  %v3112_v38 = vpack.c.bf16 %v2712_v34, %v2712_v34  ;;  %v3114_v44 = vpack.c.bf16 %v2724_v16, %v2724_v16  ;;  %v3545_v18 = vsel %vm2919_vm6, %v6503_v55, %v3544_v61 }
 0x412   : > { %v3502_v3 = vunpack.c.l.b16 %v3111_v32  ;;  %v3546_v33 = vsel %vm2921_vm7, %v6644_v31, %v3545_v18  ;;  %v3601_v57 = vsel %vm2919_vm6, %v6777_v49, %v3600_v43  ;;  %v3558_v41 = vsel %vm2917_vm5, %v6497_v35, %v6481_v37 }
 0x413   : > { %v3504_v54 = vunpack.c.l.b16 %v3113_v15  ;;  %v3503_v11 = vunpack.c.l.b16 %v3112_v38  ;;  %v3505_v42 = vunpack.c.l.b16 %v3114_v44  ;;  %v3547_v12 = vsel %vm2923_vm9, %v6655_v2, %v3546_v33 }
 0x414   : > { %v3602_v40 = vsel %vm2921_vm7, %v3495_v1, %v3601_v57  ;;  %v3559_v55 = vsel %vm2919_vm6, %v6505_v10, %v3558_v41  ;;  %v3614_v31 = vsel %vm2917_vm5, %v6767_v6, %v6755_v27  ;;  %v3539_v49 = vsel %vm2921_vm7, %v6637_v48, %v6514_v36  ;;  %v5129_v6 = vld [vmem:[%s6989_s12] sm:$0xff]  }
 0x415   : > { %v3595_v37 = vsel %vm2921_vm7, %v3494_v20, %v6786_v19  ;;  %v3603_v35 = vsel %vm2923_vm9, %v3503_v11, %v3602_v40  ;;  %v3560_v2 = vsel %vm2921_vm7, %v6646_v62, %v3559_v55  ;;  %v3615_v21 = vsel %vm2919_vm6, %v6781_v22, %v3614_v31 }
 0x416   : > { %v3540_v10 = vsel %vm2923_vm9, %v6651_v30, %v3539_v49  ;;  %v3623_v52 = vpack.c.b16 %v3603_v35, %v3547_v12  ;;  %v3561_v27 = vsel %vm2923_vm9, %v6662_v60, %v3560_v2  ;;  %v3616_v36 = vsel %vm2921_vm7, %v3497_v8, %v3615_v21  ;;  %v5133_v21 = vld [vmem:[%s6988_s11] sm:$0xff]  }
 0x417   : > { %v3596_v48 = vsel %vm2923_vm9, %v3502_v3, %v3595_v37  ;;  %v3617_v62 = vsel %vm2923_vm9, %v3505_v42, %v3616_v36  ;;  %v3553_v22 = vsel %vm2921_vm7, %v6642_v9, %v6517_v13  ;;  %v3609_v30 = vsel %vm2921_vm7, %v3496_v25, %v6789_v58  ;;  %v4698_v13 = vld [vmem:[%s6985_s8] ss:$0 sm:$0xff]  ;;  %v5136_v36 = vld [vmem:[%s6988_s11 + $0x18] sm:$0xff]  }
 0x418   : > { %v3622_v19 = vpack.c.b16 %v3596_v48, %v3540_v10  ;;  %4132 = vmatprep.mubr.bf16.mxu1 %v3623_v52  ;;  %v3625_v60 = vpack.c.b16 %v3617_v62, %v3561_v27  ;;  %v3554_v5 = vsel %vm2923_vm9, %v6653_v23, %v3553_v22  ;;  %v3610_v26 = vsel %vm2923_vm9, %v3504_v54, %v3609_v30  ;;  %v5134_v52 = vld [vmem:[%s6988_s11 + $0x8] sm:$0xff]   ;;  %v5135_v27 = vld [vmem:[%s6988_s11 + $0x10] sm:$0xff]   ;;  %v5137_v48 = vld [vmem:[%s6991_s14] sm:$0xff]  }
 0x419   : > { %v3624_v29 = vpack.c.b16 %v3610_v26, %v3554_v5  ;;  %v5139_v62 = vld [vmem:[%s6991_s14 + $0x10] sm:$0xff]  }
 0x41a   : > { %4133 = vmatmul.mubr.bf16.vlgmr.msra.gmra.mrb[84].mxu1 %v3622_v19  ;;  %4173 = vmatprep.mubr.bf16.mxu0 %v3625_v60  ;;  %v5140_v19 = vld [vmem:[%s6991_s14 + $0x18] sm:$0xff]  }
 0x41b   : > { %4971 = vmatpush3.bf16.msra.mxu1 %v5129_v6  ;;  %4174 = vmatmul.mubr.bf16.vlgmr.msra.gmra.mrb[88].mxu0 %v3624_v29  ;;  %v5138_v6 = vld [vmem:[%s6991_s14 + $0x8] sm:$0xff]   ;;  %v4776_v29 = vld [vmem:[%s6990_s13] ss:$0 sm:$0xff] }
 0x41c   : > { %4972 = vmatprep.subr.bf16.mxu1 %v7161_v45  ;;  %4978 = vmatprep.mubr.msk.bf16.mxu1 %vm5220_vm10, %v7161_v45 }
 0x41d   : > { %5002 = vmatprep.mubr.msk.bf16.mxu0 %vm5220_vm10, %v7161_v45  ;;  %4995 = vmatpush3.bf16.msra.mxu0 %v5137_v48 }
 0x41e   : > { %4996 = vmatprep.subr.bf16.mxu0 %v7161_v45 }
 0x41f   : > { %4973 = vmatpush3.bf16.msra.mxu1 %v5130_v28  ;;  %v5141_v28 = vld [vmem:[%s6993_s16] sm:$0xff]  }
 0x420   : > { %v2978_v9 = vpop.f32.mrb[80].mxu0  ;;  %4974 = vmatprep.subr.bf16.mxu1 %v7161_v45 }
 0x421   : > { %v2979_v23 = vadd.f32 %v4698_v13, %v2978_v9  ;;  %v4968_v58 = vpop.f32.mrb[81].mxu0  ;;  %4997 = vmatpush3.bf16.msra.mxu0 %v5138_v6 }
 0x422   : > { %v2981_v39 = vpop.f32.mrb[82].mxu0  ;;  %4998 = vmatprep.subr.bf16.mxu0 %v7161_v45 }
 0x423   : > { %v2985_v47 = vmax.f32 %v2979_v23, 0.0  ;;  %v2982_v53 = vadd.f32 %v4698_v13, %v2981_v39  ;;  %v4969_v17 = vpop.f32.mrb[83].mxu0  ;;  %4975 = vmatpush3.bf16.msra.mxu1 %v5131_v59  ;;  %v5142_v59 = vld [vmem:[%s6993_s16 + $0x8] sm:$0xff]  }
 0x424   : > { %4976 = vmatprep.subr.bf16.mxu1 %v7161_v45 }
 0x425   : > { %v2986_v14 = vmax.f32 %v2982_v53, 0.0  ;;  %4999 = vmatpush3.bf16.msra.mxu0 %v5139_v62 }
 0x426   : > { %5000 = vmatprep.subr.bf16.mxu0 %v7161_v45 }
 0x427   : > { %v4184_v4 = vpack.c.bf16 %v2986_v14, %v2985_v47  ;;  %4977 = vmatpush3.bf16.msra.mxu1 %v5132_v46  ;;  %v4777_v46 = vld [vmem:[%s6992_s15] ss:$0 sm:$0xff] }
 0x428   : > { %4982 = vmatprep.subr.bf16.mxu1 %v7161_v45 }
 0x429   : > { %5001 = vmatpush3.bf16.msra.mxu0 %v5140_v19 }
 0x47d   : > { %v4832_v0 = vpop.f32.mrb[80].mxu1 }
 0x47e   : > { %v4833_v50 = vpop.f32.mrb[81].mxu1 }
 0x47f   : > { %v4854_v51 = vpop.f32.mrb[84].mxu0  ;;  %v4834_v7 = vadd.f32 %v4833_v50, %v4832_v0  ;;  %v4835_v20 = vpop.f32.mrb[82].mxu1 }
 0x480   : > { %v4855_v25 = vpop.f32.mrb[85].mxu0  ;;  %v4836_v56 = vpop.f32.mrb[83].mxu1 }
 0x481   : > { %v4053_v63 = vadd.f32 %v4834_v7, %v4701_v24  ;;  %v4856_v1 = vadd.f32 %v4855_v25, %v4854_v51  ;;  %v4857_v32 = vpop.f32.mrb[86].mxu0  ;;  %v4837_v34 = vadd.f32 %v4836_v56, %v4835_v20 }
 0x482   : > { %v4858_v16 = vpop.f32.mrb[87].mxu0 }
 0x483   : > { %v4094_v8 = vadd.f32 %v4856_v1, %v4053_v63  ;;  %v4056_v15 = vadd.f32 %v4837_v34, %v4701_v24  ;;  %v4859_v61 = vadd.f32 %v4858_v16, %v4857_v32 }
 0x485   : > { %v4097_v43 = vadd.f32 %v4859_v61, %v4056_v15 }
 0x4ed   : > { %v4876_v3 = vpop.f32.mrb[84].mxu1 }
 0x4ee   : > { %v4877_v38 = vpop.f32.mrb[85].mxu1  ;;  %v4898_v44 = vpop.f32.mrb[88].mxu0 }
 0x4ef   : > { %v4878_v18 = vadd.f32 %v4877_v38, %v4876_v3  ;;  %v4879_v54 = vpop.f32.mrb[86].mxu1  ;;  %v4899_v33 = vpop.f32.mrb[89].mxu0 }
 0x4f0   : > { %v4880_v57 = vpop.f32.mrb[87].mxu1  ;;  %v4900_v11 = vadd.f32 %v4899_v33, %v4898_v44  ;;  %v4901_v42 = vpop.f32.mrb[90].mxu0 }
 0x4f1   : > { %v4135_v41 = vadd.f32 %v4878_v18, %v4094_v8  ;;  %v4881_v12 = vadd.f32 %v4880_v57, %v4879_v54  ;;  %v4902_v40 = vpop.f32.mrb[91].mxu0 }
 0x4f2   : > { %v4903_v49 = vadd.f32 %v4902_v40, %v4901_v42 }
 0x4f3   : > { %v4176_v55 = vadd.f32 %v4900_v11, %v4135_v41  ;;  %v4138_v31 = vadd.f32 %v4881_v12, %v4097_v43 }
 0x4f5   : > { %v4179_v37 = vadd.f32 %v4903_v49, %v4138_v31  ;;  %v4182_v35 = vmax.f32 %v4176_v55, 0.0 }
 0x4f7   : > { %v4183_v2 = vmax.f32 %v4179_v37, 0.0 }
 0x4f9   : > { %v4193_v10 = vpack.c.bf16 %v4183_v2, %v4182_v35 }
 0x4fb   : > { %4979 = vmatmul.mubr.msk.bf16.vlgmr.msra.gmra.mrb[88].mxu1 %vm805_vm8, %v4193_v10 }
 0x4fc   : > { %4983 = vmatpush3.bf16.msra.mxu1 %v5133_v21  ;;  %4990 = vmatprep.mubr.msk.bf16.mxu1 %vm5220_vm10, %v7161_v45 }
 0x4fd   : > { %4984 = vmatprep.subr.bf16.mxu1 %v7161_v45 }
 0x500   : > { %4985 = vmatpush3.bf16.msra.mxu1 %v5134_v52 }
 0x501   : > { %4986 = vmatprep.subr.bf16.mxu1 %v7161_v45 }
 0x504   : > { %4987 = vmatpush3.bf16.msra.mxu1 %v5135_v27 }
 0x505   : > { %4988 = vmatprep.subr.bf16.mxu1 %v7161_v45 }
 0x508   : > { %4989 = vmatpush3.bf16.msra.mxu1 %v5136_v36 }
 0x509   : > { %5006 = vmatprep.subr.bf16.mxu1 %v7161_v45 }
 0x50b   : > { %4991 = vmatmul.mubr.msk.bf16.vlgmr.msra.gmra.mrb[92].mxu1 %vm805_vm8, %v4184_v4 }
 0x50c   : > { %5010 = vmatprep.mubr.msk.bf16.mxu1 %vm5220_vm10, %v7161_v45  ;;  %5007 = vmatpush3.bf16.msra.mxu1 %v5141_v28 }
 0x50d   : > { %5008 = vmatprep.subr.bf16.mxu1 %v7161_v45  ;;  %v4783_v45 = vld [vmem:[%s6994_s17] ss:$0 sm:$0xff] }
 0x510   : > { %5009 = vmatpush3.bf16.msra.mxu1 %v5142_v59 }
 0x5ce   : > { %v4263_v22 = vpop.f32.mrb[88].mxu1 }
 0x5cf   : > { %v4980_v30 = vpop.f32.mrb[89].mxu1 }
 0x5d0   : > { %v4266_v60 = vpop.f32.mrb[90].mxu1 }
 0x5d1   : > { %v4981_v5 = vpop.f32.mrb[91].mxu1 }
 0x5de   : > { %v4331_v26 = vpop.f32.mrb[92].mxu1 }
 0x5df   : > { %v4332_v13 = vadd.f32 %v4331_v26, %v4263_v22  ;;  %v4992_v9 = vpop.f32.mrb[93].mxu1 }
 0x5e0   : > { %v4334_v23 = vpop.f32.mrb[94].mxu1 }
 0x5e1   : > { %v4345_v58 = vadd.f32 %v4776_v29, %v4332_v13  ;;  %v4335_v39 = vadd.f32 %v4334_v23, %v4266_v60  ;;  %v4993_v47 = vpop.f32.mrb[95].mxu1 }
 0x5e3   : > { %v4346_v53 = vadd.f32 %v4776_v29, %v4335_v39  ;;  %v4347_v17 = vmax.f32 %v4345_v58, 0.0 }
 0x5e5   : > { %v4348_v14 = vmax.f32 %v4346_v53, 0.0 }
 0x5e7   : > { %v4349_v4 = vpack.c.bf16 %v4348_v14, %v4347_v17 }
 0x5e9   : > { %5003 = vmatmul.mubr.msk.bf16.vlgmr.msra.gmra.mrb[92].mxu0 %vm805_vm8, %v4349_v4 }
 0x6bc   : > { %v4426_v0 = vpop.f32.mrb[92].mxu0 }
 0x6bd   : > { %v4427_v24 = vadd.f32 %v4777_v46, %v4426_v0  ;;  %v5004_v50 = vpop.f32.mrb[93].mxu0 }
 0x6be   : > { %v4429_v51 = vpop.f32.mrb[94].mxu0 }
 0x6bf   : > { %v4430_v7 = vadd.f32 %v4777_v46, %v4429_v51  ;;  %v5005_v20 = vpop.f32.mrb[95].mxu0  ;;  %v4433_v25 = vmax.f32 %v4427_v24, 0.0 }
 0x6c1   : > { %v4434_v56 = vmax.f32 %v4430_v7, 0.0 }
 0x6c3   : > { %v4435_v63 = vpack.c.bf16 %v4434_v56, %v4433_v25 }
 0x6c5   : > { %5011 = vmatmul.mubr.msk.bf16.vlgmr.msra.gmra.mrb[96].mxu1 %vm4459_vm11, %v4435_v63 }
 0x798   : > { %v4497_v1 = vpop.f32.mrb[96].mxu1 }
 0x799   : > { %v4498_v32 = vadd.f32 %v4783_v45, %v4497_v1  ;;  %v5012_v34 = vpop.f32.mrb[97].mxu1 }
 0x79a   : > { %v4500_v16 = vpop.f32.mrb[98].mxu1 }
 0x79b   : > { %4504 = vmax.xlane.f32.xlu0 %v4498_v32  ;;  %v5013_v8 = vpop.f32.mrb[99].mxu1  ;;  %v4501_v15 = vadd.f32 %v4783_v45, %v4500_v16 }
 0x79f   : > { %4506 = vmax.xlane.f32.xlu0 %v4501_v15 }
 0x828   : > { %v4505_v61 = vpop.xlane.xlu0 %4504 }
 0x829   : > { %v4508_v43 = vsub.f32 %v4498_v32, %v4505_v61 }
 0x82b   : > { %v4510_v3 = vmul.f32 1.442695, %v4508_v43 }
 0x82c   : > { %v4507_v38 = vpop.xlane.xlu0 %4506 }
 0x82d   : > { %v4509_v44 = vsub.f32 %v4501_v15, %v4507_v38  ;;  %5143 = vpow2.f32 %v4510_v3 }
 0x82f   : > { %v4512_v18 = vmul.f32 1.442695, %v4509_v44 }
 0x831   : > { %5145 = vpow2.f32 %v4512_v18 }
 0x837   : > { %v5144_v54 = vpop.eup %5143 }
 0x838   : > { %4514 = vadd.xlane.f32.xlu1 %v5144_v54 }
 0x83b   : > { %v5146_v33 = vpop.eup %5145 }
 0x83c   : > { %4516 = vadd.xlane.f32.xlu1 %v5146_v33 }
 0x8c5   : > { %v4515_v57 = vpop.xlane.xlu1 %4514 }
 0x8c6   : > { %5147 = vlog2.f32 %v4515_v57 }
 0x8c9   : > { %v4517_v41 = vpop.xlane.xlu1 %4516 }
 0x8ca   : > { %5149 = vlog2.f32 %v4517_v41 }
 0x8d0   : > { %v5148_v11 = vpop.eup %5147 }
 0x8d1   : > { %v4519_v42 = vmul.f32 0.6931472, %v5148_v11 }
 0x8d3   : > { %v4522_v12 = vadd.f32 %v4519_v42, %v4505_v61 }
 0x8d4   : > { %v5150_v40 = vpop.eup %5149 }
 0x8d5   : > { %v4524_v55 = vsub.f32 %v4498_v32, %v4522_v12  ;;  %v4521_v31 = vmul.f32 0.6931472, %v5150_v40 }
 0x8d7   : > { %4526 = vst [vmem:[%s569_s27] sm:$0xff] %v4524_v55  ;;  %v4523_v49 = vadd.f32 %v4521_v31, %v4507_v38 }
 0x8d9   : > { %v4525_v37 = vsub.f32 %v4501_v15, %v4523_v49 }
 0x8db   : > { %4527 = vst [vmem:[%s569_s27 + $0x8] sm:$0xff] %v4525_v37 }
 0x8dc   : > { %5167 = shalt.err (!%p5164_p3)
}
 0x8dd   : > { %s5168_s19 = scalar_lea.hbm %s6932_s26, 256  ;;  %s5172_s25 = scalar_lea.hbm %s6995_s18, 512 }
 0x8de   : > { %p5169_p4 = scmp.ne.s32.totalorder %s6932_s26, %s5168_s19  ;;  %p5173_p9 = scmp.lt.u32.totalorder %s6932_s26, %s6995_s18 }
 0x8df   : > { %p5174_p10 = scmp.lt.u32.totalorder %s5172_s25, %s5168_s19  ;;  %p5176_p12 = scmp.lt.u32.totalorder %s5168_s19, %s6932_s26 }
 0x8e0   : > { %p5170_p7 = pnand %p5169_p4, %p5357_p5 }
 0x8e1   : > { %p5175_p11 = por %p5174_p10, %p5173_p9 }
 0x8e2   : > { %p5171_p8 = pneg %p5170_p7 }
 0x8e3   : > { %p5177_p13 = por %p5176_p12, %p5175_p11 }
 0x8e5   : > { %p5178_p0 = pnand %p5177_p13, %p5171_p8 }
 0x8e7   : > { %5181 = shalt.err (!%p5178_p0)
}
 0x8e8   : > { %s5222_s1 = smov 128   ;;  %s5223_s22 = smov 8  }
 0x8e9   : > { %5015 = dma.vmem_to_hbm [thread:$0]  (%p5357_p5), %s6934_s23, 256, %s6932_s26, %s6936_s29, %s5222_s1, %s5222_s1, %s5223_s22  }
 0x8ea PF: > { %s7186_s21 = sld [smem:[#allocation5_spill]]  ;;  %p5021_p1 = scmp.ge.s32.totalorder %s5216_s30, 2 }
 0x8ec   : > { %p5018_p2 = pnand %p5021_p1, %p5361_p6 }
 0x8f0   : > { %s4557_s27 = sand.u32 1, %s7186_s21  }
 0x8f1   : > { %s4558_s19 = scalar_lea.sflag [#allocation3], %s4557_s27 }
 0x8f2   : > { %5199 = dma.done.wait (!%p5018_p2), %s4558_s19, 256  }
 0x8f3   : > { %5201 = vsyncadd (!%p5018_p2), %s4558_s19, 4294967040  ;;  %s7188_s30 = sld [smem:[#allocation7_spill]]  ;;  %s7189_s25 = sld [smem:[#allocation6_spill]] }
 0x8f4   : > { %s7190_s29 = sld [smem:[#allocation8_spill]]  ;;  %s7191_s27 = smov %s5208_s28 }
 0x8f9   : > { %p28_p3 = scmp.ge.s32.totalorder %s7188_s30, 4   ;;  %s7192_s28 = smov %s7189_s25 }
 0x8fb   :  { %30 = sbr.rel (!%p28_p3) target bundleno = 7 (0x7), region = 127 }
 0x902   :  { %4563 = vsyncpa [#allocation3], 1 }
 0x903   :  { %4565 = vsyncpa [#allocation3 + $0x1], 1 }

</bundles_post_ra>
